<compile_context>
chip_gen: v5e
topology: v5e:2x2
jax: 0.10.0
libtpu: 0.0.40
codegen_flags: <defaults>
</compile_context>

<pallas_src>
import functools

import jax
import jax.numpy as jnp
from jax.experimental import pallas as pl
from jax.experimental.pallas import tpu as pltpu

EPS = 1e-5
LANE = 128


def _round_up(x, m):
    return (x + m - 1) // m * m


# ---------------------------------------------------------------------------
# Fused Bottleneck kernel.
#   x_main_ref : (TH,   W+2, Cp)  bf16  padded-x rows [i*TH, i*TH+TH)
#   x_halo_ref : (2,    W+2, Cp)  bf16  padded-x rows [i*TH+TH, i*TH+TH+2)
#   w1_ref     : (Cp, Pp)         bf16  conv1 weight (BN1 scale folded)
#   w2_ref     : (9, Pp, Pp)      bf16  conv2 taps   (BN2 scale folded)
#   w3_ref     : (Pp, Cop)        bf16  conv3 weight (BN3 scale folded)
#   b1/b2/b3   : (1, Pp/Pp/Cop)   f32   folded BN biases
#   o_ref      : (TH, W, Cop)     f32   output rows [i*TH, i*TH+TH)
#   h1_ref     : (TH+2, W+2, Pp)  bf16  VMEM scratch (zero-padded h1 tile)
# ---------------------------------------------------------------------------
def _bottleneck_kernel(x_main_ref, x_halo_ref, w1_ref, w2_ref, w3_ref,
                       b1_ref, b2_ref, b3_ref, o_ref, h1_ref, *, TH, H, W):
    i = pl.program_id(1)
    base = i * TH                          # first global padded row of tile
    Cp, Pp = w1_ref.shape
    Cop = w3_ref.shape[1]
    R = TH + 2                             # tile rows incl. top/bottom halo

    # Zero the scratch: provides conv2's zero-padding ring (cols 0 / W+1 and
    # any out-of-image rows stay zero).
    h1_ref[...] = jnp.zeros(h1_ref.shape, h1_ref.dtype)

    # ---- stage 1: h1 = relu(bn1(conv1(x))) for all TH+2 tile rows ----------
    # One MXU matmul with M = (TH+2)*W instead of per-row M=W matmuls.
    xc = jnp.concatenate([x_main_ref[:, 1:1 + W, :],
                          x_halo_ref[:, 1:1 + W, :]], axis=0)      # (R, W, Cp)
    acc1 = jnp.dot(xc.reshape(R * W, Cp), w1_ref[...],
                   preferred_element_type=jnp.float32)             # (R*W, Pp)
    h1 = jnp.maximum(acc1 + b1_ref[...], 0.0).reshape(R, W, Pp)
    # Zero rows that fall outside the image (replaces per-row pl.when guards):
    rows = base + jax.lax.broadcasted_iota(jnp.int32, (R, W, Pp), 0)
    h1 = jnp.where(jnp.logical_and(rows >= 1, rows <= H), h1, 0.0)
    h1_ref[:, 1:1 + W, :] = h1.astype(h1_ref.dtype)

    # ---- stage 2: 9-tap 3x3 conv over the whole tile + bn2 + relu ----------
    acc2 = jnp.zeros((TH * W, Pp), jnp.float32)
    for dy in range(3):
        for dx in range(3):
            lhs = h1_ref[dy:dy + TH, dx:dx + W, :].reshape(TH * W, Pp)
            acc2 = acc2 + jnp.dot(lhs, w2_ref[dy * 3 + dx],
                                  preferred_element_type=jnp.float32)
    h2 = jnp.maximum(acc2 + b2_ref[...], 0.0).astype(jnp.bfloat16)

    # ---- stage 3: conv3 + bn3 + identity residual + final relu -------------
    acc3 = jnp.dot(h2, w3_ref[...], preferred_element_type=jnp.float32)
    res = jnp.concatenate([x_main_ref[1:TH, 1:1 + W, :],
                           x_halo_ref[0:1, 1:1 + W, :]], axis=0)   # (TH, W, Cp)
    y = acc3 + b3_ref[...] + res.reshape(TH * W, Cp).astype(jnp.float32)
    o_ref[...] = jnp.maximum(y, 0.0).reshape(TH, W, Cop).astype(o_ref.dtype)


# ---------------------------------------------------------------------------
# Host-side parameter prep + pallas_call wrapper
# ---------------------------------------------------------------------------
def _fold_1x1(w_oi, gamma, beta, mean, var, kin_pad, kout_pad):
    """(out,in) 1x1 conv weight + eval-mode BN -> padded (in,out) bf16 weight
    and (1, out_pad) f32 bias."""
    kout, kin = w_oi.shape
    s = gamma / jnp.sqrt(var + EPS)
    b = beta - mean * s
    w = jnp.transpose(w_oi * s[:, None])                   # (in, out), folded
    w = jnp.pad(w, ((0, kin_pad - kin), (0, kout_pad - kout)))
    b = jnp.pad(b, (0, kout_pad - kout))[None, :]
    return w.astype(jnp.bfloat16), b.astype(jnp.float32)


def bottleneck_forward(x_nchw, p, *, tile_rows=8):
    """Fused Pallas forward of Bottleneck (stride=1, no downsample, eval BN)."""
    N, Cin, H, W = x_nchw.shape
    planes = p["w1"].shape[0]
    Cout = 4 * planes
    assert Cin == Cout, "identity residual requires inplanes == 4*planes"

    Cp = _round_up(Cin, LANE)
    Pp = _round_up(planes, LANE)
    Cop = _round_up(Cout, LANE)

    TH = max(2, tile_rows)
    TH += TH % 2                            # halo block index needs TH even
    h_tiles = pl.cdiv(H, TH)
    Hp = h_tiles * TH + 2                   # +1 halo top, >=1 halo/rem bottom
    Wp = W + 2

    # activations: NCHW -> NHWC, zero-pad spatially + channel pad, bf16
    x = jnp.transpose(x_nchw, (0, 2, 3, 1))
    x = jnp.pad(x, ((0, 0), (1, Hp - H - 1), (1, 1), (0, Cp - Cin)))
    x = x.astype(jnp.bfloat16)

    # fold eval-mode BN into weights / per-channel bias
    w1, b1 = _fold_1x1(p["w1"].reshape(planes, Cin), p["g1"], p["b1"],
                       p["m1"], p["v1"], Cp, Pp)
    w3, b3 = _fold_1x1(p["w3"].reshape(Cout, planes), p["g3"], p["b3"],
                       p["m3"], p["v3"], Pp, Cop)
    s2 = p["g2"] / jnp.sqrt(p["v2"] + EPS)
    w2 = p["w2"] * s2[:, None, None, None]                  # (out, in, 3, 3)
    w2 = jnp.transpose(w2, (2, 3, 1, 0)).reshape(9, planes, planes)
    w2 = jnp.pad(w2, ((0, 0), (0, Pp - planes), (0, Pp - planes)))
    w2 = w2.astype(jnp.bfloat16)
    b2 = jnp.pad(p["b2"] - p["m2"] * s2, (0, Pp - planes))[None, :]
    b2 = b2.astype(jnp.float32)

    kernel = functools.partial(_bottleneck_kernel, TH=TH, H=H, W=W)
    half = TH // 2
    sq = pl.Squeezed()

    out = pl.pallas_call(
        kernel,
        out_shape=jax.ShapeDtypeStruct((N, h_tiles * TH, W, Cop), jnp.float32),
        grid=(N, h_tiles),
        in_specs=[
            pl.BlockSpec((sq, TH, Wp, Cp), lambda n, i: (n, i, 0, 0)),
            pl.BlockSpec((sq, 2, Wp, Cp),
                         lambda n, i: (n, (i + 1) * half, 0, 0)),
            pl.BlockSpec((Cp, Pp), lambda n, i: (0, 0)),
            pl.BlockSpec((9, Pp, Pp), lambda n, i: (0, 0, 0)),
            pl.BlockSpec((Pp, Cop), lambda n, i: (0, 0)),
            pl.BlockSpec((1, Pp), lambda n, i: (0, 0)),
            pl.BlockSpec((1, Pp), lambda n, i: (0, 0)),
            pl.BlockSpec((1, Cop), lambda n, i: (0, 0)),
        ],
        out_specs=pl.BlockSpec((sq, TH, W, Cop), lambda n, i: (n, i, 0, 0)),
        scratch_shapes=[pltpu.VMEM((TH + 2, Wp, Pp), jnp.bfloat16)],
        compiler_params=pltpu.CompilerParams(
            dimension_semantics=("parallel", "parallel")),
    )(x, x, w1, w2, w3, b1, b2, b3)

    out = out[:, :H, :, :Cout]
    return jnp.transpose(out, (0, 3, 1, 2))                 # back to NCHW


# ---------------------------------------------------------------------------
# Plain-JAX reference (for correctness check)
# ---------------------------------------------------------------------------
def bottleneck_reference(x, p):
    def conv(h, w, pad):
        return jax.lax.conv_general_dilated(
            h, w, (1, 1), [(pad, pad), (pad, pad)],
            dimension_numbers=("NCHW", "OIHW", "NCHW"),
            precision=jax.lax.Precision.HIGHEST,
        )

    def bn(h, g, b, m, v):
        sh = (1, -1, 1, 1)
        return ((h - m.reshape(sh)) / jnp.sqrt(v.reshape(sh) + EPS)
                * g.reshape(sh) + b.reshape(sh))

    identity = x
    out = jax.nn.relu(bn(conv(x, p["w1"], 0), p["g1"], p["b1"], p["m1"], p["v1"]))
    out = jax.nn.relu(bn(conv(out, p["w2"], 1), p["g2"], p["b2"], p["m2"], p["v2"]))
    out = bn(conv(out, p["w3"], 0), p["g3"], p["b3"], p["m3"], p["v3"])
    return jax.nn.relu(out + identity)


# ---------------------------------------------------------------------------
def make_params(key, inplanes, planes):
    ks = jax.random.split(key, 6)
    exp = 4 * planes
    f32 = jnp.float32

    def bn_params(k, c):
        k1, k2, k3, k4 = jax.random.split(k, 4)
        return (
            jax.random.uniform(k1, (c,), f32, 0.5, 1.5),   # gamma
            jax.random.normal(k2, (c,), f32) * 0.1,        # beta
            jax.random.normal(k3, (c,), f32) * 0.1,        # running_mean
            jax.random.uniform(k4, (c,), f32, 0.5, 1.5),   # running_var
        )

    g1, b1, m1, v1 = bn_params(ks[3], planes)
    g2, b2, m2, v2 = bn_params(ks[4], planes)
    g3, b3, m3, v3 = bn_params(ks[5], exp)
    return dict(
        w1=jax.random.normal(ks[0], (planes, inplanes, 1, 1), f32) * 0.1,
        w2=jax.random.normal(ks[1], (planes, planes, 3, 3), f32) * 0.1,
        w3=jax.random.normal(ks[2], (exp, planes, 1, 1), f32) * 0.1,
        g1=g1, b1=b1, m1=m1, v1=v1,
        g2=g2, b2=b2, m2=m2, v2=v2,
        g3=g3, b3=b3, m3=m3, v3=v3,
    )


if __name__ == "__main__":
    key = jax.random.PRNGKey(0)
    kx, kp = jax.random.split(key)

    # inplanes == 4*planes -> identity residual path (as in ResNet body blocks)
    N, inplanes, planes, H, W = 2, 16, 4, 16, 16
    x = jax.random.normal(kx, (N, inplanes, H, W), jnp.float32)
    params = make_params(kp, inplanes, planes)

    fwd = jax.jit(bottleneck_forward)
    out = jax.block_until_ready(fwd(x, params))
    ref = jax.block_until_ready(bottleneck_reference(x, params))

    assert out.shape == (N, 4 * planes, H, W), out.shape
    max_err = float(jnp.max(jnp.abs(out - ref)))
    # bf16 matmul operands (f32 accumulation) -> loosened tolerance vs f32 ref
    assert jnp.allclose(out, ref, atol=5e-2, rtol=5e-2), max_err
    print("KERNEL_OK")
</pallas_src>

<mosaic_0001>
module attributes {stable_mosaic.version = 11 : i64} {
  func.func @_bottleneck_kernel(%arg0: i32, %arg1: i32, %arg2: memref<1x8x18x128xbf16, #tpu.memory_space<vmem>>, %arg3: memref<1x2x18x128xbf16, #tpu.memory_space<vmem>>, %arg4: memref<128x128xbf16, #tpu.memory_space<vmem>>, %arg5: memref<9x128x128xbf16, #tpu.memory_space<vmem>>, %arg6: memref<128x128xbf16, #tpu.memory_space<vmem>>, %arg7: memref<1x128xf32, #tpu.memory_space<vmem>>, %arg8: memref<1x128xf32, #tpu.memory_space<vmem>>, %arg9: memref<1x128xf32, #tpu.memory_space<vmem>>, %arg10: memref<1x8x16x128xf32, #tpu.memory_space<vmem>>, %arg11: memref<10x18x128xbf16, #tpu.memory_space<vmem>>) attributes {dimension_semantics = [#tpu.dimension_semantics<parallel>, #tpu.dimension_semantics<parallel>], iteration_bounds = array<i64: 2, 2>, scalar_prefetch = 0 : i64, scratch_operands = 1 : i64, tpu.core_type = #tpu.core_type<tc>, window_params = [{transform_indices = @transform_0, window_bounds = array<i64: 1, 8, 18, 128>}, {transform_indices = @transform_1, window_bounds = array<i64: 1, 2, 18, 128>}, {pipeline_mode = #tpu.pipeline_mode<synchronous>, transform_indices = @transform_2, window_bounds = array<i64: 128, 128>}, {pipeline_mode = #tpu.pipeline_mode<synchronous>, transform_indices = @transform_3, window_bounds = array<i64: 9, 128, 128>}, {pipeline_mode = #tpu.pipeline_mode<synchronous>, transform_indices = @transform_4, window_bounds = array<i64: 128, 128>}, {pipeline_mode = #tpu.pipeline_mode<synchronous>, transform_indices = @transform_5, window_bounds = array<i64: 1, 128>}, {pipeline_mode = #tpu.pipeline_mode<synchronous>, transform_indices = @transform_6, window_bounds = array<i64: 1, 128>}, {pipeline_mode = #tpu.pipeline_mode<synchronous>, transform_indices = @transform_7, window_bounds = array<i64: 1, 128>}, {transform_indices = @transform_8, window_bounds = array<i64: 1, 8, 16, 128>}]} {
    %c8_i32 = arith.constant 8 : i32
    %0 = arith.muli %arg1, %c8_i32 : i32
    %cst = arith.constant 0.000000e+00 : bf16
    %1 = vector.broadcast %cst : bf16 to vector<10x18x128xbf16>
    %c0 = arith.constant 0 : index
    %c0_0 = arith.constant 0 : index
    %c0_1 = arith.constant 0 : index
    %2 = vector.load %arg11[%c0, %c0_0, %c0_1] : memref<10x18x128xbf16, #tpu.memory_space<vmem>>, vector<10x18x128xbf16>
    tpu.vector_store %arg11[%c0, %c0_0, %c0_1], %1 {strides = array<i32>} : memref<10x18x128xbf16, #tpu.memory_space<vmem>>, vector<10x18x128xbf16>,
    %c0_2 = arith.constant 0 : index
    %c0_3 = arith.constant 0 : index
    %c1 = arith.constant 1 : index
    %c0_4 = arith.constant 0 : index
    %3 = vector.load %arg2[%c0_2, %c0_3, %c1, %c0_4] : memref<1x8x18x128xbf16, #tpu.memory_space<vmem>>, vector<1x8x16x128xbf16>
    %4 = vector.shape_cast %3 : vector<1x8x16x128xbf16> to vector<8x16x128xbf16>
    %c0_5 = arith.constant 0 : index
    %c0_6 = arith.constant 0 : index
    %c1_7 = arith.constant 1 : index
    %c0_8 = arith.constant 0 : index
    %5 = vector.load %arg3[%c0_5, %c0_6, %c1_7, %c0_8] : memref<1x2x18x128xbf16, #tpu.memory_space<vmem>>, vector<1x2x16x128xbf16>
    %6 = vector.shape_cast %5 : vector<1x2x16x128xbf16> to vector<2x16x128xbf16>
    %7 = tpu.concatenate %4, %6 in 0 : vector<8x16x128xbf16>, vector<2x16x128xbf16> -> vector<10x16x128xbf16>
    %8 = vector.shape_cast %7 : vector<10x16x128xbf16> to vector<160x128xbf16>
    %c0_9 = arith.constant 0 : index
    %c0_10 = arith.constant 0 : index
    %9 = vector.load %arg4[%c0_9, %c0_10] : memref<128x128xbf16, #tpu.memory_space<vmem>>, vector<128x128xbf16>
    %cst_11 = arith.constant dense<0.000000e+00> : vector<160x128xf32>
    %10 = tpu.matmul %8, %9, %cst_11 {dimension_numbers = #tpu.dot_dimension_numbers<[1], [0], [0], [1], [0, 0, 1, 1], [], []>} : vector<160x128xbf16>, vector<128x128xbf16>, vector<160x128xf32> -> vector<160x128xf32>
    %c0_12 = arith.constant 0 : index
    %c0_13 = arith.constant 0 : index
    %11 = vector.load %arg7[%c0_12, %c0_13] : memref<1x128xf32, #tpu.memory_space<vmem>>, vector<1x128xf32>
    %12 = vector.broadcast %11 : vector<1x128xf32> to vector<160x128xf32>
    %13 = arith.addf %10, %12 : vector<160x128xf32>
    %cst_14 = arith.constant 0.000000e+00 : f32
    %14 = vector.broadcast %cst_14 : f32 to vector<160x128xf32>
    %15 = arith.maximumf %13, %14 : vector<160x128xf32>
    %16 = vector.shape_cast %15 : vector<160x128xf32> to vector<10x16x128xf32>
    %17 = tpu.iota {dimensions = array<i32: 0>} : vector<10x16x128xi32>
    %18 = vector.broadcast %0 : i32 to vector<10x16x128xi32>
    %19 = arith.addi %18, %17 : vector<10x16x128xi32>
    %c1_i32 = arith.constant 1 : i32
    %20 = vector.broadcast %c1_i32 : i32 to vector<10x16x128xi32>
    %21 = arith.cmpi sge, %19, %20 : vector<10x16x128xi32>
    %c16_i32 = arith.constant 16 : i32
    %22 = vector.broadcast %c16_i32 : i32 to vector<10x16x128xi32>
    %23 = arith.cmpi sle, %19, %22 : vector<10x16x128xi32>
    %24 = arith.andi %21, %23 : vector<10x16x128xi1>
    %cst_15 = arith.constant 0.000000e+00 : f32
    %25 = vector.broadcast %cst_15 : f32 to vector<10x16x128xf32>
    %26 = arith.select %24, %16, %25 : vector<10x16x128xi1>, vector<10x16x128xf32>
    %27 = arith.truncf %26 : vector<10x16x128xf32> to vector<10x16x128xbf16>
    %c0_16 = arith.constant 0 : index
    %c1_17 = arith.constant 1 : index
    %c0_18 = arith.constant 0 : index
    %28 = vector.load %arg11[%c0_16, %c1_17, %c0_18] : memref<10x18x128xbf16, #tpu.memory_space<vmem>>, vector<10x16x128xbf16>
    tpu.vector_store %arg11[%c0_16, %c1_17, %c0_18], %27 {strides = array<i32>} : memref<10x18x128xbf16, #tpu.memory_space<vmem>>, vector<10x16x128xbf16>,
    %cst_19 = arith.constant 0.000000e+00 : f32
    %29 = vector.broadcast %cst_19 : f32 to vector<128x128xf32>
    %c0_20 = arith.constant 0 : index
    %c0_21 = arith.constant 0 : index
    %c0_22 = arith.constant 0 : index
    %30 = vector.load %arg11[%c0_20, %c0_21, %c0_22] : memref<10x18x128xbf16, #tpu.memory_space<vmem>>, vector<8x16x128xbf16>
    %31 = vector.shape_cast %30 : vector<8x16x128xbf16> to vector<128x128xbf16>
    %c0_23 = arith.constant 0 : index
    %c0_24 = arith.constant 0 : index
    %c0_25 = arith.constant 0 : index
    %32 = vector.load %arg5[%c0_23, %c0_24, %c0_25] : memref<9x128x128xbf16, #tpu.memory_space<vmem>>, vector<1x128x128xbf16>
    %33 = vector.shape_cast %32 : vector<1x128x128xbf16> to vector<128x128xbf16>
    %cst_26 = arith.constant dense<0.000000e+00> : vector<128x128xf32>
    %34 = tpu.matmul %31, %33, %cst_26 {dimension_numbers = #tpu.dot_dimension_numbers<[1], [0], [0], [1], [0, 0, 1, 1], [], []>} : vector<128x128xbf16>, vector<128x128xbf16>, vector<128x128xf32> -> vector<128x128xf32>
    %35 = arith.addf %29, %34 : vector<128x128xf32>
    %c0_27 = arith.constant 0 : index
    %c1_28 = arith.constant 1 : index
    %c0_29 = arith.constant 0 : index
    %36 = vector.load %arg11[%c0_27, %c1_28, %c0_29] : memref<10x18x128xbf16, #tpu.memory_space<vmem>>, vector<8x16x128xbf16>
    %37 = vector.shape_cast %36 : vector<8x16x128xbf16> to vector<128x128xbf16>
    %c1_30 = arith.constant 1 : index
    %c0_31 = arith.constant 0 : index
    %c0_32 = arith.constant 0 : index
    %38 = vector.load %arg5[%c1_30, %c0_31, %c0_32] : memref<9x128x128xbf16, #tpu.memory_space<vmem>>, vector<1x128x128xbf16>
    %39 = vector.shape_cast %38 : vector<1x128x128xbf16> to vector<128x128xbf16>
    %cst_33 = arith.constant dense<0.000000e+00> : vector<128x128xf32>
    %40 = tpu.matmul %37, %39, %cst_33 {dimension_numbers = #tpu.dot_dimension_numbers<[1], [0], [0], [1], [0, 0, 1, 1], [], []>} : vector<128x128xbf16>, vector<128x128xbf16>, vector<128x128xf32> -> vector<128x128xf32>
    %41 = arith.addf %35, %40 : vector<128x128xf32>
    %c0_34 = arith.constant 0 : index
    %c2 = arith.constant 2 : index
    %c0_35 = arith.constant 0 : index
    %42 = vector.load %arg11[%c0_34, %c2, %c0_35] : memref<10x18x128xbf16, #tpu.memory_space<vmem>>, vector<8x16x128xbf16>
    %43 = vector.shape_cast %42 : vector<8x16x128xbf16> to vector<128x128xbf16>
    %c2_36 = arith.constant 2 : index
    %c0_37 = arith.constant 0 : index
    %c0_38 = arith.constant 0 : index
    %44 = vector.load %arg5[%c2_36, %c0_37, %c0_38] : memref<9x128x128xbf16, #tpu.memory_space<vmem>>, vector<1x128x128xbf16>
    %45 = vector.shape_cast %44 : vector<1x128x128xbf16> to vector<128x128xbf16>
    %cst_39 = arith.constant dense<0.000000e+00> : vector<128x128xf32>
    %46 = tpu.matmul %43, %45, %cst_39 {dimension_numbers = #tpu.dot_dimension_numbers<[1], [0], [0], [1], [0, 0, 1, 1], [], []>} : vector<128x128xbf16>, vector<128x128xbf16>, vector<128x128xf32> -> vector<128x128xf32>
    %47 = arith.addf %41, %46 : vector<128x128xf32>
    %c1_40 = arith.constant 1 : index
    %c0_41 = arith.constant 0 : index
    %c0_42 = arith.constant 0 : index
    %48 = vector.load %arg11[%c1_40, %c0_41, %c0_42] : memref<10x18x128xbf16, #tpu.memory_space<vmem>>, vector<8x16x128xbf16>
    %49 = vector.shape_cast %48 : vector<8x16x128xbf16> to vector<128x128xbf16>
    %c3 = arith.constant 3 : index
    %c0_43 = arith.constant 0 : index
    %c0_44 = arith.constant 0 : index
    %50 = vector.load %arg5[%c3, %c0_43, %c0_44] : memref<9x128x128xbf16, #tpu.memory_space<vmem>>, vector<1x128x128xbf16>
    %51 = vector.shape_cast %50 : vector<1x128x128xbf16> to vector<128x128xbf16>
    %cst_45 = arith.constant dense<0.000000e+00> : vector<128x128xf32>
    %52 = tpu.matmul %49, %51, %cst_45 {dimension_numbers = #tpu.dot_dimension_numbers<[1], [0], [0], [1], [0, 0, 1, 1], [], []>} : vector<128x128xbf16>, vector<128x128xbf16>, vector<128x128xf32> -> vector<128x128xf32>
    %53 = arith.addf %47, %52 : vector<128x128xf32>
    %c1_46 = arith.constant 1 : index
    %c1_47 = arith.constant 1 : index
    %c0_48 = arith.constant 0 : index
    %54 = vector.load %arg11[%c1_46, %c1_47, %c0_48] : memref<10x18x128xbf16, #tpu.memory_space<vmem>>, vector<8x16x128xbf16>
    %55 = vector.shape_cast %54 : vector<8x16x128xbf16> to vector<128x128xbf16>
    %c4 = arith.constant 4 : index
    %c0_49 = arith.constant 0 : index
    %c0_50 = arith.constant 0 : index
    %56 = vector.load %arg5[%c4, %c0_49, %c0_50] : memref<9x128x128xbf16, #tpu.memory_space<vmem>>, vector<1x128x128xbf16>
    %57 = vector.shape_cast %56 : vector<1x128x128xbf16> to vector<128x128xbf16>
    %cst_51 = arith.constant dense<0.000000e+00> : vector<128x128xf32>
    %58 = tpu.matmul %55, %57, %cst_51 {dimension_numbers = #tpu.dot_dimension_numbers<[1], [0], [0], [1], [0, 0, 1, 1], [], []>} : vector<128x128xbf16>, vector<128x128xbf16>, vector<128x128xf32> -> vector<128x128xf32>
    %59 = arith.addf %53, %58 : vector<128x128xf32>
    %c1_52 = arith.constant 1 : index
    %c2_53 = arith.constant 2 : index
    %c0_54 = arith.constant 0 : index
    %60 = vector.load %arg11[%c1_52, %c2_53, %c0_54] : memref<10x18x128xbf16, #tpu.memory_space<vmem>>, vector<8x16x128xbf16>
    %61 = vector.shape_cast %60 : vector<8x16x128xbf16> to vector<128x128xbf16>
    %c5 = arith.constant 5 : index
    %c0_55 = arith.constant 0 : index
    %c0_56 = arith.constant 0 : index
    %62 = vector.load %arg5[%c5, %c0_55, %c0_56] : memref<9x128x128xbf16, #tpu.memory_space<vmem>>, vector<1x128x128xbf16>
    %63 = vector.shape_cast %62 : vector<1x128x128xbf16> to vector<128x128xbf16>
    %cst_57 = arith.constant dense<0.000000e+00> : vector<128x128xf32>
    %64 = tpu.matmul %61, %63, %cst_57 {dimension_numbers = #tpu.dot_dimension_numbers<[1], [0], [0], [1], [0, 0, 1, 1], [], []>} : vector<128x128xbf16>, vector<128x128xbf16>, vector<128x128xf32> -> vector<128x128xf32>
    %65 = arith.addf %59, %64 : vector<128x128xf32>
    %c2_58 = arith.constant 2 : index
    %c0_59 = arith.constant 0 : index
    %c0_60 = arith.constant 0 : index
    %66 = vector.load %arg11[%c2_58, %c0_59, %c0_60] : memref<10x18x128xbf16, #tpu.memory_space<vmem>>, vector<8x16x128xbf16>
    %67 = vector.shape_cast %66 : vector<8x16x128xbf16> to vector<128x128xbf16>
    %c6 = arith.constant 6 : index
    %c0_61 = arith.constant 0 : index
    %c0_62 = arith.constant 0 : index
    %68 = vector.load %arg5[%c6, %c0_61, %c0_62] : memref<9x128x128xbf16, #tpu.memory_space<vmem>>, vector<1x128x128xbf16>
    %69 = vector.shape_cast %68 : vector<1x128x128xbf16> to vector<128x128xbf16>
    %cst_63 = arith.constant dense<0.000000e+00> : vector<128x128xf32>
    %70 = tpu.matmul %67, %69, %cst_63 {dimension_numbers = #tpu.dot_dimension_numbers<[1], [0], [0], [1], [0, 0, 1, 1], [], []>} : vector<128x128xbf16>, vector<128x128xbf16>, vector<128x128xf32> -> vector<128x128xf32>
    %71 = arith.addf %65, %70 : vector<128x128xf32>
    %c2_64 = arith.constant 2 : index
    %c1_65 = arith.constant 1 : index
    %c0_66 = arith.constant 0 : index
    %72 = vector.load %arg11[%c2_64, %c1_65, %c0_66] : memref<10x18x128xbf16, #tpu.memory_space<vmem>>, vector<8x16x128xbf16>
    %73 = vector.shape_cast %72 : vector<8x16x128xbf16> to vector<128x128xbf16>
    %c7 = arith.constant 7 : index
    %c0_67 = arith.constant 0 : index
    %c0_68 = arith.constant 0 : index
    %74 = vector.load %arg5[%c7, %c0_67, %c0_68] : memref<9x128x128xbf16, #tpu.memory_space<vmem>>, vector<1x128x128xbf16>
    %75 = vector.shape_cast %74 : vector<1x128x128xbf16> to vector<128x128xbf16>
    %cst_69 = arith.constant dense<0.000000e+00> : vector<128x128xf32>
    %76 = tpu.matmul %73, %75, %cst_69 {dimension_numbers = #tpu.dot_dimension_numbers<[1], [0], [0], [1], [0, 0, 1, 1], [], []>} : vector<128x128xbf16>, vector<128x128xbf16>, vector<128x128xf32> -> vector<128x128xf32>
    %77 = arith.addf %71, %76 : vector<128x128xf32>
    %c2_70 = arith.constant 2 : index
    %c2_71 = arith.constant 2 : index
    %c0_72 = arith.constant 0 : index
    %78 = vector.load %arg11[%c2_70, %c2_71, %c0_72] : memref<10x18x128xbf16, #tpu.memory_space<vmem>>, vector<8x16x128xbf16>
    %79 = vector.shape_cast %78 : vector<8x16x128xbf16> to vector<128x128xbf16>
    %c8 = arith.constant 8 : index
    %c0_73 = arith.constant 0 : index
    %c0_74 = arith.constant 0 : index
    %80 = vector.load %arg5[%c8, %c0_73, %c0_74] : memref<9x128x128xbf16, #tpu.memory_space<vmem>>, vector<1x128x128xbf16>
    %81 = vector.shape_cast %80 : vector<1x128x128xbf16> to vector<128x128xbf16>
    %cst_75 = arith.constant dense<0.000000e+00> : vector<128x128xf32>
    %82 = tpu.matmul %79, %81, %cst_75 {dimension_numbers = #tpu.dot_dimension_numbers<[1], [0], [0], [1], [0, 0, 1, 1], [], []>} : vector<128x128xbf16>, vector<128x128xbf16>, vector<128x128xf32> -> vector<128x128xf32>
    %83 = arith.addf %77, %82 : vector<128x128xf32>
    %c0_76 = arith.constant 0 : index
    %c0_77 = arith.constant 0 : index
    %84 = vector.load %arg8[%c0_76, %c0_77] : memref<1x128xf32, #tpu.memory_space<vmem>>, vector<1x128xf32>
    %85 = vector.broadcast %84 : vector<1x128xf32> to vector<128x128xf32>
    %86 = arith.addf %83, %85 : vector<128x128xf32>
    %cst_78 = arith.constant 0.000000e+00 : f32
    %87 = vector.broadcast %cst_78 : f32 to vector<128x128xf32>
    %88 = arith.maximumf %86, %87 : vector<128x128xf32>
    %89 = arith.truncf %88 : vector<128x128xf32> to vector<128x128xbf16>
    %c0_79 = arith.constant 0 : index
    %c0_80 = arith.constant 0 : index
    %90 = vector.load %arg6[%c0_79, %c0_80] : memref<128x128xbf16, #tpu.memory_space<vmem>>, vector<128x128xbf16>
    %cst_81 = arith.constant dense<0.000000e+00> : vector<128x128xf32>
    %91 = tpu.matmul %89, %90, %cst_81 {dimension_numbers = #tpu.dot_dimension_numbers<[1], [0], [0], [1], [0, 0, 1, 1], [], []>} : vector<128x128xbf16>, vector<128x128xbf16>, vector<128x128xf32> -> vector<128x128xf32>
    %c0_82 = arith.constant 0 : index
    %c1_83 = arith.constant 1 : index
    %c1_84 = arith.constant 1 : index
    %c0_85 = arith.constant 0 : index
    %92 = vector.load %arg2[%c0_82, %c1_83, %c1_84, %c0_85] : memref<1x8x18x128xbf16, #tpu.memory_space<vmem>>, vector<1x7x16x128xbf16>
    %93 = vector.shape_cast %92 : vector<1x7x16x128xbf16> to vector<7x16x128xbf16>
    %c0_86 = arith.constant 0 : index
    %c0_87 = arith.constant 0 : index
    %c1_88 = arith.constant 1 : index
    %c0_89 = arith.constant 0 : index
    %94 = vector.load %arg3[%c0_86, %c0_87, %c1_88, %c0_89] : memref<1x2x18x128xbf16, #tpu.memory_space<vmem>>, vector<1x1x16x128xbf16>
    %95 = vector.shape_cast %94 : vector<1x1x16x128xbf16> to vector<1x16x128xbf16>
    %96 = tpu.concatenate %93, %95 in 0 : vector<7x16x128xbf16>, vector<1x16x128xbf16> -> vector<8x16x128xbf16>
    %c0_90 = arith.constant 0 : index
    %c0_91 = arith.constant 0 : index
    %97 = vector.load %arg9[%c0_90, %c0_91] : memref<1x128xf32, #tpu.memory_space<vmem>>, vector<1x128xf32>
    %98 = vector.broadcast %97 : vector<1x128xf32> to vector<128x128xf32>
    %99 = arith.addf %91, %98 : vector<128x128xf32>
    %100 = vector.shape_cast %96 : vector<8x16x128xbf16> to vector<128x128xbf16>
    %101 = arith.extf %100 : vector<128x128xbf16> to vector<128x128xf32>
    %102 = arith.addf %99, %101 : vector<128x128xf32>
    %cst_92 = arith.constant 0.000000e+00 : f32
    %103 = vector.broadcast %cst_92 : f32 to vector<128x128xf32>
    %104 = arith.maximumf %102, %103 : vector<128x128xf32>
    %105 = vector.shape_cast %104 : vector<128x128xf32> to vector<8x16x128xf32>
    %c0_93 = arith.constant 0 : index
    %c0_94 = arith.constant 0 : index
    %c0_95 = arith.constant 0 : index
    %c0_96 = arith.constant 0 : index
    %106 = vector.load %arg10[%c0_93, %c0_94, %c0_95, %c0_96] : memref<1x8x16x128xf32, #tpu.memory_space<vmem>>, vector<1x8x16x128xf32>
    %107 = vector.shape_cast %106 : vector<1x8x16x128xf32> to vector<8x16x128xf32>
    %108 = vector.shape_cast %105 : vector<8x16x128xf32> to vector<1x8x16x128xf32>
    tpu.vector_store %arg10[%c0_93, %c0_94, %c0_95, %c0_96], %108 {strides = array<i32>} : memref<1x8x16x128xf32, #tpu.memory_space<vmem>>, vector<1x8x16x128xf32>,
    return
  }
  func.func @transform_0(%arg0: i32, %arg1: i32) -> (i32, i32, i32, i32) {
    %c0_i32 = arith.constant 0 : i32
    %c0_i32_0 = arith.constant 0 : i32
    %c0_i32_1 = arith.constant 0 : i32
    return %arg0, %arg1, %c0_i32, %c0_i32_0 : i32, i32, i32, i32
  }
  func.func @transform_1(%arg0: i32, %arg1: i32) -> (i32, i32, i32, i32) {
    %c1_i32 = arith.constant 1 : i32
    %0 = arith.addi %arg1, %c1_i32 : i32
    %c4_i32 = arith.constant 4 : i32
    %1 = arith.muli %0, %c4_i32 : i32
    %c0_i32 = arith.constant 0 : i32
    %c0_i32_0 = arith.constant 0 : i32
    %c0_i32_1 = arith.constant 0 : i32
    return %arg0, %1, %c0_i32, %c0_i32_0 : i32, i32, i32, i32
  }
  func.func @transform_2(%arg0: i32, %arg1: i32) -> (i32, i32) {
    %c0_i32 = arith.constant 0 : i32
    %c0_i32_0 = arith.constant 0 : i32
    %c0_i32_1 = arith.constant 0 : i32
    return %c0_i32, %c0_i32_0 : i32, i32
  }
  func.func @transform_3(%arg0: i32, %arg1: i32) -> (i32, i32, i32) {
    %c0_i32 = arith.constant 0 : i32
    %c0_i32_0 = arith.constant 0 : i32
    %c0_i32_1 = arith.constant 0 : i32
    %c0_i32_2 = arith.constant 0 : i32
    return %c0_i32, %c0_i32_0, %c0_i32_1 : i32, i32, i32
  }
  func.func @transform_4(%arg0: i32, %arg1: i32) -> (i32, i32) {
    %c0_i32 = arith.constant 0 : i32
    %c0_i32_0 = arith.constant 0 : i32
    %c0_i32_1 = arith.constant 0 : i32
    return %c0_i32, %c0_i32_0 : i32, i32
  }
  func.func @transform_5(%arg0: i32, %arg1: i32) -> (i32, i32) {
    %c0_i32 = arith.constant 0 : i32
    %c0_i32_0 = arith.constant 0 : i32
    %c0_i32_1 = arith.constant 0 : i32
    return %c0_i32, %c0_i32_0 : i32, i32
  }
  func.func @transform_6(%arg0: i32, %arg1: i32) -> (i32, i32) {
    %c0_i32 = arith.constant 0 : i32
    %c0_i32_0 = arith.constant 0 : i32
    %c0_i32_1 = arith.constant 0 : i32
    return %c0_i32, %c0_i32_0 : i32, i32
  }
  func.func @transform_7(%arg0: i32, %arg1: i32) -> (i32, i32) {
    %c0_i32 = arith.constant 0 : i32
    %c0_i32_0 = arith.constant 0 : i32
    %c0_i32_1 = arith.constant 0 : i32
    return %c0_i32, %c0_i32_0 : i32, i32
  }
  func.func @transform_8(%arg0: i32, %arg1: i32) -> (i32, i32, i32, i32) {
    %c0_i32 = arith.constant 0 : i32
    %c0_i32_0 = arith.constant 0 : i32
    %c0_i32_1 = arith.constant 0 : i32
    return %arg0, %arg1, %c0_i32, %c0_i32_0 : i32, i32, i32, i32
  }
}

</mosaic_0001>

<bundles_post_ra>
// kernel: bottleneck_forward.1
= control target key start
LH: loop header
LB: loop body
LE: loop exit
PB: predicated region body
PF: predicated region fallthrough
CT: control target
= control target key end

     0   :  { %s5189_s27 = smov 0   ;;  %s5191_s28 = smov 0   ;;  %s6483_s0 = inlined_call_operand.vmem [shape: bf16[2,18,18,128], index: 0, kind: input, shape index: {}, may-alias: {0,1}]   ;;  %s6484_s1 = inlined_call_operand.vmem [shape: bf16[2,18,18,128], index: 1, kind: input, shape index: {}, may-alias: {0,1}]   ;;  %s6485_s2 = inlined_call_operand.vmem [shape: bf16[128,128], index: 2, kind: input, shape index: {}]   ;;  %s6486_s3 = inlined_call_operand.vmem [shape: bf16[9,128,128], index: 3, kind: input, shape index: {}]   ;;  %s6487_s4 = inlined_call_operand.vmem [shape: bf16[128,128], index: 4, kind: input, shape index: {}]   ;;  %s6488_s5 = inlined_call_operand.vmem [shape: f32[1,128], index: 5, kind: input, shape index: {}]   ;;  %s6489_s6 = inlined_call_operand.vmem [shape: f32[1,128], index: 6, kind: input, shape index: {}]   ;;  %s6490_s7 = inlined_call_operand.vmem [shape: f32[1,128], index: 7, kind: input, shape index: {}]   ;;  %s6491_s8 = inlined_call_operand.vmem [shape: f32[2,16,16,128], index: 8, kind: output, shape index: {}]  }
   0x1   :  { %s5193_s29 = smov 0   ;;  %s5195_s30 = smov 0  }
   0x2   :  { %s5197_s9 = smov 0  }
   0x3 LB: > { %s27_s10 = sadd.s32 1, %s5133_s29  ;;  %s30_s11 = sadd.s32 1, %s5137_s30  ;;  %s5141_s9 = sphi %s5197_s9, %s18_s9   ;;  %s5137_s30 = sphi %s5195_s30, %s6539_s30   ;;  %s5133_s29 = sphi %s5193_s29, %s6538_s29   ;;  %s5129_s28 = sphi %s5191_s28, %s6537_s28   ;;  %s5125_s27 = sphi %s5189_s27, %s6536_s27  }
   0x4   : > { %p28_p0 = scmp.ge.s32.totalorder %s27_s10, 2  ;;  %p4276_p1 = scmp.ge.s32.totalorder %s5141_s9, 1 }
   0x5   : > { %p320_p2 = scmp.lt.s32.totalorder %s5141_s9, 5 }
   0x6   : > { %s6541_s10 = smov (%p28_p0, %s27_s10), 0  ;;  %s6543_s11 = smov (!%p28_p0, %s30_s11), %s5137_s30 }
   0x7   : > { %p321_p3 = pnand %p4276_p1, %p320_p2  ;;  %p32_p4 = scmp.ge.s32.totalorder %s6543_s11, 2 }
   0x9   : > { %s6545_s11 = smov (%p32_p4, %s6543_s11), 0  ;;  %324 = sbr.rel (%p321_p3) target bundleno = 861 (0x35d), region = 52 }
   0xe   : > { %v4924_v0 = vld [vmem:[%s6485_s2 + $0x38] sm:$0xff]  ;;  %s5222_s14 = sshll.u32 %s5125_s27, 3  ;;  %p387_p5 = scmp.lt.s32.totalorder %s5129_s28, 1  ;;  %v4923_v1 = vld [vmem:[%s6485_s2 + $0x30] sm:$0xff]  ;;  %v4922_v2 = vld [vmem:[%s6485_s2 + $0x28] sm:$0xff]  ;;  %vm1203_vm6 = vcmask 1043456  }
   0xf   : > { %p389_p6 = scmp.lt.s32.totalorder %s5222_s14, 17  ;;  %841 = vmatpush.bf16.msra.mxu0 %v4924_v0  ;;  %v4921_v3 = vld [vmem:[%s6485_s2 + $0x20] sm:$0xff]  ;;  %v4920_v15 = vld [vmem:[%s6485_s2 + $0x18] sm:$0xff]  ;;  %vm490_vm0 = vsmask.f32 3328  ;;  %v4919_v19 = vld [vmem:[%s6485_s2 + $0x10] sm:$0xff] }
  0x10   : > { %s6547_s28 = smov (!%p387_p5, %s5129_s28), 1  ;;  %vm491_vm1 = vsmask.f32 7440  ;;  %v4918_v28 = vld [vmem:[%s6485_s2 + $0x8] sm:$0xff]  ;;  %v4917_v35 = vld [vmem:[%s6485_s2] sm:$0xff]  ;;  %vm1210_vm13 = vcmask 1040384  }
  0x11   : > { %s390_s17 = scalar_select %p389_p6, %s5222_s14, 17  ;;  %vm5255_vm2 = vmor %vm490_vm0, %vm491_vm1  ;;  %vm1204_vm7 = vsmask.f32 7938  ;;  %vm1000_vm9 = vsmask.f32 256  ;;  %vm1825_vm1 = vcmask 1042432  }
  0x12   : > { %s5056_s18 = smul.u32 54, %s6547_s28  ;;  %vm5468_vm8 = vmand %vm1203_vm6, %vm1204_vm7  ;;  %vm1001_vm10 = vsmask.f32 4368  ;;  %p420_p8 = scmp.lt.s32.totalorder %s5222_s14, 15 }
  0x13   : > { %s5055_s19 = smul.u32 3, %s390_s17  ;;  %842 = vmatpush.bf16.msra.mxu0 %v4923_v1  ;;  %vm5481_vm14 = vmor %vm1000_vm9, %vm1001_vm10  ;;  %s4284_s12 = sshll.u32 %s6547_s28, 5 }
  0x14   : > { %vm5491_vm0 = vmand %vm1210_vm13, %vm1000_vm9 }
  0x15   : > { %s393_s22 = sadd.s32 %s5056_s18, %s5055_s19 }
  0x16   : > { %s4278_s23 = sshll.u32 %s393_s22, 2 }
  0x17   : > { %s5240_s26 = scalar_lea.vmem %s6483_s0, %s4278_s23  ;;  %843 = vmatpush.bf16.msra.mxu0 %v4922_v2  ;;  %s5030_s23 = sadd.s32 8, %s5222_s14 }
  0x18   : > { %v460_v4 = vld [vmem:[%s5240_s26] sm:$0xf]  ;;  %v461_v5 = vld [vmem:[%s5240_s26 + $0x4] sm:$0xf]  ;;  %v462_v6 = vld [vmem:[%s5240_s26 + $0x8] sm:$0x1] }
  0x19   : > { %v494_v7 = vshrl.u32 %v460_v4, 16  ;;  %v497_v8 = vshll.u32 %v460_v4, 16  ;;  %v503_v9 = vshll.u32 %v461_v5, 16  ;;  %v507_v10 = vshrl.u32 %v461_v5, 16  ;;  %v463_v23 = vld [vmem:[%s5240_s26 + $0xc] sm:$0xf] }
  0x1a   : > { %v513_v16 = vshll.u32 %v462_v6, 16  ;;  %v464_v25 = vld [vmem:[%s5240_s26 + $0x10] sm:$0xf]  ;;  %v518_v26 = vshrl.u32 %v463_v23, 16  ;;  %v521_v27 = vshll.u32 %v463_v23, 16  ;;  %p407_p7 = scmp.lt.s32.totalorder %s5030_s23, 17 }
  0x1b   : > { %v496_v11 = vrot.slane %v494_v7, 4  ;;  %v499_v12 = vrot.slane %v497_v8, 5  ;;  %v505_v13 = vrot.slane %v503_v9, 5  ;;  %v509_v14 = vrot.slane %v507_v10, 4  ;;  %844 = vmatpush.bf16.msra.mxu0 %v4921_v3  ;;  %v465_v40 = vld [vmem:[%s5240_s26 + $0x14] sm:$0x1] }
  0x1c   : > { %v515_v22 = vrot.slane %v513_v16, 5  ;;  %v527_v31 = vshll.u32 %v464_v25, 16  ;;  %v531_v32 = vshrl.u32 %v464_v25, 16  ;;  %v520_v36 = vrot.slane %v518_v26, 4  ;;  %v466_v45 = vld [vmem:[%s5240_s26 + $0x18] sm:$0xf] }
  0x1d   : > { %v500_v17 = vor.u32 %v499_v12, %v496_v11  ;;  %v510_v18 = vor.u32 %v509_v14, %v505_v13  ;;  %v523_v37 = vrot.slane %v521_v27, 5  ;;  %v537_v44 = vshll.u32 %v465_v40, 16  ;;  %v467_v46 = vld [vmem:[%s5240_s26 + $0x1c] sm:$0xf]  ;;  %v468_v62 = vld [vmem:[%s5240_s26 + $0x20] sm:$0x1] }
  0x1e   : > { %v529_v38 = vrot.slane %v527_v31, 5  ;;  %v533_v39 = vrot.slane %v531_v32, 4  ;;  %v542_v50 = vshrl.u32 %v466_v45, 16  ;;  %v545_v51 = vshll.u32 %v466_v45, 16  ;;  %v469_v6 = vld [vmem:[%s5240_s26 + $0x24] sm:$0xf] }
  0x1f   : > { %845 = vmatpush.bf16.msra.mxu0 %v4920_v15  ;;  %v501_v20 = vrot.slane %v500_v17, 4  ;;  %v511_v21 = vrot.slane %v510_v18, 4  ;;  %v524_v42 = vor.u32 %v523_v37, %v520_v36  ;;  %v539_v49 = vrot.slane %v537_v44, 5  ;;  %v470_v7 = vld [vmem:[%s5240_s26 + $0x28] sm:$0xf]  ;;  %s6549_s23 = smov (!%p407_p7, %s5030_s23), 17 }
  0x20   : > { %v534_v43 = vor.u32 %v533_v39, %v529_v38  ;;  %v551_v52 = vshll.u32 %v467_v46, 16  ;;  %v555_v53 = vshrl.u32 %v467_v46, 16  ;;  %v544_v56 = vrot.slane %v542_v50, 4  ;;  %s5057_s24 = smul.u32 3, %s6549_s23 }
  0x21   : > { %v506_v29 = vsel %vm5255_vm2, %v501_v20, %v505_v13  ;;  %v516_v30 = vsel %vm5255_vm2, %v511_v21, %v515_v22  ;;  %v525_v47 = vrot.slane %v524_v42, 4  ;;  %v547_v57 = vrot.slane %v545_v51, 5  ;;  %v471_v20 = vld [vmem:[%s5240_s26 + $0x2c] sm:$0x1] }
  0x22   : > { %v753_v33 = vunpack.c.l.b16 %v506_v29  ;;  %v754_v34 = vunpack.c.l.b16 %v516_v30  ;;  %v535_v48 = vrot.slane %v534_v43, 4  ;;  %v553_v58 = vrot.slane %v551_v52, 5  ;;  %v472_v29 = vld [vmem:[%s5240_s26 + $0x30] sm:$0xf]  ;;  %v473_v30 = vld [vmem:[%s5240_s26 + $0x34] sm:$0xf]  ;;  %s411_s25 = sadd.s32 %s5057_s24, %s5056_s18 }
  0x23   : > { %846 = vmatpush.bf16.msra.mxu0 %v4919_v19  ;;  %v530_v54 = vsel %vm5255_vm2, %v525_v47, %v529_v38  ;;  %v557_v59 = vrot.slane %v555_v53, 4  ;;  %v548_v63 = vor.u32 %v547_v57, %v544_v56  ;;  %v561_v1 = vshll.u32 %v468_v62, 16  ;;  %v474_v43 = vld [vmem:[%s5240_s26 + $0x38] sm:$0x1]  ;;  %s4281_s27 = sshll.u32 %s411_s25, 2 }
  0x24   : > { %v773_v41 = vpack.c.b16 %v754_v34, %v753_v33  ;;  %v540_v55 = vsel %vm5255_vm2, %v535_v48, %v539_v49  ;;  %v755_v60 = vunpack.c.l.b16 %v530_v54  ;;  %v566_v10 = vshrl.u32 %v469_v6, 16  ;;  %v475_v48 = vld [vmem:[%s5240_s26 + $0x3c] sm:$0xf]  ;;  %v476_v49 = vld [vmem:[%s5240_s26 + $0x40] sm:$0xf]  ;;  %s5336_s16 = scalar_lea.vmem %s6484_s1, %s4281_s27 }
  0x25   : > { %v756_v61 = vunpack.c.l.b16 %v540_v55  ;;  %v558_v0 = vor.u32 %v557_v59, %v553_v58  ;;  %v549_v3 = vrot.slane %v548_v63, 4  ;;  %v563_v5 = vrot.slane %v561_v1, 5  ;;  %v477_v1 = vld [vmem:[%s5240_s26 + $0x44] sm:$0x1] }
  0x26   : > { %v569_v11 = vshll.u32 %v469_v6, 16  ;;  %v575_v12 = vshll.u32 %v470_v7, 16  ;;  %v579_v13 = vshrl.u32 %v470_v7, 16  ;;  %v568_v16 = vrot.slane %v566_v10, 4  ;;  %v479_v10 = vld [vmem:[%s5240_s26 + $0x4c] sm:$0xf] }
  0x27   : > { %847 = vmatpush.bf16.msra.mxu0 %v4918_v28  ;;  %v774_v2 = vpack.c.b16 %v756_v61, %v755_v60  ;;  %v559_v4 = vrot.slane %v558_v0, 4  ;;  %v554_v8 = vsel %vm5255_vm2, %v549_v3, %v553_v58  ;;  %v585_v25 = vshll.u32 %v471_v20, 16 }
  0x28   : > { %v757_v14 = vunpack.c.l.b16 %v554_v8  ;;  %v571_v17 = vrot.slane %v569_v11, 5  ;;  %v577_v18 = vrot.slane %v575_v12, 5  ;;  %v581_v19 = vrot.slane %v579_v13, 4 }
  0x29   : > { %v564_v9 = vsel %vm5255_vm2, %v559_v4, %v563_v5  ;;  %v587_v28 = vrot.slane %v585_v25, 5  ;;  %v590_v33 = vshrl.u32 %v472_v29, 16  ;;  %v593_v34 = vshll.u32 %v472_v29, 16 }
  0x2a   : > { %v758_v15 = vunpack.c.l.b16 %v564_v9  ;;  %v572_v22 = vor.u32 %v571_v17, %v568_v16  ;;  %v582_v23 = vor.u32 %v581_v19, %v577_v18  ;;  %v603_v36 = vshrl.u32 %v473_v30, 16  ;;  %v478_v9 = vld [vmem:[%s5240_s26 + $0x48] sm:$0xf] }
  0x2b   : > { %848 = vmatpush.bf16.msra.mxu0 %v4917_v35  ;;  %v599_v35 = vshll.u32 %v473_v30, 16  ;;  %v592_v39 = vrot.slane %v590_v33, 4  ;;  %v595_v40 = vrot.slane %v593_v34, 5  ;;  %v609_v47 = vshll.u32 %v474_v43, 16  ;;  %v481_v33 = vld [vmem:[%s5240_s26 + $0x54] sm:$0xf] }
  0x2c   : > { %v775_v21 = vpack.c.b16 %v758_v15, %v757_v14  ;;  %v573_v26 = vrot.slane %v572_v22, 4  ;;  %v583_v27 = vrot.slane %v582_v23, 4  ;;  %v605_v42 = vrot.slane %v603_v36, 4  ;;  %v480_v23 = vld [vmem:[%s5240_s26 + $0x50] sm:$0x1] }
  0x2d   : > { %v596_v45 = vor.u32 %v595_v40, %v592_v39  ;;  %v611_v52 = vrot.slane %v609_v47, 5  ;;  %v614_v53 = vshrl.u32 %v475_v48, 16  ;;  %v617_v54 = vshll.u32 %v475_v48, 16  ;;  %v482_v34 = vld [vmem:[%s5240_s26 + $0x58] sm:$0xf] }
  0x2e   : > { %849 = vmatmul.bf16.vlgmr.msra.gmra.mxu0 %v773_v41  ;;  %v578_v31 = vsel %vm5255_vm2, %v573_v26, %v577_v18  ;;  %v588_v32 = vsel %vm5255_vm2, %v583_v27, %v587_v28  ;;  %v601_v41 = vrot.slane %v599_v35, 5  ;;  %v623_v55 = vshll.u32 %v476_v49, 16  ;;  %v483_v43 = vld [vmem:[%s5240_s26 + $0x5c] sm:$0x1] }
  0x2f   : > { %v759_v37 = vunpack.c.l.b16 %v578_v31  ;;  %v760_v38 = vunpack.c.l.b16 %v588_v32  ;;  %v597_v50 = vrot.slane %v596_v45, 4  ;;  %v627_v56 = vshrl.u32 %v476_v49, 16 }
  0x30   : > { %v606_v46 = vor.u32 %v605_v42, %v601_v41  ;;  %v616_v59 = vrot.slane %v614_v53, 4  ;;  %v619_v60 = vrot.slane %v617_v54, 5  ;;  %v625_v61 = vrot.slane %v623_v55, 5  ;;  %v4939_v54 = vld [vmem:[%s6486_s3 + $0x30] sm:$0xff] }
  0x31   : > { %v776_v44 = vpack.c.b16 %v760_v38, %v759_v37  ;;  %v602_v57 = vsel %vm5255_vm2, %v597_v50, %v601_v41  ;;  %v629_v62 = vrot.slane %v627_v56, 4  ;;  %v633_v4 = vshll.u32 %v477_v1, 16  ;;  %v4940_v50 = vld [vmem:[%s6486_s3 + $0x38] sm:$0xff] }
  0x32   : > { %v607_v51 = vrot.slane %v606_v46, 4  ;;  %v761_v63 = vunpack.c.l.b16 %v602_v57  ;;  %v638_v13 = vshrl.u32 %v478_v9, 16  ;;  %v641_v14 = vshll.u32 %v478_v9, 16  ;;  %1752 = vmatpush.bf16.msra.mxu2 %v4940_v50  ;;  %v484_v57 = vld [vmem:[%s5336_s16] sm:$0xf]  ;;  %v4956_v1 = vld [vmem:[%s6486_s3 + $0xb8] sm:$0xff] }
  0x33   : > { %v630_v3 = vor.u32 %v629_v62, %v625_v61  ;;  %v635_v8 = vrot.slane %v633_v4, 5  ;;  %v647_v15 = vshll.u32 %v479_v10, 16  ;;  %v651_v16 = vshrl.u32 %v479_v10, 16  ;;  %1981 = vmatpush.bf16.msra.mxu3 %v4956_v1  ;;  %v4948_v9 = vld [vmem:[%s6486_s3 + $0x78] sm:$0xff]  ;;  %v486_v10 = vld [vmem:[%s5336_s16 + $0x8] sm:$0x1] }
  0x34   : > { %v612_v58 = vsel %vm5255_vm2, %v607_v51, %v611_v52  ;;  %v640_v19 = vrot.slane %v638_v13, 4  ;;  %v643_v20 = vrot.slane %v641_v14, 5  ;;  %v657_v28 = vshll.u32 %v480_v23, 16  ;;  %1607 = vmatpush.bf16.msra.mxu1 %v4948_v9  ;;  %v4949_v1 = vld [vmem:[%s6486_s3 + $0x80] sm:$0xff] }
  0x35   : > { %v762_v0 = vunpack.c.l.b16 %v612_v58  ;;  %v631_v7 = vrot.slane %v630_v3, 4  ;;  %v653_v22 = vrot.slane %v651_v16, 4  ;;  %v5143_v32 = vmov 0   ;;  %v485_v58 = vld [vmem:[%s5336_s16 + $0x4] sm:$0xf] }
  0x36   : > { %v644_v26 = vor.u32 %v643_v20, %v640_v19  ;;  %v659_v31 = vrot.slane %v657_v28, 5  ;;  %430 = vst [vmem:[#allocation2] sm:$0xf] %v5143_v32  ;;  %v662_v37 = vshrl.u32 %v481_v33, 16  ;;  %v665_v38 = vshll.u32 %v481_v33, 16  ;;  %1753 = vmatpush.bf16.msra.mxu2 %v4939_v54  ;;  %v4936_v19 = vld [vmem:[%s6486_s3 + $0x18] sm:$0xff] }
  0x37   : > { %v777_v5 = vpack.c.b16 %v762_v0, %v761_v63  ;;  %v636_v12 = vsel %vm5255_vm2, %v631_v7, %v635_v8  ;;  %431 = vst [vmem:[#allocation2 + $0x4] sm:$0xf] %v5143_v32  ;;  %v671_v39 = vshll.u32 %v482_v34, 16  ;;  %v675_v40 = vshrl.u32 %v482_v34, 16  ;;  %v488_v28 = vld [vmem:[%s5336_s16 + $0x10] sm:$0xf] }
  0x38   : > { %v764_v18 = vunpack.c.l.b16 %v636_v12  ;;  %v645_v29 = vrot.slane %v644_v26, 4  ;;  %432 = vst [vmem:[#allocation2 + $0x8] sm:$0x1] %v5143_v32  ;;  %v667_v45 = vrot.slane %v665_v38, 5  ;;  %v681_v49 = vshll.u32 %v483_v43, 16  ;;  %v4937_v12 = vld [vmem:[%s6486_s3 + $0x20] sm:$0xff] }
  0x39   : > { %433 = vst [vmem:[#allocation2 + $0xc] sm:$0xf] %v5143_v32  ;;  %v673_v46 = vrot.slane %v671_v39, 5  ;;  %v677_v47 = vrot.slane %v675_v40, 4  ;;  %v695_v63 = vshll.u32 %v485_v58, 16  ;;  %v699_v0 = vshrl.u32 %v485_v58, 16 }
  0x3a   : > { %434 = vst [vmem:[#allocation2 + $0x10] sm:$0xf] %v5143_v32  ;;  %v683_v53 = vrot.slane %v681_v49, 5  ;;  %v705_v16 = vshll.u32 %v486_v10, 16  ;;  %v4953_v26 = vld [vmem:[%s6486_s3 + $0xa0] sm:$0xff]  ;;  %v719_v33 = vshll.u32 %v488_v28, 16  ;;  %v5413_v38 = vstv %s5222_s14 }
  0x3b   : > { %435 = vst [vmem:[#allocation2 + $0x14] sm:$0x1] %v5143_v32  ;;  %v678_v52 = vor.u32 %v677_v47, %v673_v46  ;;  %v697_v7 = vrot.slane %v695_v63, 5  ;;  %v701_v8 = vrot.slane %v699_v0, 4  ;;  %v723_v34 = vshrl.u32 %v488_v28, 16  ;;  %v4933_v49 = vld [vmem:[%s6486_s3] sm:$0xff] }
  0x3c   : > { %436 = vst [vmem:[#allocation2 + $0x18] sm:$0xf] %v5143_v32  ;;  %v707_v23 = vrot.slane %v705_v16, 5  ;;  %v721_v43 = vrot.slane %v719_v33, 5  ;;  %v5424_v47 = vld [vmem:[%s6488_s5] ss:$0 sm:$0xff] }
  0x3d   : > { %437 = vst [vmem:[#allocation2 + $0x1c] sm:$0xf] %v5143_v32  ;;  %v679_v56 = vrot.slane %v678_v52, 4  ;;  %vm930_vm3 = vcmp.ge.s32.totalorder %v5413_v38, 1  ;;  %vm940_vm4 = vcmp.le.s32.totalorder %v5413_v38, 16  ;;  %v4942_v0 = vld [vmem:[%s6486_s3 + $0x48] sm:$0xff] }
  0x3e   : > { %854 = vmatmul.bf16.gmra.mxu0 %v774_v2  ;;  %v620_v2 = vor.u32 %v619_v60, %v616_v59  ;;  %438 = vst [vmem:[#allocation2 + $0x20] sm:$0x1] %v5143_v32  ;;  %v686_v59 = vshrl.u32 %v484_v57, 16  ;;  %v689_v60 = vshll.u32 %v484_v57, 16  ;;  %v5004_v57 = vld [vmem:[%s6486_s3 + $0x1b8] sm:$0xff]  ;;  %vm5442_vm5 = vmand %vm930_vm3, %vm940_vm4  ;;  %v4941_v9 = vld [vmem:[%s6486_s3 + $0x40] sm:$0xff] }
  0x3f   : > { %439 = vst [vmem:[#allocation2 + $0x24] sm:$0xf] %v5143_v32  ;;  %v684_v62 = vsel %vm5255_vm2, %v679_v56, %v683_v53  ;;  %v4950_v56 = vld [vmem:[%s6486_s3 + $0x88] sm:$0xff]  ;;  %2999 = vmatpush.bf16.msrb.mxu0 %v5004_v57  ;;  %vm1826_vm3 = vcmask 1046532   ;;  %s6551_s14 = smov (!%p420_p8, %s5222_s14), 15 }
  0x40   : > { %v621_v6 = vrot.slane %v620_v2, 4  ;;  %440 = vst [vmem:[#allocation2 + $0x28] sm:$0xf] %v5143_v32  ;;  %v4938_v2 = vld [vmem:[%s6486_s3 + $0x28] sm:$0xff]  ;;  %v768_v4 = vunpack.c.l.b16 %v684_v62  ;;  %vm5522_vm6 = vmor %vm1825_vm1, %vm1826_vm3  ;;  %s4283_s27 = sshll.u32 %s6551_s14, 1 }
  0x41   : > { %441 = vst [vmem:[#allocation2 + $0x2c] sm:$0x1] %v5143_v32  ;;  %1754 = vmatpush.bf16.msra.mxu2 %v4938_v2  ;;  %v5003_v2 = vld [vmem:[%s6486_s3 + $0x1b0] sm:$0xff]  ;;  %v5002_v10 = vld [vmem:[%s6486_s3 + $0x1a8] sm:$0xff]  ;;  %s424_s15 = sadd.s32 %s4284_s12, %s4283_s27 }
  0x42   : > { %v626_v11 = vsel %vm5255_vm2, %v621_v6, %v625_v61  ;;  %442 = vst [vmem:[#allocation2 + $0x30] sm:$0xf] %v5143_v32  ;;  %v691_v6 = vrot.slane %v689_v60, 5  ;;  %s4285_s28 = sshll.u32 %s424_s15, 3 }
  0x43   : > { %v763_v17 = vunpack.c.l.b16 %v626_v11  ;;  %443 = vst [vmem:[#allocation2 + $0x34] sm:$0xf] %v5143_v32  ;;  %v4955_v11 = vld [vmem:[%s6486_s3 + $0xb0] sm:$0xff]  ;;  %3000 = vmatpush.bf16.msrb.mxu0 %v5003_v2  ;;  %s6363_s19 = scalar_lea.vmem %s6491_s8, %s4285_s28 }
  0x44   : > { %444 = vst [vmem:[#allocation2 + $0x38] sm:$0x1] %v5143_v32  ;;  %1982 = vmatpush.bf16.msra.mxu3 %v4955_v11 }
  0x45   : > { %v778_v25 = vpack.c.b16 %v764_v18, %v763_v17  ;;  %445 = vst [vmem:[#allocation2 + $0x3c] sm:$0xf] %v5143_v32  ;;  %1755 = vmatpush.bf16.msra.mxu2 %v4937_v12  ;;  %v4947_v17 = vld [vmem:[%s6486_s3 + $0x70] sm:$0xff]  ;;  %v4954_v18 = vld [vmem:[%s6486_s3 + $0xa8] sm:$0xff] }
  0x46   : > { %446 = vst [vmem:[#allocation2 + $0x40] sm:$0xf] %v5143_v32  ;;  %1608 = vmatpush.bf16.msra.mxu1 %v4947_v17  ;;  %v921_v17 = vadd.s32 1, %v5413_v38 }
  0x47   : > { %447 = vst [vmem:[#allocation2 + $0x44] sm:$0x1] %v5143_v32  ;;  %3001 = vmatpush.bf16.msrb.mxu0 %v5002_v10 }
  0x48   : > { %448 = vst [vmem:[#allocation2 + $0x48] sm:$0xf] %v5143_v32  ;;  %1983 = vmatpush.bf16.msra.mxu3 %v4954_v18  ;;  %vm931_vm11 = vcmp.ge.s32.totalorder %v921_v17, 1  ;;  %vm941_vm12 = vcmp.le.s32.totalorder %v921_v17, 16 }
  0x49   : > { %449 = vst [vmem:[#allocation2 + $0x4c] sm:$0xf] %v5143_v32  ;;  %1756 = vmatpush.bf16.msra.mxu2 %v4936_v19  ;;  %vm5486_vm15 = vmand %vm931_vm11, %vm941_vm12 }
  0x4a   : > { %450 = vst [vmem:[#allocation2 + $0x50] sm:$0x1] %v5143_v32 }
  0x4b   : > { %451 = vst [vmem:[#allocation2 + $0x54] sm:$0xf] %v5143_v32 }
  0x4c   : > { %452 = vst [vmem:[#allocation2 + $0x58] sm:$0xf] %v5143_v32  ;;  %1984 = vmatpush.bf16.msra.mxu3 %v4953_v26  ;;  %v5001_v26 = vld [vmem:[%s6486_s3 + $0x1a0] sm:$0xff] }
  0x4d   : > { %453 = vst [vmem:[#allocation2 + $0x5c] sm:$0x1] %v5143_v32  ;;  %3002 = vmatpush.bf16.msrb.mxu0 %v5001_v26 }
  0x4e   : > { %859 = vmatmul.bf16.gmra.mxu0 %v775_v21  ;;  %v649_v21 = vrot.slane %v647_v15, 5  ;;  %454 = vst [vmem:[#allocation2 + $0x60] sm:$0xf] %v5143_v32  ;;  %v702_v15 = vor.u32 %v701_v8, %v697_v7 }
  0x4f   : > { %455 = vst [vmem:[#allocation2 + $0x64] sm:$0xf] %v5143_v32 }
  0x50   : > { %v654_v27 = vor.u32 %v653_v22, %v649_v21  ;;  %v650_v35 = vsel %vm5255_vm2, %v645_v29, %v649_v21  ;;  %456 = vst [vmem:[#allocation2 + $0x68] sm:$0x1] %v5143_v32  ;;  %v487_v21 = vld [vmem:[%s5336_s16 + $0xc] sm:$0xf]  ;;  %v703_v22 = vrot.slane %v702_v15, 4 }
  0x51   : > { %v765_v41 = vunpack.c.l.b16 %v650_v35  ;;  %457 = vst [vmem:[#allocation2 + $0x6c] sm:$0xf] %v5143_v32  ;;  %v4945_v35 = vld [vmem:[%s6486_s3 + $0x60] sm:$0xff] }
  0x52   : > { %v655_v30 = vrot.slane %v654_v27, 4  ;;  %458 = vst [vmem:[#allocation2 + $0x70] sm:$0xf] %v5143_v32  ;;  %v4935_v27 = vld [vmem:[%s6486_s3 + $0x10] sm:$0xff]  ;;  %v1206_v15 = vld [vmem:[#allocation2] sm:$0xf] }
  0x53   : > { %459 = vst [vmem:[#allocation2 + $0x74] sm:$0x1] %v5143_v32  ;;  %v713_v32 = vshll.u32 %v487_v21, 16  ;;  %1757 = vmatpush.bf16.msra.mxu2 %v4935_v27 }
  0x54   : > { %v660_v36 = vsel %vm5255_vm2, %v655_v30, %v659_v31  ;;  %v710_v30 = vshrl.u32 %v487_v21, 16  ;;  %v708_v31 = vsel %vm5255_vm2, %v703_v22, %v707_v23 }
  0x55   : > { %v766_v42 = vunpack.c.l.b16 %v660_v36  ;;  %v4952_v36 = vld [vmem:[%s6486_s3 + $0x98] sm:$0xff]  ;;  %v770_v40 = vunpack.c.l.b16 %v708_v31 }
  0x56   : > { %1985 = vmatpush.bf16.msra.mxu3 %v4952_v36 }
  0x57   : > { %v779_v48 = vpack.c.b16 %v766_v42, %v765_v41  ;;  %v712_v41 = vrot.slane %v710_v30, 4  ;;  %v715_v42 = vrot.slane %v713_v32, 5 }
  0x59   : > { %v716_v52 = vor.u32 %v715_v42, %v712_v41 }
  0x5e   : > { %864 = vmatmul.bf16.gmra.mxu0 %v776_v44  ;;  %v664_v44 = vrot.slane %v662_v37, 4  ;;  %v4934_v37 = vld [vmem:[%s6486_s3 + $0x8] sm:$0xff] }
  0x5f   : > { %1758 = vmatpush.bf16.msra.mxu2 %v4934_v37  ;;  %v5000_v37 = vld [vmem:[%s6486_s3 + $0x198] sm:$0xff] }
  0x60   : > { %v668_v51 = vor.u32 %v667_v45, %v664_v44  ;;  %v725_v44 = vrot.slane %v723_v34, 4  ;;  %v4944_v45 = vld [vmem:[%s6486_s3 + $0x58] sm:$0xff]  ;;  %3003 = vmatpush.bf16.msrb.mxu0 %v5000_v37  ;;  %v5015_v34 = vld [vmem:[%s6486_s3 + $0x210] sm:$0xff] }
  0x62   : > { %v669_v55 = vrot.slane %v668_v51, 4  ;;  %v726_v53 = vor.u32 %v725_v44, %v721_v43 }
  0x63   : > { %1759 = vmatpush.bf16.msra.mxu2 %v4933_v49 }
  0x64   : > { %v674_v61 = vsel %vm5255_vm2, %v669_v55, %v673_v46  ;;  %v4951_v46 = vld [vmem:[%s6486_s3 + $0x90] sm:$0xff]  ;;  %v727_v62 = vrot.slane %v726_v53, 4  ;;  %v4972_v53 = vld [vmem:[%s6486_s3 + $0xf8] sm:$0xff] }
  0x65   : > { %v767_v3 = vunpack.c.l.b16 %v674_v61  ;;  %1986 = vmatpush.bf16.msra.mxu3 %v4951_v46  ;;  %v4943_v55 = vld [vmem:[%s6486_s3 + $0x50] sm:$0xff]  ;;  %v717_v61 = vrot.slane %v716_v52, 4 }
  0x67   : > { %v780_v13 = vpack.c.b16 %v768_v4, %v767_v3 }
  0x69   : > { %1987 = vmatpush.bf16.msra.mxu3 %v4950_v56  ;;  %v4999_v56 = vld [vmem:[%s6486_s3 + $0x190] sm:$0xff] }
  0x6a   : > { %3004 = vmatpush.bf16.msrb.mxu0 %v4999_v56 }
  0x6d   : > { %1988 = vmatpush.bf16.msra.mxu3 %v4949_v1 }
  0x6e   : > { %869 = vmatmul.bf16.gmra.mxu0 %v777_v5  ;;  %v688_v5 = vrot.slane %v686_v59, 4  ;;  %v1215_v59 = vld [vmem:[#allocation2 + $0xc] sm:$0xf] }
  0x70   : > { %v692_v14 = vor.u32 %v691_v6, %v688_v5 }
  0x72   : > { %v693_v20 = vrot.slane %v692_v14, 4 }
  0x74   : > { %v698_v29 = vsel %vm5255_vm2, %v693_v20, %v697_v7  ;;  %v722_v7 = vsel %vm5255_vm2, %v717_v61, %v721_v43 }
  0x75   : > { %v769_v39 = vunpack.c.l.b16 %v698_v29  ;;  %v771_v18 = vunpack.c.l.b16 %v722_v7 }
  0x77   : > { %v781_v50 = vpack.c.b16 %v770_v40, %v769_v39 }
  0x7e   : > { %874 = vmatmul.bf16.gmra.mxu0 %v778_v25  ;;  %v4946_v25 = vld [vmem:[%s6486_s3 + $0x68] sm:$0xff] }
  0x7f   : > { %1609 = vmatpush.bf16.msra.mxu1 %v4946_v25 }
  0x83   : > { %1610 = vmatpush.bf16.msra.mxu1 %v4945_v35  ;;  %v1212_v35 = vld [vmem:[#allocation2 + $0x8] sm:$0x1] }
  0x87   : > { %1611 = vmatpush.bf16.msra.mxu1 %v4944_v45 }
  0x8b   : > { %1612 = vmatpush.bf16.msra.mxu1 %v4943_v55  ;;  %v922_v55 = vadd.s32 2, %v5413_v38 }
  0x8d   : > { %vm932_vm4 = vcmp.ge.s32.totalorder %v922_v55, 1 }
  0x8e   : > { %879 = vmatmul.bf16.gmra.mxu0 %v779_v48  ;;  %v489_v48 = vld [vmem:[%s5336_s16 + $0x14] sm:$0x1] }
  0x8f   : > { %v729_v54 = vshll.u32 %v489_v48, 16  ;;  %1613 = vmatpush.bf16.msra.mxu1 %v4942_v0 }
  0x91   : > { %v731_v63 = vrot.slane %v729_v54, 5 }
  0x93   : > { %v732_v8 = vsel %vm5255_vm2, %v727_v62, %v731_v63  ;;  %1614 = vmatpush.bf16.msra.mxu1 %v4941_v9  ;;  %v4998_v62 = vld [vmem:[%s6486_s3 + $0x188] sm:$0xff] }
  0x94   : > { %v772_v19 = vunpack.c.l.b16 %v732_v8  ;;  %3005 = vmatpush.bf16.msrb.mxu0 %v4998_v62 }
  0x96   : > { %v782_v25 = vpack.c.b16 %v772_v19, %v771_v18  ;;  %v4997_v18 = vld [vmem:[%s6486_s3 + $0x180] sm:$0xff] }
  0x97   : > { %2176 = vmatpush.bf16.msrb.mxu1 %v4972_v53 }
  0x98   : > { %3006 = vmatpush.bf16.msrb.mxu0 %v4997_v18 }
  0x9e   : > { %884 = vmatmul.bf16.gmra.mxu0 %v780_v13 }
  0xab   : > { %v850_v51 = vpop.f32.mrf.mxu0 }
  0xac   : > { %v851_v58 = vadd.f32 %v5424_v47, %v850_v51  ;;  %v4980_v51 = vld [vmem:[%s6486_s3 + $0x138] sm:$0xff] }
  0xad   : > { %2554 = vmatpush.bf16.msrb.mxu2 %v4980_v51 }
  0xae   : > { %v900_v60 = vmax.f32 %v851_v58, 0.0  ;;  %889 = vmatmul.bf16.gmra.mxu0 %v781_v50 }
  0xb0   : > { %v960_v3 = vsel %vm5442_vm5, %v900_v60, 0.0 }
  0xb1   : > { %v980_v4 = vpack.c.bf16 %v960_v3, %v960_v3 }
  0xb3   : > { %v1004_v5 = vshrl.u32 %v980_v4, 16  ;;  %v852_v6 = vpop.f32.mrf.mxu0  ;;  %v1007_v13 = vshll.u32 %v980_v4, 16 }
  0xb4   : > { %v853_v11 = vadd.f32 %v5424_v47, %v852_v6 }
  0xb5   : > { %v1006_v12 = vrot.slane %v1004_v5, 7 }
  0xb6   : > { %v901_v16 = vmax.f32 %v853_v11, 0.0 }
  0xb7   : > { %v1009_v20 = vor.u32 %v1007_v13, %v1006_v12  ;;  %v1010_v39 = vrot.slane %v1006_v12, 4 }
  0xb8   : > { %v961_v21 = vsel %vm5442_vm5, %v901_v16, 0.0  ;;  %vm942_vm5 = vcmp.le.s32.totalorder %v922_v55, 16 }
  0xb9   : > { %v1207_v22 = vsel %vm5468_vm8, %v1009_v20, %v1206_v15  ;;  %v981_v23 = vpack.c.bf16 %v961_v21, %v961_v21  ;;  %vm5534_vm7 = vmand %vm932_vm4, %vm942_vm5 }
  0xba   : > { %1208 = vst [vmem:[#allocation2] sm:$0xf] %v1207_v22 }
  0xbb   : > { %v1012_v27 = vshrl.u32 %v981_v23, 16  ;;  %v855_v28 = vpop.f32.mrf.mxu0  ;;  %v1015_v32 = vshll.u32 %v981_v23, 16 }
  0xbc   : > { %v856_v30 = vadd.f32 %v5424_v47, %v855_v28 }
  0xbd   : > { %v1014_v31 = vrot.slane %v1012_v27, 7 }
  0xbe   : > { %v902_v36 = vmax.f32 %v856_v30, 0.0  ;;  %894 = vmatmul.bf16.gmra.mxu0 %v782_v25  ;;  %v1219_v30 = vld [vmem:[#allocation2 + $0x14] sm:$0x1] }
  0xbf   : > { %v1017_v40 = vor.u32 %v1015_v32, %v1014_v31  ;;  %v1019_v41 = vrot.slane %v1014_v31, 4 }
  0xc0   : > { %v962_v42 = vsel %vm5486_vm15, %v902_v36, 0.0 }
  0xc1   : > { %v1018_v43 = vsel %vm5481_vm14, %v1010_v39, %v1017_v40  ;;  %v1213_v44 = vsel %vm5491_vm0, %v1019_v41, %v1212_v35  ;;  %v982_v45 = vpack.c.bf16 %v962_v42, %v962_v42  ;;  %v1278_v46 = vld [vmem:[#allocation2] sm:$0xf] }
  0xc2   : > { %1209 = vst [vmem:[#allocation2 + $0x4] sm:$0xf] %v1018_v43  ;;  %v1319_v48 = vshrl.u32 %v1278_v46, 16  ;;  %v1322_v52 = vshll.u32 %v1278_v46, 16  ;;  %v1801_v61 = vld [vmem:[#allocation2] sm:$0xe] }
  0xc3   : > { %1214 = vst [vmem:[#allocation2 + $0x8] sm:$0x1] %v1213_v44  ;;  %v1021_v49 = vshrl.u32 %v982_v45, 16  ;;  %v857_v50 = vpop.f32.mrf.mxu0  ;;  %v1024_v58 = vshll.u32 %v982_v45, 16  ;;  %v4431_v8 = vrot.slane %v1801_v61, 9 }
  0xc4   : > { %v858_v54 = vadd.f32 %v5424_v47, %v857_v50  ;;  %v1321_v0 = vrot.slane %v1319_v48, 4  ;;  %v1324_v1 = vrot.slane %v1322_v52, 5 }
  0xc5   : > { %v1023_v57 = vrot.slane %v1021_v49, 7 }
  0xc6   : > { %v903_v60 = vmax.f32 %v858_v54, 0.0  ;;  %v1325_v16 = vor.u32 %v1324_v1, %v1321_v0  ;;  %v4979_v54 = vld [vmem:[%s6486_s3 + $0x130] sm:$0xff]  ;;  %v1222_v1 = vld [vmem:[#allocation2 + $0x18] sm:$0xf] }
  0xc7   : > { %v1026_v63 = vor.u32 %v1024_v58, %v1023_v57  ;;  %v1027_v23 = vrot.slane %v1023_v57, 4  ;;  %v923_v58 = vadd.s32 3, %v5413_v38  ;;  %2555 = vmatpush.bf16.msrb.mxu2 %v4979_v54 }
  0xc8   : > { %v963_v2 = vsel %vm5486_vm15, %v903_v60, 0.0  ;;  %v1326_v42 = vrot.slane %v1325_v16, 4  ;;  %v4971_v60 = vld [vmem:[%s6486_s3 + $0xf0] sm:$0xff] }
  0xc9   : > { %v1216_v3 = vsel %vm5468_vm8, %v1026_v63, %v1215_v59  ;;  %v983_v4 = vpack.c.bf16 %v963_v2, %v963_v2  ;;  %v4925_v5 = vld [vmem:[#allocation2] sm:$0xff]  ;;  %2177 = vmatpush.bf16.msrb.mxu1 %v4971_v60  ;;  %vm933_vm9 = vcmp.ge.s32.totalorder %v923_v58, 1  ;;  %vm943_vm10 = vcmp.le.s32.totalorder %v923_v58, 16 }
  0xca   : > { %v1279_v6 = vld [vmem:[#allocation2 + $0x4] sm:$0xf]  ;;  %1217 = vst [vmem:[#allocation2 + $0xc] sm:$0xf] %v1216_v3  ;;  %v1310_v9 = vld [vmem:[#allocation2 + $0x8] sm:$0x1]  ;;  %1760 = vmatmul.bf16.vlgmr.msra.gmra.mxu2 %v4925_v5  ;;  %vm5567_vm11 = vmand %vm933_vm9, %vm943_vm10 }
  0xcb   : > { %v1830_v10 = vrot.slane %v1279_v6, 5  ;;  %v1328_v11 = vshll.u32 %v1279_v6, 16  ;;  %v1029_v12 = vshrl.u32 %v983_v4, 16  ;;  %v860_v13 = vpop.f32.mrf.mxu0  ;;  %v1833_v15 = vrot.slane %v1310_v9, 5 }
  0xcc   : > { %v1332_v17 = vshrl.u32 %v1279_v6, 16  ;;  %v861_v19 = vadd.f32 %v5424_v47, %v860_v13  ;;  %v1032_v26 = vshll.u32 %v983_v4, 16  ;;  %v1338_v35 = vshll.u32 %v1310_v9, 16 }
  0xcd   : > { %v1831_v20 = vsel %vm5522_vm6, %v4431_v8, %v1830_v10  ;;  %v1832_v21 = vrot.slane %v1830_v10, 4  ;;  %v1330_v22 = vrot.slane %v1328_v11, 5  ;;  %v1031_v25 = vrot.slane %v1029_v12, 7 }
  0xce   : > { %v1334_v28 = vrot.slane %v1332_v17, 4  ;;  %v904_v31 = vmax.f32 %v861_v19, 0.0  ;;  %v1901_v33 = vunpack.c.l.b16 %v1831_v20  ;;  %v1340_v51 = vrot.slane %v1338_v35, 5  ;;  %v1226_v35 = vld [vmem:[#allocation2 + $0x20] sm:$0x1] }
  0xcf   : > { %v1834_v32 = vsel %vm5522_vm6, %v1832_v21, %v1833_v15  ;;  %v1034_v36 = vor.u32 %v1032_v26, %v1031_v25  ;;  %v1036_v37 = vrot.slane %v1031_v25, 4  ;;  %v1331_v49 = vsel %vm5255_vm2, %v1326_v42, %v1330_v22 }
  0xd0   : > { %v1902_v39 = vunpack.c.l.b16 %v1834_v32  ;;  %v1335_v40 = vor.u32 %v1334_v28, %v1330_v22  ;;  %v964_v41 = vsel %vm5534_vm7, %v904_v31, 0.0  ;;  %v1527_v63 = vunpack.c.l.b16 %v1331_v49 }
  0xd1   : > { %v1035_v43 = vsel %vm5481_vm14, %v1027_v23, %v1034_v36  ;;  %v1220_v44 = vsel %vm5491_vm0, %v1036_v37, %v1219_v30  ;;  %v984_v45 = vpack.c.bf16 %v964_v41, %v964_v41  ;;  %v1280_v48 = vld [vmem:[#allocation2 + $0xc] sm:$0xf] }
  0xd2   : > { %v1917_v46 = vpack.c.b16 %v1902_v39, %v1901_v33  ;;  %1218 = vst [vmem:[#allocation2 + $0x10] sm:$0xf] %v1035_v43  ;;  %v1336_v50 = vrot.slane %v1335_v40, 4  ;;  %v1343_v55 = vshrl.u32 %v1280_v48, 16  ;;  %v1346_v59 = vshll.u32 %v1280_v48, 16 }
  0xd3   : > { %1221 = vst [vmem:[#allocation2 + $0x14] sm:$0x1] %v1220_v44  ;;  %v1038_v52 = vshrl.u32 %v984_v45, 16  ;;  %v862_v53 = vpop.f32.mrf.mxu0  ;;  %v1041_v62 = vshll.u32 %v984_v45, 16  ;;  %v1802_v5 = vld [vmem:[#allocation2 + $0xc] sm:$0xe] }
  0xd4   : > { %1989 = vmatmul.bf16.vlgmr.msra.gmra.mxu3 %v1917_v46  ;;  %v863_v56 = vadd.f32 %v5424_v47, %v862_v53  ;;  %v1341_v57 = vsel %vm5255_vm2, %v1336_v50, %v1340_v51  ;;  %v1345_v6 = vrot.slane %v1343_v55, 4  ;;  %v1348_v8 = vrot.slane %v1346_v59, 5  ;;  %v4978_v59 = vld [vmem:[%s6486_s3 + $0x128] sm:$0xff] }
  0xd5   : > { %v1040_v61 = vrot.slane %v1038_v52, 7  ;;  %v1528_v0 = vunpack.c.l.b16 %v1341_v57  ;;  %v4432_v16 = vrot.slane %v1802_v5, 9  ;;  %2556 = vmatpush.bf16.msrb.mxu2 %v4978_v59 }
  0xd6   : > { %v905_v2 = vmax.f32 %v863_v56, 0.0  ;;  %v1349_v21 = vor.u32 %v1348_v8, %v1345_v6  ;;  %v1229_v6 = vld [vmem:[#allocation2 + $0x24] sm:$0xf] }
  0xd7   : > { %v1043_v3 = vor.u32 %v1041_v62, %v1040_v61  ;;  %v1543_v4 = vpack.c.b16 %v1528_v0, %v1527_v63  ;;  %v1044_v28 = vrot.slane %v1040_v61, 4  ;;  %v924_v63 = vadd.s32 4, %v5413_v38 }
  0xd8   : > { %v965_v9 = vsel %vm5534_vm7, %v905_v2, 0.0  ;;  %v1350_v46 = vrot.slane %v1349_v21, 4 }
  0xd9   : > { %v1223_v10 = vsel %vm5468_vm8, %v1043_v3, %v1222_v1  ;;  %v985_v11 = vpack.c.bf16 %v965_v9, %v965_v9  ;;  %1615 = vmatmul.bf16.vlgmr.msra.gmra.mxu1 %v1543_v4  ;;  %v4926_v12 = vld [vmem:[#allocation2 + $0xc] sm:$0xff]  ;;  %vm934_vm12 = vcmp.ge.s32.totalorder %v924_v63, 1  ;;  %vm944_vm13 = vcmp.le.s32.totalorder %v924_v63, 16 }
  0xda   : > { %v1281_v13 = vld [vmem:[#allocation2 + $0x10] sm:$0xf]  ;;  %1224 = vst [vmem:[#allocation2 + $0x18] sm:$0xf] %v1223_v10  ;;  %v1311_v15 = vld [vmem:[#allocation2 + $0x14] sm:$0x1]  ;;  %1765 = vmatmul.bf16.gmra.mxu2 %v4926_v12  ;;  %vm5600_vm15 = vmand %vm934_vm12, %vm944_vm13 }
  0xdb   : > { %v1837_v17 = vrot.slane %v1281_v13, 5  ;;  %v1046_v18 = vshrl.u32 %v985_v11, 16  ;;  %v865_v19 = vpop.f32.mrf.mxu0  ;;  %v1840_v20 = vrot.slane %v1311_v15, 5  ;;  %v1352_v22 = vshll.u32 %v1281_v13, 16  ;;  %v4970_v1 = vld [vmem:[%s6486_s3 + $0xe8] sm:$0xff] }
  0xdc   : > { %v866_v23 = vadd.f32 %v5424_v47, %v865_v19  ;;  %v1356_v27 = vshrl.u32 %v1281_v13, 16  ;;  %v1049_v31 = vshll.u32 %v985_v11, 16  ;;  %v1362_v40 = vshll.u32 %v1311_v15, 16  ;;  %2178 = vmatpush.bf16.msrb.mxu1 %v4970_v1  ;;  %v4977_v1 = vld [vmem:[%s6486_s3 + $0x120] sm:$0xff] }
  0xdd   : > { %v1838_v25 = vsel %vm5522_vm6, %v4432_v16, %v1837_v17  ;;  %v1839_v26 = vrot.slane %v1837_v17, 4  ;;  %v1048_v30 = vrot.slane %v1046_v18, 7  ;;  %v1354_v33 = vrot.slane %v1352_v22, 5  ;;  %2557 = vmatpush.bf16.msrb.mxu2 %v4977_v1 }
  0xde   : > { %v906_v36 = vmax.f32 %v866_v23, 0.0  ;;  %v1358_v39 = vrot.slane %v1356_v27, 4  ;;  %v1903_v43 = vunpack.c.l.b16 %v1838_v25  ;;  %v1364_v56 = vrot.slane %v1362_v40, 5 }
  0xdf   : > { %v1841_v37 = vsel %vm5522_vm6, %v1839_v26, %v1840_v20  ;;  %v1051_v41 = vor.u32 %v1049_v31, %v1048_v30  ;;  %v1053_v42 = vrot.slane %v1048_v30, 4  ;;  %v1355_v54 = vsel %vm5255_vm2, %v1350_v46, %v1354_v33 }
  0xe0   : > { %v1904_v44 = vunpack.c.l.b16 %v1841_v37  ;;  %v966_v45 = vsel %vm5567_vm11, %v906_v36, 0.0  ;;  %v1359_v48 = vor.u32 %v1358_v39, %v1354_v33  ;;  %v1529_v4 = vunpack.c.l.b16 %v1355_v54 }
  0xe1   : > { %v1052_v49 = vsel %vm5481_vm14, %v1044_v28, %v1051_v41  ;;  %v1227_v50 = vsel %vm5491_vm0, %v1053_v42, %v1226_v35  ;;  %v986_v51 = vpack.c.bf16 %v966_v45, %v966_v45  ;;  %v1282_v53 = vld [vmem:[#allocation2 + $0x18] sm:$0xf]  ;;  %v1233_v42 = vld [vmem:[#allocation2 + $0x2c] sm:$0x1] }
  0xe2   : > { %v1918_v52 = vpack.c.b16 %v1904_v44, %v1903_v43  ;;  %1225 = vst [vmem:[#allocation2 + $0x1c] sm:$0xf] %v1052_v49  ;;  %v1360_v55 = vrot.slane %v1359_v48, 4  ;;  %v1367_v60 = vshrl.u32 %v1282_v53, 16  ;;  %v1370_v0 = vshll.u32 %v1282_v53, 16 }
  0xe3   : > { %1228 = vst [vmem:[#allocation2 + $0x20] sm:$0x1] %v1227_v50  ;;  %v1055_v57 = vshrl.u32 %v986_v51, 16  ;;  %v867_v58 = vpop.f32.mrf.mxu0  ;;  %v1058_v3 = vshll.u32 %v986_v51, 16  ;;  %v1803_v11 = vld [vmem:[#allocation2 + $0x18] sm:$0xe] }
  0xe4   : > { %1994 = vmatmul.bf16.gmra.mxu3 %v1918_v52  ;;  %v868_v61 = vadd.f32 %v5424_v47, %v867_v58  ;;  %v1365_v62 = vsel %vm5255_vm2, %v1360_v55, %v1364_v56  ;;  %v1369_v12 = vrot.slane %v1367_v60, 4  ;;  %v1372_v13 = vrot.slane %v1370_v0, 5 }
  0xe5   : > { %v1057_v2 = vrot.slane %v1055_v57, 7  ;;  %v1530_v5 = vunpack.c.l.b16 %v1365_v62  ;;  %v4433_v22 = vrot.slane %v1803_v11, 9 }
  0xe6   : > { %v907_v8 = vmax.f32 %v868_v61, 0.0  ;;  %v1373_v28 = vor.u32 %v1372_v13, %v1369_v12  ;;  %v1236_v13 = vld [vmem:[#allocation2 + $0x30] sm:$0xf] }
  0xe7   : > { %v1060_v9 = vor.u32 %v1058_v3, %v1057_v2  ;;  %v1544_v10 = vpack.c.b16 %v1530_v5, %v1529_v4  ;;  %v1061_v36 = vrot.slane %v1057_v2, 4  ;;  %v925_v5 = vadd.s32 5, %v5413_v38 }
  0xe8   : > { %v967_v15 = vsel %vm5567_vm11, %v907_v8, 0.0  ;;  %v1374_v53 = vrot.slane %v1373_v28, 4  ;;  %v4969_v8 = vld [vmem:[%s6486_s3 + $0xe0] sm:$0xff] }
  0xe9   : > { %v1230_v16 = vsel %vm5468_vm8, %v1060_v9, %v1229_v6  ;;  %v987_v17 = vpack.c.bf16 %v967_v15, %v967_v15  ;;  %1620 = vmatmul.bf16.gmra.mxu1 %v1544_v10  ;;  %v4927_v18 = vld [vmem:[#allocation2 + $0x18] sm:$0xff]  ;;  %vm935_vm1 = vcmp.ge.s32.totalorder %v925_v5, 1  ;;  %vm945_vm3 = vcmp.le.s32.totalorder %v925_v5, 16 }
  0xea   : > { %v4989_v19 = vld [vmem:[#allocation2 + $0x18] sm:$0xff]  ;;  %1231 = vst [vmem:[#allocation2 + $0x24] sm:$0xf] %v1230_v16  ;;  %v1312_v21 = vld [vmem:[#allocation2 + $0x20] sm:$0x1]  ;;  %1770 = vmatmul.bf16.gmra.mxu2 %v4927_v18  ;;  %2179 = vmatpush.bf16.msrb.mxu1 %v4969_v8  ;;  %vm5633_vm4 = vmand %vm935_vm1, %vm945_vm3 }
  0xeb   : > { %v1283_v20 = vld [vmem:[#allocation2 + $0x1c] sm:$0xf]  ;;  %v1063_v25 = vshrl.u32 %v987_v17, 16  ;;  %v870_v26 = vpop.f32.mrf.mxu0  ;;  %3007 = vmatmul.bf16.vlgmr.msrb.gmra.mxu0 %v4989_v19  ;;  %v1847_v27 = vrot.slane %v1312_v21, 5  ;;  %v1066_v39 = vshll.u32 %v987_v17, 16  ;;  %v1386_v46 = vshll.u32 %v1312_v21, 16 }
  0xec   : > { %v1844_v23 = vrot.slane %v1283_v20, 5  ;;  %v1376_v30 = vshll.u32 %v1283_v20, 16  ;;  %v871_v31 = vadd.f32 %v5424_v47, %v870_v26  ;;  %v1380_v35 = vshrl.u32 %v1283_v20, 16  ;;  %v4976_v8 = vld [vmem:[%s6486_s3 + $0x118] sm:$0xff] }
  0xed   : > { %v1065_v37 = vrot.slane %v1063_v25, 7  ;;  %v1388_v62 = vrot.slane %v1386_v46, 5  ;;  %2558 = vmatpush.bf16.msrb.mxu2 %v4976_v8 }
  0xee   : > { %v1845_v32 = vsel %vm5522_vm6, %v4433_v22, %v1844_v23  ;;  %v1846_v33 = vrot.slane %v1844_v23, 4  ;;  %v1378_v41 = vrot.slane %v1376_v30, 5  ;;  %v908_v43 = vmax.f32 %v871_v31, 0.0 }
  0xef   : > { %v1382_v45 = vrot.slane %v1380_v35, 4  ;;  %v1068_v48 = vor.u32 %v1066_v39, %v1065_v37  ;;  %v1070_v49 = vrot.slane %v1065_v37, 4  ;;  %v1905_v50 = vunpack.c.l.b16 %v1845_v32 }
  0xf0   : > { %v1848_v44 = vsel %vm5522_vm6, %v1846_v33, %v1847_v27  ;;  %v968_v52 = vsel %vm5600_vm15, %v908_v43, 0.0  ;;  %v1379_v60 = vsel %vm5255_vm2, %v1374_v53, %v1378_v41 }
  0xf1   : > { %v1906_v51 = vunpack.c.l.b16 %v1848_v44  ;;  %v1383_v54 = vor.u32 %v1382_v45, %v1378_v41  ;;  %v1069_v55 = vsel %vm5481_vm14, %v1061_v36, %v1068_v48  ;;  %v1234_v56 = vsel %vm5491_vm0, %v1070_v49, %v1233_v42  ;;  %v1284_v59 = vld [vmem:[#allocation2 + $0x24] sm:$0xf]  ;;  %v1240_v49 = vld [vmem:[#allocation2 + $0x38] sm:$0x1] }
  0xf2   : > { %v988_v57 = vpack.c.bf16 %v968_v52, %v968_v52  ;;  %1232 = vst [vmem:[#allocation2 + $0x28] sm:$0xf] %v1069_v55  ;;  %v1391_v2 = vshrl.u32 %v1284_v59, 16  ;;  %v1394_v6 = vshll.u32 %v1284_v59, 16  ;;  %v1531_v11 = vunpack.c.l.b16 %v1379_v60  ;;  %v1804_v18 = vld [vmem:[#allocation2 + $0x24] sm:$0xe] }
  0xf3   : > { %v1919_v58 = vpack.c.b16 %v1906_v51, %v1905_v50  ;;  %v1384_v61 = vrot.slane %v1383_v54, 4  ;;  %1235 = vst [vmem:[#allocation2 + $0x2c] sm:$0x1] %v1234_v56  ;;  %v872_v0 = vpop.f32.mrf.mxu0  ;;  %v4434_v30 = vrot.slane %v1804_v18, 9 }
  0xf4   : > { %v1072_v63 = vshrl.u32 %v988_v57, 16  ;;  %v873_v3 = vadd.f32 %v5424_v47, %v872_v0  ;;  %v1075_v10 = vshll.u32 %v988_v57, 16  ;;  %v1393_v19 = vrot.slane %v1391_v2, 4 }
  0xf5   : > { %1999 = vmatmul.bf16.gmra.mxu3 %v1919_v58  ;;  %v1389_v4 = vsel %vm5255_vm2, %v1384_v61, %v1388_v62  ;;  %v1396_v20 = vrot.slane %v1394_v6, 5 }
  0xf6   : > { %v1074_v9 = vrot.slane %v1072_v63, 7  ;;  %v1532_v12 = vunpack.c.l.b16 %v1389_v4  ;;  %v909_v15 = vmax.f32 %v873_v3, 0.0 }
  0xf7   : > { %v1397_v36 = vor.u32 %v1396_v20, %v1393_v19  ;;  %v1243_v20 = vld [vmem:[#allocation2 + $0x3c] sm:$0xf] }
  0xf8   : > { %v1077_v16 = vor.u32 %v1075_v10, %v1074_v9  ;;  %v1545_v17 = vpack.c.b16 %v1532_v12, %v1531_v11  ;;  %v969_v21 = vsel %vm5600_vm15, %v909_v15, 0.0  ;;  %v1078_v43 = vrot.slane %v1074_v9, 4  ;;  %v4968_v15 = vld [vmem:[%s6486_s3 + $0xd8] sm:$0xff] }
  0xf9   : > { %v989_v23 = vpack.c.bf16 %v969_v21, %v969_v21  ;;  %v4928_v25 = vld [vmem:[#allocation2 + $0x24] sm:$0xff]  ;;  %v1398_v59 = vrot.slane %v1397_v36, 4  ;;  %v926_v12 = vadd.s32 6, %v5413_v38  ;;  %2180 = vmatpush.bf16.msrb.mxu1 %v4968_v15  ;;  %v4975_v15 = vld [vmem:[%s6486_s3 + $0x110] sm:$0xff] }
  0xfa   : > { %v1237_v22 = vsel %vm5468_vm8, %v1077_v16, %v1236_v13  ;;  %1625 = vmatmul.bf16.gmra.mxu1 %v1545_v17  ;;  %v4990_v26 = vld [vmem:[#allocation2 + $0x24] sm:$0xff]  ;;  %v1313_v28 = vld [vmem:[#allocation2 + $0x2c] sm:$0x1]  ;;  %1775 = vmatmul.bf16.gmra.mxu2 %v4928_v25 }
  0xfb   : > { %v1285_v27 = vld [vmem:[#allocation2 + $0x28] sm:$0xf]  ;;  %1238 = vst [vmem:[#allocation2 + $0x30] sm:$0xf] %v1237_v22  ;;  %v1080_v32 = vshrl.u32 %v989_v23, 16  ;;  %v875_v33 = vpop.f32.mrf.mxu0  ;;  %3012 = vmatmul.bf16.gmra.mxu0 %v4990_v26  ;;  %v1854_v35 = vrot.slane %v1313_v28, 5  ;;  %2559 = vmatpush.bf16.msrb.mxu2 %v4975_v15 }
  0xfc   : > { %v1851_v31 = vrot.slane %v1285_v27, 5  ;;  %v1400_v37 = vshll.u32 %v1285_v27, 16  ;;  %v876_v39 = vadd.f32 %v5424_v47, %v875_v33  ;;  %v1404_v42 = vshrl.u32 %v1285_v27, 16 }
  0xfd   : > { %v1082_v44 = vrot.slane %v1080_v32, 7  ;;  %v1083_v45 = vshll.u32 %v989_v23, 16  ;;  %v1410_v53 = vshll.u32 %v1313_v28, 16  ;;  %vm936_vm5 = vcmp.ge.s32.totalorder %v926_v12, 1 }
  0xfe   : > { %v1852_v40 = vsel %vm5522_vm6, %v4434_v30, %v1851_v31  ;;  %v1853_v41 = vrot.slane %v1851_v31, 4  ;;  %v1402_v48 = vrot.slane %v1400_v37, 5  ;;  %v910_v50 = vmax.f32 %v876_v39, 0.0 }
  0xff   : > { %v1406_v52 = vrot.slane %v1404_v42, 4  ;;  %v1085_v54 = vor.u32 %v1083_v45, %v1082_v44  ;;  %v1087_v55 = vrot.slane %v1082_v44, 4  ;;  %v1907_v56 = vunpack.c.l.b16 %v1852_v40 }
 0x100   : > { %v1855_v51 = vsel %vm5522_vm6, %v1853_v41, %v1854_v35  ;;  %v970_v58 = vsel %vm5633_vm4, %v910_v50, 0.0  ;;  %v1403_v2 = vsel %vm5255_vm2, %v1398_v59, %v1402_v48  ;;  %v1412_v4 = vrot.slane %v1410_v53, 5 }
 0x101   : > { %v1908_v57 = vunpack.c.l.b16 %v1855_v51  ;;  %v1407_v60 = vor.u32 %v1406_v52, %v1402_v48  ;;  %v1086_v61 = vsel %vm5481_vm14, %v1078_v43, %v1085_v54  ;;  %v1241_v62 = vsel %vm5491_vm0, %v1087_v55, %v1240_v49  ;;  %v1247_v55 = vld [vmem:[#allocation2 + $0x44] sm:$0x1] }
 0x102   : > { %v990_v63 = vpack.c.bf16 %v970_v58, %v970_v58  ;;  %v1286_v1 = vld [vmem:[#allocation2 + $0x30] sm:$0xf]  ;;  %1239 = vst [vmem:[#allocation2 + $0x34] sm:$0xf] %v1086_v61  ;;  %v1533_v18 = vunpack.c.l.b16 %v1403_v2  ;;  %vm946_vm7 = vcmp.le.s32.totalorder %v926_v12, 16 }
 0x103   : > { %v1920_v0 = vpack.c.b16 %v1908_v57, %v1907_v56  ;;  %v1408_v3 = vrot.slane %v1407_v60, 4  ;;  %1242 = vst [vmem:[#allocation2 + $0x38] sm:$0x1] %v1241_v62  ;;  %v877_v6 = vpop.f32.mrf.mxu0  ;;  %v1415_v9 = vshrl.u32 %v1286_v1, 16  ;;  %v1418_v13 = vshll.u32 %v1286_v1, 16  ;;  %vm5666_vm9 = vmand %vm936_vm5, %vm946_vm7 }
 0x104   : > { %v1089_v5 = vshrl.u32 %v990_v63, 16  ;;  %v878_v10 = vadd.f32 %v5424_v47, %v877_v6  ;;  %v1092_v17 = vshll.u32 %v990_v63, 16  ;;  %v1805_v25 = vld [vmem:[#allocation2 + $0x30] sm:$0xe] }
 0x105   : > { %2004 = vmatmul.bf16.gmra.mxu3 %v1920_v0  ;;  %v1413_v11 = vsel %vm5255_vm2, %v1408_v3, %v1412_v4  ;;  %v1417_v26 = vrot.slane %v1415_v9, 4  ;;  %v1420_v27 = vrot.slane %v1418_v13, 5  ;;  %v4435_v37 = vrot.slane %v1805_v25, 9 }
 0x106   : > { %v1091_v16 = vrot.slane %v1089_v5, 7  ;;  %v1534_v19 = vunpack.c.l.b16 %v1413_v11  ;;  %v911_v21 = vmax.f32 %v878_v10, 0.0 }
 0x107   : > { %v1421_v43 = vor.u32 %v1420_v27, %v1417_v26  ;;  %v5692_v27 = vld [vmem:[#allocation2 + $0xc] sm:$0xf] }
 0x108   : > { %v1094_v22 = vor.u32 %v1092_v17, %v1091_v16  ;;  %v1546_v23 = vpack.c.b16 %v1534_v19, %v1533_v18  ;;  %v971_v28 = vsel %vm5633_vm4, %v911_v21, 0.0  ;;  %v1095_v50 = vrot.slane %v1091_v16, 4  ;;  %v4967_v21 = vld [vmem:[%s6486_s3 + $0xd0] sm:$0xff] }
 0x109   : > { %v991_v31 = vpack.c.bf16 %v971_v28, %v971_v28  ;;  %v4929_v32 = vld [vmem:[#allocation2 + $0x30] sm:$0xff]  ;;  %v1422_v1 = vrot.slane %v1421_v43, 4  ;;  %v927_v19 = vadd.s32 7, %v5413_v38  ;;  %v1250_v28 = vld [vmem:[#allocation2 + $0x48] sm:$0xf]  ;;  %2181 = vmatpush.bf16.msrb.mxu1 %v4967_v21 }
 0x10a   : > { %v1244_v30 = vsel %vm5468_vm8, %v1094_v22, %v1243_v20  ;;  %1630 = vmatmul.bf16.gmra.mxu1 %v1546_v23  ;;  %v4991_v33 = vld [vmem:[#allocation2 + $0x30] sm:$0xff]  ;;  %v1314_v36 = vld [vmem:[#allocation2 + $0x38] sm:$0x1]  ;;  %1780 = vmatmul.bf16.gmra.mxu2 %v4929_v32 }
 0x10b   : > { %v1287_v35 = vld [vmem:[#allocation2 + $0x34] sm:$0xf]  ;;  %1245 = vst [vmem:[#allocation2 + $0x3c] sm:$0xf] %v1244_v30  ;;  %v1097_v40 = vshrl.u32 %v991_v31, 16  ;;  %v880_v41 = vpop.f32.mrf.mxu0  ;;  %3017 = vmatmul.bf16.gmra.mxu0 %v4991_v33  ;;  %v1861_v42 = vrot.slane %v1314_v36, 5 }
 0x10c   : > { %v1858_v39 = vrot.slane %v1287_v35, 5  ;;  %v1424_v44 = vshll.u32 %v1287_v35, 16  ;;  %v881_v45 = vadd.f32 %v5424_v47, %v880_v41  ;;  %v1428_v49 = vshrl.u32 %v1287_v35, 16 }
 0x10d   : > { %v1099_v51 = vrot.slane %v1097_v40, 7  ;;  %v1100_v52 = vshll.u32 %v991_v31, 16  ;;  %v1434_v59 = vshll.u32 %v1314_v36, 16  ;;  %v4988_v31 = vld [vmem:[%s6486_s3 + $0x178] sm:$0xff]  ;;  %v2266_v40 = vshrl.u32 %v5692_v27, 16 }
 0x10e   : > { %v1859_v46 = vsel %vm5522_vm6, %v4435_v37, %v1858_v39  ;;  %v1860_v48 = vrot.slane %v1858_v39, 4  ;;  %v1426_v54 = vrot.slane %v1424_v44, 5  ;;  %v912_v56 = vmax.f32 %v881_v45, 0.0  ;;  %2804 = vmatpush.bf16.msrb.mxu3 %v4988_v31 }
 0x10f   : > { %v1430_v58 = vrot.slane %v1428_v49, 4  ;;  %v1102_v60 = vor.u32 %v1100_v52, %v1099_v51  ;;  %v1104_v61 = vrot.slane %v1099_v51, 4  ;;  %v1909_v62 = vunpack.c.l.b16 %v1859_v46 }
 0x110   : > { %v1862_v57 = vsel %vm5522_vm6, %v1860_v48, %v1861_v42  ;;  %v972_v0 = vsel %vm5666_vm9, %v912_v56, 0.0  ;;  %v1427_v9 = vsel %vm5255_vm2, %v1422_v1, %v1426_v54  ;;  %v1436_v11 = vrot.slane %v1434_v59, 5  ;;  %v1254_v1 = vld [vmem:[#allocation2 + $0x50] sm:$0x1] }
 0x111   : > { %v1910_v63 = vunpack.c.l.b16 %v1862_v57  ;;  %v1431_v2 = vor.u32 %v1430_v58, %v1426_v54  ;;  %v1103_v3 = vsel %vm5481_vm14, %v1095_v50, %v1102_v60  ;;  %v1248_v4 = vsel %vm5491_vm0, %v1104_v61, %v1247_v55  ;;  %v4987_v55 = vld [vmem:[%s6486_s3 + $0x170] sm:$0xff] }
 0x112   : > { %v992_v5 = vpack.c.bf16 %v972_v0, %v972_v0  ;;  %v1288_v8 = vld [vmem:[#allocation2 + $0x3c] sm:$0xf]  ;;  %1246 = vst [vmem:[#allocation2 + $0x40] sm:$0xf] %v1103_v3  ;;  %v1535_v25 = vunpack.c.l.b16 %v1427_v9  ;;  %vm937_vm10 = vcmp.ge.s32.totalorder %v927_v19, 1  ;;  %vm947_vm11 = vcmp.le.s32.totalorder %v927_v19, 16  ;;  %2805 = vmatpush.bf16.msrb.mxu3 %v4987_v55 }
 0x113   : > { %v1921_v6 = vpack.c.b16 %v1910_v63, %v1909_v62  ;;  %v1432_v10 = vrot.slane %v1431_v2, 4  ;;  %1249 = vst [vmem:[#allocation2 + $0x44] sm:$0x1] %v1248_v4  ;;  %v882_v13 = vpop.f32.mrf.mxu0  ;;  %v1439_v16 = vshrl.u32 %v1288_v8, 16  ;;  %v1442_v20 = vshll.u32 %v1288_v8, 16  ;;  %vm5712_vm12 = vmand %vm937_vm10, %vm947_vm11 }
 0x114   : > { %v1106_v12 = vshrl.u32 %v992_v5, 16  ;;  %v883_v17 = vadd.f32 %v5424_v47, %v882_v13  ;;  %v1109_v23 = vshll.u32 %v992_v5, 16  ;;  %v1806_v35 = vld [vmem:[#allocation2 + $0x3c] sm:$0xe]  ;;  %v4986_v5 = vld [vmem:[%s6486_s3 + $0x168] sm:$0xff] }
 0x115   : > { %2009 = vmatmul.bf16.gmra.mxu3 %v1921_v6  ;;  %v1437_v18 = vsel %vm5255_vm2, %v1432_v10, %v1436_v11  ;;  %v1441_v36 = vrot.slane %v1439_v16, 4  ;;  %v1444_v37 = vrot.slane %v1442_v20, 5  ;;  %v4436_v48 = vrot.slane %v1806_v35, 9  ;;  %v5721_v11 = vld [vmem:[#allocation2 + $0x10] sm:$0xf] }
 0x116   : > { %v5690_v22 = vrot.slane %v1106_v12, 7  ;;  %v1536_v26 = vunpack.c.l.b16 %v1437_v18  ;;  %v913_v30 = vmax.f32 %v883_v17, 0.0  ;;  %v2269_v16 = vshll.u32 %v5692_v27, 16  ;;  %2806 = vmatpush.bf16.msrb.mxu3 %v4986_v5 }
 0x117   : > { %v1445_v53 = vor.u32 %v1444_v37, %v1441_v36  ;;  %v2279_v35 = vshrl.u32 %v5721_v11, 16  ;;  %v5746_v36 = vld [vmem:[%s6488_s5] ss:$0 sm:$0xff] }
 0x118   : > { %v1111_v32 = vor.u32 %v1109_v23, %v5690_v22  ;;  %v1547_v33 = vpack.c.b16 %v1536_v26, %v1535_v25  ;;  %v973_v39 = vsel %vm5666_vm9, %v913_v30, 0.0  ;;  %v1112_v60 = vrot.slane %v5690_v22, 4  ;;  %v5733_v22 = vld [vmem:[%s6486_s3 + $0x1f8] sm:$0xff] }
 0x119   : > { %v993_v42 = vpack.c.bf16 %v973_v39, %v973_v39  ;;  %v4930_v43 = vld [vmem:[#allocation2 + $0x3c] sm:$0xff]  ;;  %v1446_v13 = vrot.slane %v1445_v53, 4  ;;  %3377 = vmatpush.bf16.msra.mxu0 %v5733_v22 }
 0x11a   : > { %v1251_v41 = vsel %vm5468_vm8, %v1111_v32, %v1250_v28  ;;  %1635 = vmatmul.bf16.gmra.mxu1 %v1547_v33  ;;  %v4992_v44 = vld [vmem:[#allocation2 + $0x3c] sm:$0xff]  ;;  %v1315_v46 = vld [vmem:[#allocation2 + $0x44] sm:$0x1]  ;;  %1785 = vmatmul.bf16.gmra.mxu2 %v4930_v43  ;;  %v2275_v28 = vshll.u32 %v5721_v11, 16  ;;  %v4974_v32 = vld [vmem:[%s6486_s3 + $0x108] sm:$0xff] }
 0x11b   : > { %v1289_v45 = vld [vmem:[#allocation2 + $0x40] sm:$0xf]  ;;  %1252 = vst [vmem:[#allocation2 + $0x48] sm:$0xf] %v1251_v41  ;;  %v1114_v50 = vshrl.u32 %v993_v42, 16  ;;  %v885_v51 = vpop.f32.mrf.mxu0  ;;  %3022 = vmatmul.bf16.gmra.mxu0 %v4992_v44  ;;  %v1868_v52 = vrot.slane %v1315_v46, 5  ;;  %2560 = vmatpush.bf16.msrb.mxu2 %v4974_v32 }
 0x11c   : > { %v1865_v49 = vrot.slane %v1289_v45, 5  ;;  %v1448_v54 = vshll.u32 %v1289_v45, 16  ;;  %v886_v56 = vadd.f32 %v5424_v47, %v885_v51  ;;  %v1452_v59 = vshrl.u32 %v1289_v45, 16  ;;  %v4966_v43 = vld [vmem:[%s6486_s3 + $0xc8] sm:$0xff]  ;;  %v4985_v44 = vld [vmem:[%s6486_s3 + $0x160] sm:$0xff]  ;;  %v4984_v53 = vld [vmem:[%s6486_s3 + $0x158] sm:$0xff] }
 0x11d   : > { %v1116_v61 = vrot.slane %v1114_v50, 7  ;;  %v1117_v62 = vshll.u32 %v993_v42, 16  ;;  %v1458_v4 = vshll.u32 %v1315_v46, 16  ;;  %v928_v41 = vadd.s32 8, %v5413_v38  ;;  %v5763_v50 = vld [vmem:[%s6486_s3 + $0x1f0] sm:$0xff]  ;;  %2182 = vmatpush.bf16.msrb.mxu1 %v4966_v43  ;;  %2807 = vmatpush.bf16.msrb.mxu3 %v4985_v44 }
 0x11e   : > { %v1866_v57 = vsel %vm5522_vm6, %v4436_v48, %v1865_v49  ;;  %v1867_v58 = vrot.slane %v1865_v49, 4  ;;  %v1450_v0 = vrot.slane %v1448_v54, 5  ;;  %v914_v2 = vmax.f32 %v886_v56, 0.0  ;;  %v1257_v51 = vld [vmem:[#allocation2 + $0x54] sm:$0xf]  ;;  %3378 = vmatpush.bf16.msra.mxu0 %v5763_v50 }
 0x11f   : > { %v1454_v3 = vrot.slane %v1452_v59, 4  ;;  %v1119_v6 = vor.u32 %v1117_v62, %v1116_v61  ;;  %v1121_v8 = vrot.slane %v1116_v61, 4  ;;  %v1911_v9 = vunpack.c.l.b16 %v1866_v57 }
 0x120   : > { %v1869_v47 = vsel %vm5522_vm6, %v1867_v58, %v1868_v52  ;;  %v974_v12 = vsel %vm5712_vm12, %v914_v2, 0.0  ;;  %v1451_v23 = vsel %vm5255_vm2, %v1446_v13, %v1450_v0  ;;  %v1460_v26 = vrot.slane %v1458_v4, 5  ;;  %v4983_v13 = vld [vmem:[%s6486_s3 + $0x150] sm:$0xff] }
 0x121   : > { %v1912_v10 = vunpack.c.l.b16 %v1869_v47  ;;  %v1455_v15 = vor.u32 %v1454_v3, %v1450_v0  ;;  %v1120_v17 = vsel %vm5481_vm14, %v1112_v60, %v1119_v6  ;;  %v1255_v18 = vsel %vm5491_vm0, %v1121_v8, %v1254_v1  ;;  %2808 = vmatpush.bf16.msrb.mxu3 %v4984_v53  ;;  %v5816_v53 = vld [vmem:[#allocation2 + $0x14] sm:$0x1] }
 0x122   : > { %v994_v19 = vpack.c.bf16 %v974_v12, %v974_v12  ;;  %v1290_v21 = vld [vmem:[#allocation2 + $0x48] sm:$0xf]  ;;  %1253 = vst [vmem:[#allocation2 + $0x4c] sm:$0xf] %v1120_v17  ;;  %v1537_v48 = vunpack.c.l.b16 %v1451_v23  ;;  %v5770_v54 = vrot.slane %v2266_v40, 4  ;;  %v5776_v61 = vrot.slane %v2269_v16, 5 }
 0x123   : > { %v1922_v20 = vpack.c.b16 %v1912_v10, %v1911_v9  ;;  %v1456_v25 = vrot.slane %v1455_v15, 4  ;;  %1256 = vst [vmem:[#allocation2 + $0x50] sm:$0x1] %v1255_v18  ;;  %v887_v31 = vpop.f32.mrf.mxu0  ;;  %v1463_v33 = vshrl.u32 %v1290_v21, 16  ;;  %v1466_v42 = vshll.u32 %v1290_v21, 16  ;;  %v4973_v12 = vld [vmem:[%s6486_s3 + $0x100] sm:$0xff] }
 0x124   : > { %v1123_v30 = vshrl.u32 %v994_v19, 16  ;;  %v888_v37 = vadd.f32 %v5746_v36, %v887_v31  ;;  %v1126_v46 = vshll.u32 %v994_v19, 16  ;;  %v1807_v57 = vld [vmem:[#allocation2 + $0x48] sm:$0xe]  ;;  %v5778_v62 = vrot.slane %v2275_v28, 5  ;;  %2561 = vmatpush.bf16.msrb.mxu2 %v4973_v12 }
 0x125   : > { %2014 = vmatmul.bf16.gmra.mxu3 %v1922_v20  ;;  %v1461_v39 = vsel %vm5255_vm2, %v1456_v25, %v1460_v26  ;;  %v1465_v58 = vrot.slane %v1463_v33, 4  ;;  %v1468_v59 = vrot.slane %v1466_v42, 5  ;;  %v5780_v0 = vrot.slane %v2279_v35, 4  ;;  %v5796_v19 = vld [vmem:[%s6486_s3 + $0x1e8] sm:$0xff]  ;;  %v1261_v28 = vld [vmem:[#allocation2 + $0x5c] sm:$0x1] }
 0x126   : > { %v5758_v45 = vrot.slane %v1123_v30, 7  ;;  %v1538_v49 = vunpack.c.l.b16 %v1461_v39  ;;  %v915_v52 = vmax.f32 %v888_v37, 0.0  ;;  %vm938_vm13 = vcmp.ge.s32.totalorder %v928_v41, 1  ;;  %2809 = vmatpush.bf16.msrb.mxu3 %v4983_v13  ;;  %3379 = vmatpush.bf16.msra.mxu0 %v5796_v19 }
 0x127   : > { %vm948_vm15 = vcmp.le.s32.totalorder %v928_v41, 16  ;;  %v4437_v63 = vrot.slane %v1807_v57, 9  ;;  %v1469_v9 = vor.u32 %v1468_v59, %v1465_v58  ;;  %v2272_v58 = vor.u32 %v5776_v61, %v5770_v54  ;;  %v4982_v61 = vld [vmem:[%s6486_s3 + $0x148] sm:$0xff] }
 0x128   : > { %v1128_v55 = vor.u32 %v1126_v46, %v5758_v45  ;;  %v1548_v56 = vpack.c.b16 %v1538_v49, %v1537_v48  ;;  %v975_v60 = vsel %vm5712_vm12, %v915_v52, 0.0  ;;  %v1129_v20 = vrot.slane %v5758_v45, 4  ;;  %vm5801_vm1 = vmand %vm938_vm13, %vm948_vm15 }
 0x129   : > { %v995_v40 = vpack.c.bf16 %v975_v60, %v975_v60  ;;  %v4931_v1 = vld [vmem:[#allocation2 + $0x48] sm:$0xff]  ;;  %v1470_v43 = vrot.slane %v1469_v9, 4  ;;  %v2282_v45 = vor.u32 %v5780_v0, %v5778_v62  ;;  %v2285_v54 = vshll.u32 %v5816_v53, 16  ;;  %v5845_v9 = vld [vmem:[%s6486_s3 + $0x238] sm:$0xff] }
 0x12a   : > { %v1258_v27 = vsel %vm5468_vm8, %v1128_v55, %v1257_v51  ;;  %1640 = vmatmul.bf16.gmra.mxu1 %v1548_v56  ;;  %v4993_v2 = vld [vmem:[#allocation2 + $0x48] sm:$0xff]  ;;  %v1316_v3 = vld [vmem:[#allocation2 + $0x50] sm:$0x1]  ;;  %1790 = vmatmul.bf16.gmra.mxu2 %v4931_v1 }
 0x12b   : > { %v1291_v47 = vld [vmem:[#allocation2 + $0x4c] sm:$0xf]  ;;  %1259 = vst [vmem:[#allocation2 + $0x54] sm:$0xf] %v1258_v27  ;;  %v1131_v5 = vshrl.u32 %v995_v40, 16  ;;  %v890_v6 = vpop.f32.mrf.mxu0  ;;  %3027 = vmatmul.bf16.gmra.mxu0 %v4993_v2  ;;  %v1875_v8 = vrot.slane %v1316_v3, 5  ;;  %2810 = vmatpush.bf16.msrb.mxu3 %v4982_v61 }
 0x12c   : > { %v1872_v4 = vrot.slane %v1291_v47, 5  ;;  %v1472_v10 = vshll.u32 %v1291_v47, 16  ;;  %v891_v15 = vadd.f32 %v5746_v36, %v890_v6  ;;  %v1476_v18 = vshrl.u32 %v1291_v47, 16  ;;  %5039 = vmatpush.bf16.msra.mxu2 %v5845_v9 }
 0x12d   : > { %v1133_v21 = vrot.slane %v1131_v5, 7  ;;  %v1134_v23 = vshll.u32 %v995_v40, 16  ;;  %v1482_v33 = vshll.u32 %v1316_v3, 16  ;;  %v929_v47 = vadd.s32 9, %v5413_v38  ;;  %v4965_v3 = vld [vmem:[%s6486_s3 + $0xc0] sm:$0xff] }
 0x12e   : > { %v1873_v16 = vsel %vm5522_vm6, %v4437_v63, %v1872_v4  ;;  %v1874_v17 = vrot.slane %v1872_v4, 4  ;;  %v1474_v26 = vrot.slane %v1472_v10, 5  ;;  %v916_v30 = vmax.f32 %v891_v15, 0.0  ;;  %v5836_v63 = vld [vmem:[%s6486_s3 + $0x1e0] sm:$0xff]  ;;  %2183 = vmatpush.bf16.msrb.mxu1 %v4965_v3 }
 0x12f   : > { %v1478_v32 = vrot.slane %v1476_v18, 4  ;;  %v1136_v35 = vor.u32 %v1134_v23, %v1133_v21  ;;  %v1138_v37 = vrot.slane %v1133_v21, 4  ;;  %v1913_v39 = vunpack.c.l.b16 %v1873_v16  ;;  %v1264_v5 = vld [vmem:[#allocation2 + $0x60] sm:$0xf]  ;;  %3380 = vmatpush.bf16.msra.mxu0 %v5836_v63 }
 0x130   : > { %v1876_v31 = vsel %vm5522_vm6, %v1874_v17, %v1875_v8  ;;  %v976_v42 = vsel %vm5801_vm1, %v916_v30, 0.0  ;;  %v1475_v55 = vsel %vm5255_vm2, %v1470_v43, %v1474_v26  ;;  %v1484_v57 = vrot.slane %v1482_v33, 5  ;;  %v4981_v16 = vld [vmem:[%s6486_s3 + $0x140] sm:$0xff]  ;;  %v5866_v30 = vld [vmem:[#allocation2 + $0x18] sm:$0xf] }
 0x131   : > { %v1914_v41 = vunpack.c.l.b16 %v1876_v31  ;;  %v1479_v44 = vor.u32 %v1478_v32, %v1474_v26  ;;  %v1137_v46 = vsel %vm5481_vm14, %v1129_v20, %v1136_v35  ;;  %v1262_v48 = vsel %vm5491_vm0, %v1138_v37, %v1261_v28  ;;  %v5862_v26 = vld [vmem:[%s6486_s3 + $0x1d8] sm:$0xff]  ;;  %2811 = vmatpush.bf16.msrb.mxu3 %v4981_v16 }
 0x132   : > { %v996_v49 = vpack.c.bf16 %v976_v42, %v976_v42  ;;  %v1292_v52 = vld [vmem:[#allocation2 + $0x54] sm:$0xf]  ;;  %1260 = vst [vmem:[#allocation2 + $0x58] sm:$0xf] %v1137_v46  ;;  %v1539_v6 = vunpack.c.l.b16 %v1475_v55  ;;  %v5840_v8 = vrot.slane %v2282_v45, 4  ;;  %v5851_v20 = vrot.slane %v2272_v58, 4  ;;  %5031 = vmatpush.bf16.msra.mxu1 %v5733_v22 }
 0x133   : > { %v1923_v51 = vpack.c.b16 %v1914_v41, %v1913_v39  ;;  %v1480_v56 = vrot.slane %v1479_v44, 4  ;;  %1263 = vst [vmem:[#allocation2 + $0x5c] sm:$0x1] %v1262_v48  ;;  %v892_v0 = vpop.f32.mrf.mxu0  ;;  %v1487_v27 = vshrl.u32 %v1292_v52, 16  ;;  %v1490_v40 = vshll.u32 %v1292_v52, 16  ;;  %3381 = vmatpush.bf16.msra.mxu0 %v5862_v26 }
 0x134   : > { %v1140_v59 = vshrl.u32 %v996_v49, 16  ;;  %v1143_v60 = vshll.u32 %v996_v49, 16  ;;  %v893_v1 = vadd.f32 %v5746_v36, %v892_v0  ;;  %v1808_v12 = vld [vmem:[#allocation2 + $0x54] sm:$0xe]  ;;  %vm939_vm3 = vcmp.ge.s32.totalorder %v929_v47, 1 }
 0x135   : > { %2019 = vmatmul.bf16.gmra.mxu3 %v1923_v51  ;;  %v1485_v2 = vsel %vm5255_vm2, %v1480_v56, %v1484_v57  ;;  %v1489_v13 = vrot.slane %v1487_v27, 4  ;;  %v1492_v15 = vrot.slane %v1490_v40, 5  ;;  %v5857_v23 = vrot.slane %v2285_v54, 5  ;;  %v5881_v57 = vld [vmem:[%s6486_s3 + $0x1d0] sm:$0xff]  ;;  %v5891_v27 = vld [vmem:[#allocation2 + $0x1c] sm:$0xf] }
 0x136   : > { %v5838_v4 = vrot.slane %v1140_v59, 7  ;;  %v1540_v38 = vunpack.c.l.b16 %v1485_v2  ;;  %v917_v10 = vmax.f32 %v893_v1, 0.0  ;;  %v2653_v28 = vrot.slane %v5721_v11, 5  ;;  %5032 = vmatpush.bf16.msra.mxu1 %v5763_v50  ;;  %v1268_v1 = vld [vmem:[#allocation2 + $0x68] sm:$0x1] }
 0x137   : > { %vm949_vm4 = vcmp.le.s32.totalorder %v929_v47, 16  ;;  %v4438_v37 = vrot.slane %v1808_v12, 9  ;;  %v1493_v42 = vor.u32 %v1492_v15, %v1489_v13  ;;  %v2288_v22 = vsel %vm5255_vm2, %v5840_v8, %v5857_v23  ;;  %3382 = vmatpush.bf16.msra.mxu0 %v5881_v57  ;;  %v5965_v11 = vld [vmem:[#allocation2 + $0x28] sm:$0xf] }
 0x138   : > { %v1145_v17 = vor.u32 %v1143_v60, %v5838_v4  ;;  %v1549_v18 = vpack.c.b16 %v1540_v38, %v1539_v6  ;;  %v977_v21 = vsel %vm5801_vm1, %v917_v10, 0.0  ;;  %v1146_v58 = vrot.slane %v5838_v4, 4  ;;  %vm5887_vm5 = vmand %vm939_vm3, %vm949_vm4  ;;  %v5902_v10 = vld [vmem:[%s6486_s3 + $0x1c8] sm:$0xff] }
 0x139   : > { %v997_v32 = vpack.c.bf16 %v977_v21, %v977_v21  ;;  %v4932_v25 = vld [vmem:[#allocation2 + $0x54] sm:$0xff]  ;;  %v2290_v40 = vshrl.u32 %v5866_v30, 16  ;;  %v1494_v38 = vrot.slane %v1493_v42, 4  ;;  %v2299_v12 = vshll.u32 %v5891_v27, 16 }
 0x13a   : > { %v1265_v31 = vsel %vm5468_vm8, %v1145_v17, %v1264_v5  ;;  %1645 = vmatmul.bf16.gmra.mxu1 %v1549_v18  ;;  %v4994_v33 = vld [vmem:[#allocation2 + $0x54] sm:$0xff]  ;;  %v1317_v39 = vld [vmem:[#allocation2 + $0x5c] sm:$0x1]  ;;  %1795 = vmatmul.bf16.gmra.mxu2 %v4932_v25  ;;  %v2303_v13 = vshrl.u32 %v5891_v27, 16 }
 0x13b   : > { %v1293_v35 = vld [vmem:[#allocation2 + $0x58] sm:$0xf]  ;;  %1266 = vst [vmem:[#allocation2 + $0x60] sm:$0xf] %v1265_v31  ;;  %v1148_v44 = vshrl.u32 %v997_v32, 16  ;;  %v1151_v45 = vshll.u32 %v997_v32, 16  ;;  %v895_v46 = vpop.f32.mrf.mxu0  ;;  %3032 = vmatmul.bf16.gmra.mxu0 %v4994_v33  ;;  %5033 = vmatpush.bf16.msra.mxu1 %v5796_v19 }
 0x13c   : > { %v1879_v41 = vrot.slane %v1293_v35, 5  ;;  %v1496_v43 = vshll.u32 %v1293_v35, 16  ;;  %v1882_v48 = vrot.slane %v1317_v39, 5  ;;  %v1500_v49 = vshrl.u32 %v1293_v35, 16  ;;  %v5019_v21 = vld [vmem:[%s6486_s3 + $0x230] sm:$0xff]  ;;  %3383 = vmatpush.bf16.msra.mxu0 %v5902_v10 }
 0x13d   : > { %v896_v51 = vadd.f32 %v5746_v36, %v895_v46  ;;  %v1150_v59 = vrot.slane %v1148_v44, 7  ;;  %v1506_v54 = vshll.u32 %v1317_v39, 16  ;;  %v2293_v19 = vshll.u32 %v5866_v30, 16  ;;  %5040 = vmatpush.bf16.msra.mxu2 %v5019_v21 }
 0x13e   : > { %v1880_v52 = vsel %vm5522_vm6, %v4438_v37, %v1879_v41  ;;  %v1881_v55 = vrot.slane %v1879_v41, 4  ;;  %v1498_v56 = vrot.slane %v1496_v43, 5  ;;  %v1502_v0 = vrot.slane %v1500_v49, 4  ;;  %v1271_v49 = vld [vmem:[#allocation2 + $0x6c] sm:$0xf] }
 0x13f   : > { %v918_v2 = vmax.f32 %v896_v51, 0.0  ;;  %v1915_v50 = vunpack.c.l.b16 %v1880_v52  ;;  %v1153_v61 = vor.u32 %v1151_v45, %v1150_v59  ;;  %v1155_v4 = vrot.slane %v1150_v59, 4  ;;  %v5932_v45 = vld [vmem:[%s6486_s3 + $0x1c0] sm:$0xff]  ;;  %5034 = vmatpush.bf16.msra.mxu1 %v5836_v63 }
 0x140   : > { %v1883_v3 = vsel %vm5522_vm6, %v1881_v55, %v1882_v48  ;;  %v1503_v47 = vor.u32 %v1502_v0, %v1498_v56  ;;  %v1499_v31 = vsel %vm5255_vm2, %v1494_v38, %v1498_v56  ;;  %v1508_v25 = vrot.slane %v1506_v54, 5  ;;  %v2619_v48 = vld [vmem:[#allocation2 + $0xc] sm:$0xe]  ;;  %v5941_v63 = vld [vmem:[#allocation2 + $0x20] sm:$0x1]  ;;  %3384 = vmatpush.bf16.msra.mxu0 %v5932_v45 }
 0x141   : > { %v1916_v5 = vunpack.c.l.b16 %v1883_v3  ;;  %v978_v6 = vsel %vm5887_vm5, %v918_v2, 0.0  ;;  %v1154_v15 = vsel %vm5481_vm14, %v1146_v58, %v1153_v61  ;;  %v1269_v16 = vsel %vm5491_vm0, %v1155_v4, %v1268_v1  ;;  %v1275_v38 = vld [vmem:[#allocation2 + $0x74] sm:$0x1] }
 0x142   : > { %v998_v17 = vpack.c.bf16 %v978_v6, %v978_v6  ;;  %1267 = vst [vmem:[#allocation2 + $0x64] sm:$0xf] %v1154_v15  ;;  %v1504_v32 = vrot.slane %v1503_v47, 4  ;;  %v2278_v39 = vsel %vm5255_vm2, %v5851_v20, %v5778_v62  ;;  %v2655_v41 = vrot.slane %v2653_v28, 4 }
 0x143   : > { %v1924_v18 = vpack.c.b16 %v1916_v5, %v1915_v50  ;;  %1270 = vst [vmem:[#allocation2 + $0x68] sm:$0x1] %v1269_v16  ;;  %v897_v37 = vpop.f32.mrf.mxu0  ;;  %v5927_v30 = vrot.slane %v2299_v12, 5  ;;  %v2305_v44 = vrot.slane %v2303_v13, 4  ;;  %v1541_v20 = vunpack.c.l.b16 %v1499_v31  ;;  %5035 = vmatpush.bf16.msra.mxu1 %v5862_v26 }
 0x144   : > { %v1157_v33 = vshrl.u32 %v998_v17, 16  ;;  %v1160_v35 = vshll.u32 %v998_v17, 16  ;;  %v898_v42 = vadd.f32 %v5746_v36, %v897_v37  ;;  %v1509_v43 = vsel %vm5255_vm2, %v1504_v32, %v1508_v25  ;;  %3627 = vmatpush.bf16.msrb.mxu0 %v5845_v9  ;;  %v5017_v9 = vld [vmem:[%s6486_s3 + $0x220] sm:$0xff]  ;;  %v5016_v25 = vld [vmem:[%s6486_s3 + $0x218] sm:$0xff] }
 0x145   : > { %2024 = vmatmul.bf16.gmra.mxu3 %v1924_v18  ;;  %v1542_v46 = vunpack.c.l.b16 %v1509_v43  ;;  %v2475_v36 = vunpack.c.l.b16 %v2288_v22  ;;  %v2656_v52 = vrot.slane %v5816_v53, 5  ;;  %v2292_v55 = vrot.slane %v2290_v40, 4  ;;  %v5018_v53 = vld [vmem:[%s6486_s3 + $0x228] sm:$0xff]  ;;  %v5967_v18 = vld [vmem:[#allocation2 + $0x1c] sm:$0xf] }
 0x146   : > { %v1159_v62 = vrot.slane %v1157_v33, 7  ;;  %v919_v51 = vmax.f32 %v898_v42, 0.0  ;;  %v2295_v56 = vrot.slane %v2293_v19, 5  ;;  %v2474_v0 = vunpack.c.l.b16 %v2278_v39  ;;  %5041 = vmatpush.bf16.msra.mxu2 %v5018_v53 }
 0x147   : > { %v1550_v59 = vpack.c.b16 %v1542_v46, %v1541_v20  ;;  %v2657_v2 = vsel %vm5522_vm6, %v2655_v41, %v2656_v52  ;;  %v2306_v8 = vor.u32 %v2305_v44, %v5927_v30  ;;  %v4615_v3 = vrot.slane %v2619_v48, 9  ;;  %5036 = vmatpush.bf16.msra.mxu1 %v5881_v57 }
 0x148   : > { %v1162_v58 = vor.u32 %v1160_v35, %v1159_v62  ;;  %v979_v1 = vsel %vm5887_vm5, %v919_v51, 0.0  ;;  %v2490_v60 = vpack.c.b16 %v2475_v36, %v2474_v0  ;;  %v2296_v50 = vor.u32 %v2295_v56, %v2292_v55  ;;  %3628 = vmatpush.bf16.msrb.mxu0 %v5019_v21  ;;  %v2247_v35 = vld [vmem:[#allocation2 + $0x24] sm:$0xf] }
 0x149   : > { %v999_v22 = vpack.c.bf16 %v979_v1, %v979_v1  ;;  %v4995_v40 = vld [vmem:[#allocation2 + $0x60] sm:$0xff]  ;;  %v2309_v54 = vshll.u32 %v5941_v63, 16  ;;  %v2654_v14 = vsel %vm5522_vm6, %v4615_v3, %v2653_v28  ;;  %v2725_v26 = vunpack.c.l.b16 %v2657_v2  ;;  %v5996_v2 = vld [vmem:[#allocation2 + $0x2c] sm:$0x1] }
 0x14a   : > { %v1272_v23 = vsel %vm5468_vm8, %v1162_v58, %v1271_v49  ;;  %1650 = vmatmul.bf16.gmra.mxu1 %v1550_v59  ;;  %2562 = vmatmul.bf16.vlgmr.msrb.gmra.mxu2 %v2490_v60  ;;  %v2307_v5 = vrot.slane %v2306_v8, 4  ;;  %v1163_v47 = vrot.slane %v1159_v62, 4  ;;  %v2724_v13 = vunpack.c.l.b16 %v2654_v14  ;;  %v4957_v59 = vld [vmem:[#allocation2 + $0xc] sm:$0xff]  ;;  %v6004_v3 = vld [vmem:[#allocation2 + $0x20] sm:$0x1] }
 0x14b   : > { %1273 = vst [vmem:[#allocation2 + $0x6c] sm:$0xf] %v1272_v23  ;;  %v1165_v61 = vshrl.u32 %v999_v22, 16  ;;  %v1168_v4 = vshll.u32 %v999_v22, 16  ;;  %3037 = vmatmul.bf16.gmra.mxu0 %v4995_v40  ;;  %v2297_v15 = vrot.slane %v2296_v50, 4  ;;  %v2311_v16 = vrot.slane %v2309_v54, 5  ;;  %5042 = vmatpush.bf16.msra.mxu2 %v5017_v9 }
 0x14c   : > { %v2740_v31 = vpack.c.b16 %v2725_v26, %v2724_v13  ;;  %v2660_v32 = vrot.slane %v5891_v27, 5  ;;  %5037 = vmatpush.bf16.msra.mxu1 %v5902_v10  ;;  %3629 = vmatpush.bf16.msrb.mxu0 %v5018_v53  ;;  %v2323_v37 = vshll.u32 %v5965_v11, 16  ;;  %v2327_v39 = vshrl.u32 %v5965_v11, 16  ;;  %v3064_v10 = vld [vmem:[#allocation2 + $0x18] sm:$0xf]  ;;  %v5014_v8 = vld [vmem:[%s6486_s3 + $0x208] sm:$0xff] }
 0x14d   : > { %v1167_v6 = vrot.slane %v1165_v61, 7  ;;  %v1761_v12 = vpop.f32.mrf.mxu2  ;;  %v2302_v57 = vsel %vm5255_vm2, %v2297_v15, %v5927_v30  ;;  %v2312_v21 = vsel %vm5255_vm2, %v2307_v5, %v2311_v16  ;;  %v3098_v27 = vshll.u32 %v5967_v18, 16  ;;  %v2620_v30 = vld [vmem:[#allocation2 + $0x18] sm:$0xe]  ;;  %v5013_v5 = vld [vmem:[%s6486_s3 + $0x200] sm:$0xff] }
 0x14e   : > { %v3102_v41 = vshrl.u32 %v5967_v18, 16  ;;  %v2476_v29 = vunpack.c.l.b16 %v2302_v57  ;;  %v2477_v42 = vunpack.c.l.b16 %v2312_v21  ;;  %v2314_v43 = vshrl.u32 %v2247_v35, 16  ;;  %v6016_v57 = vld [vmem:[#allocation2 + $0x34] sm:$0xf] }
 0x14f   : > { %v1170_v28 = vor.u32 %v1168_v4, %v1167_v6  ;;  %v1172_v17 = vrot.slane %v1167_v6, 4  ;;  %5043 = vmatpush.bf16.msra.mxu2 %v5016_v25  ;;  %v2662_v44 = vrot.slane %v2660_v32, 4  ;;  %v2317_v62 = vshll.u32 %v2247_v35, 16 }
 0x150   : > { %5038 = vmatpush.bf16.msra.mxu1 %v5932_v45  ;;  %3630 = vmatpush.bf16.msrb.mxu0 %v5017_v9  ;;  %v5991_v20 = vrot.slane %v2323_v37, 5  ;;  %v2329_v46 = vrot.slane %v2327_v39, 4  ;;  %v3089_v49 = vshrl.u32 %v3064_v10, 16  ;;  %v3092_v51 = vshll.u32 %v3064_v10, 16 }
 0x151   : > { %v1171_v19 = vsel %vm5481_vm14, %v1163_v47, %v1170_v28  ;;  %v1276_v33 = vsel %vm5491_vm0, %v1172_v17, %v1275_v38  ;;  %v5993_v52 = vrot.slane %v3098_v27, 5  ;;  %v3104_v55 = vrot.slane %v3102_v41, 4  ;;  %v2250_v27 = vld [vmem:[#allocation2 + $0x30] sm:$0xf] }
 0x152   : > { %1274 = vst [vmem:[#allocation2 + $0x70] sm:$0xf] %v1171_v19  ;;  %v2491_v0 = vpack.c.b16 %v2477_v42, %v2476_v29  ;;  %v4616_v45 = vrot.slane %v2620_v30, 9  ;;  %v2663_v1 = vrot.slane %v5941_v63, 5  ;;  %v2316_v22 = vrot.slane %v2314_v43, 4 }
 0x153   : > { %1277 = vst [vmem:[#allocation2 + $0x74] sm:$0x1] %v1276_v33  ;;  %5044 = vmatpush.bf16.msra.mxu2 %v5015_v34  ;;  %v2319_v60 = vrot.slane %v2317_v62, 5  ;;  %v2330_v40 = vor.u32 %v2329_v46, %v5991_v20  ;;  %v3091_v50 = vrot.slane %v3089_v49, 4  ;;  %v3094_v54 = vrot.slane %v3092_v51, 5 }
 0x154   : > { %3631 = vmatpush.bf16.msrb.mxu0 %v5016_v25  ;;  %v2664_v63 = vsel %vm5522_vm6, %v2662_v44, %v2663_v1  ;;  %v3105_v61 = vor.u32 %v3104_v55, %v5993_v52  ;;  %v2333_v4 = vshll.u32 %v5996_v2, 16  ;;  %v2661_v14 = vsel %vm5522_vm6, %v4616_v45, %v2660_v32  ;;  %v2621_v30 = vld [vmem:[#allocation2 + $0x24] sm:$0xe] }
 0x155   : > { %2812 = vmatmul.bf16.vlgmr.msrb.gmra.mxu3 %v2740_v31  ;;  %v1763_v58 = vpop.f32.mrf.mxu2  ;;  %v3108_v26 = vshll.u32 %v6004_v3, 16  ;;  %v2727_v9 = vunpack.c.l.b16 %v2664_v63  ;;  %v2320_v47 = vor.u32 %v2319_v60, %v2316_v22  ;;  %v2331_v6 = vrot.slane %v2330_v40, 4  ;;  %v2252_v22 = vld [vmem:[#allocation2 + $0x38] sm:$0x1] }
 0x156   : > { %v1616_v36 = vpop.f32.mrf.mxu1  ;;  %v3095_v13 = vor.u32 %v3094_v54, %v3091_v50  ;;  %v3106_v15 = vrot.slane %v3105_v61, 4  ;;  %v2726_v17 = vunpack.c.l.b16 %v2661_v14  ;;  %v2335_v31 = vrot.slane %v2333_v4, 5 }
 0x157   : > { %v1990_v48 = vpop.f32.mrf.mxu3  ;;  %v1762_v56 = vadd.f32 %v1761_v12, %v1616_v36  ;;  %5045 = vmatpush.bf16.msra.mxu2 %v5014_v8  ;;  %v3110_v21 = vrot.slane %v3108_v26, 5  ;;  %v2667_v32 = vrot.slane %v5965_v11, 5  ;;  %v2321_v33 = vrot.slane %v2320_v47, 4  ;;  %v3442_v47 = vld [vmem:[#allocation2 + $0x18] sm:$0xe] }
 0x158   : > { %3632 = vmatpush.bf16.msrb.mxu0 %v5015_v34  ;;  %v2741_v19 = vpack.c.b16 %v2727_v9, %v2726_v17  ;;  %v2336_v35 = vsel %vm5255_vm2, %v2331_v6, %v2335_v31  ;;  %v3096_v37 = vrot.slane %v3095_v13, 4  ;;  %v2347_v41 = vshll.u32 %v6016_v57, 16  ;;  %v6043_v13 = vld [vmem:[#allocation2 + $0x40] sm:$0xf] }
 0x159   : > { %v6001_v53 = vadd.f32 %v1990_v48, %v1762_v56  ;;  %v4996_v23 = vld [vmem:[#allocation2 + $0x6c] sm:$0xff]  ;;  %v3111_v39 = vsel %vm5255_vm2, %v3106_v15, %v3110_v21  ;;  %v2351_v10 = vshrl.u32 %v6016_v57, 16  ;;  %v2326_v11 = vsel %vm5255_vm2, %v2321_v33, %v5991_v20 }
 0x15a   : > { %2184 = vmatmul.bf16.vlgmr.msrb.gmra.mxu1 %v4957_v59  ;;  %2567 = vmatmul.bf16.gmra.mxu2 %v2491_v0  ;;  %v2479_v29 = vunpack.c.l.b16 %v2336_v35  ;;  %v3101_v42 = vsel %vm5255_vm2, %v3096_v37, %v5993_v52  ;;  %v2669_v43 = vrot.slane %v2667_v32, 4  ;;  %v3298_v34 = vunpack.c.l.b16 %v3111_v39  ;;  %v2253_v39 = vld [vmem:[#allocation2 + $0x3c] sm:$0xf] }
 0x15b   : > { %3042 = vmatmul.bf16.gmra.mxu0 %v4996_v23  ;;  %5046 = vmatpush.bf16.msra.mxu2 %v5013_v5  ;;  %v2338_v44 = vshrl.u32 %v2250_v27, 16  ;;  %v2341_v62 = vshll.u32 %v2250_v27, 16  ;;  %v2478_v48 = vunpack.c.l.b16 %v2326_v11  ;;  %v2670_v49 = vrot.slane %v5996_v2, 5 }
 0x15c   : > { %3633 = vmatpush.bf16.msrb.mxu0 %v5014_v8  ;;  %v2349_v51 = vrot.slane %v2347_v41, 5  ;;  %v2353_v55 = vrot.slane %v2351_v10, 4  ;;  %v3297_v59 = vunpack.c.l.b16 %v3101_v42  ;;  %v4617_v45 = vrot.slane %v2621_v30, 9  ;;  %v2622_v42 = vld [vmem:[#allocation2 + $0x30] sm:$0xe] }
 0x15d   : > { %v1766_v28 = vpop.f32.mrf.mxu2  ;;  %v2492_v52 = vpack.c.b16 %v2479_v29, %v2478_v48  ;;  %v2671_v1 = vsel %vm5522_vm6, %v2669_v43, %v2670_v49  ;;  %v2340_v60 = vrot.slane %v2338_v44, 4  ;;  %v2343_v2 = vrot.slane %v2341_v62, 5 }
 0x15e   : > { %v1618_v38 = vpop.f32.mrf.mxu1  ;;  %v3313_v23 = vpack.c.b16 %v3298_v34, %v3297_v59  ;;  %v2354_v40 = vor.u32 %v2353_v55, %v2349_v51  ;;  %v3476_v63 = vrot.slane %v5967_v18, 5  ;;  %v2668_v50 = vsel %vm5522_vm6, %v4617_v45, %v2667_v32 }
 0x15f   : > { %v1992_v12 = vpop.f32.mrf.mxu3  ;;  %v1764_v16 = vadd.f32 %v1763_v58, %v1618_v38  ;;  %v4958_v58 = vld [vmem:[#allocation2 + $0x18] sm:$0xff]  ;;  %v2729_v54 = vunpack.c.l.b16 %v2671_v1  ;;  %v2357_v61 = vshll.u32 %v2252_v22, 16  ;;  %v2344_v4 = vor.u32 %v2343_v2, %v2340_v60 }
 0x160   : > { %3634 = vmatpush.bf16.msrb.mxu0 %v5013_v5  ;;  %v2728_v5 = vunpack.c.l.b16 %v2668_v50  ;;  %v2355_v9 = vrot.slane %v2354_v40, 4  ;;  %v3478_v6 = vrot.slane %v3476_v63, 4  ;;  %v4799_v21 = vrot.slane %v3442_v47, 9 }
 0x161   : > { %v6019_v25 = vadd.f32 %v1992_v12, %v1764_v16  ;;  %v2359_v16 = vrot.slane %v2357_v61, 5  ;;  %v2345_v31 = vrot.slane %v2344_v4, 4  ;;  %v2674_v32 = vrot.slane %v6016_v57, 5 }
 0x162   : > { %v2742_v18 = vpack.c.b16 %v2729_v54, %v2728_v5  ;;  %v2371_v35 = vshll.u32 %v6043_v13, 16  ;;  %v2375_v37 = vshrl.u32 %v6043_v13, 16  ;;  %v3477_v27 = vsel %vm5522_vm6, %v4799_v21, %v3476_v63  ;;  %v6069_v5 = vld [vmem:[#allocation2 + $0x4c] sm:$0xf]  ;;  %v2256_v21 = vld [vmem:[#allocation2 + $0x48] sm:$0xf] }
 0x163   : > { %v2676_v10 = vrot.slane %v2674_v32, 4  ;;  %v2362_v43 = vshrl.u32 %v2253_v39, 16  ;;  %v2365_v34 = vshll.u32 %v2253_v39, 16  ;;  %v3547_v49 = vunpack.c.l.b16 %v3477_v27  ;;  %v2623_v39 = vld [vmem:[#allocation2 + $0x3c] sm:$0xe] }
 0x164   : > { %v2373_v30 = vrot.slane %v2371_v35, 5  ;;  %v2377_v44 = vrot.slane %v2375_v37, 4  ;;  %v4618_v59 = vrot.slane %v2622_v42, 9 }
 0x165   : > { %2817 = vmatmul.bf16.gmra.mxu3 %v2741_v19  ;;  %v1768_v20 = vpop.f32.mrf.mxu2  ;;  %v2360_v19 = vsel %vm5255_vm2, %v2355_v9, %v2359_v16  ;;  %v2364_v1 = vrot.slane %v2362_v43, 4 }
 0x166   : > { %v1621_v46 = vpop.f32.mrf.mxu1  ;;  %v2481_v41 = vunpack.c.l.b16 %v2360_v19  ;;  %v2378_v60 = vor.u32 %v2377_v44, %v2373_v30  ;;  %v2675_v2 = vsel %vm5522_vm6, %v4618_v59, %v2674_v32  ;;  %v4619_v44 = vrot.slane %v2623_v39, 9  ;;  %v4961_v39 = vld [vmem:[#allocation2 + $0x3c] sm:$0xff] }
 0x167   : > { %v1995_v36 = vpop.f32.mrf.mxu3  ;;  %v1767_v56 = vadd.f32 %v1766_v28, %v1621_v46  ;;  %v3479_v28 = vrot.slane %v6004_v3, 5  ;;  %v2350_v3 = vsel %vm5255_vm2, %v2345_v31, %v2349_v51  ;;  %v2677_v51 = vrot.slane %v2252_v22, 5 }
 0x168   : > { %v6034_v0 = vpop.f32.mrf.mxu0  ;;  %v2480_v48 = vunpack.c.l.b16 %v2350_v3  ;;  %v2379_v61 = vrot.slane %v2378_v60, 4  ;;  %v2399_v31 = vshrl.u32 %v6069_v5, 16  ;;  %v2386_v3 = vshrl.u32 %v2256_v21, 16 }
 0x169   : > { %v6038_v8 = vadd.f32 %v1995_v36, %v1767_v56  ;;  %v3480_v33 = vsel %vm5522_vm6, %v3478_v6, %v3479_v28  ;;  %v4959_v36 = vld [vmem:[#allocation2 + $0x24] sm:$0xff]  ;;  %v2678_v45 = vsel %vm5522_vm6, %v2676_v10, %v2677_v51  ;;  %v2395_v28 = vshll.u32 %v6069_v5, 16 }
 0x16a   : > { %2189 = vmatmul.bf16.gmra.mxu1 %v4958_v58  ;;  %2572 = vmatmul.bf16.gmra.mxu2 %v2492_v52  ;;  %v3548_v57 = vunpack.c.l.b16 %v3480_v33  ;;  %v2255_v52 = vld [vmem:[#allocation2 + $0x44] sm:$0x1]  ;;  %v2731_v22 = vunpack.c.l.b16 %v2678_v45 }
 0x16b   : > { %3385 = vmatmul.bf16.vlgmr.msra.gmra.mxu0 %v3313_v23  ;;  %v2367_v23 = vrot.slane %v2365_v34, 5  ;;  %v2381_v40 = vshll.u32 %v2255_v52, 16  ;;  %v2397_v27 = vrot.slane %v2395_v28, 5  ;;  %v2684_v43 = vrot.slane %v2255_v52, 5 }
 0x16c   : > { %v3563_v58 = vpack.c.b16 %v3548_v57, %v3547_v49 }
 0x16d   : > { %v1771_v12 = vpop.f32.mrf.mxu2  ;;  %v2368_v54 = vor.u32 %v2367_v23, %v2364_v1  ;;  %v2383_v47 = vrot.slane %v2381_v40, 5  ;;  %v6090_v23 = vld [vmem:[#allocation2 + $0x58] sm:$0xf] }
 0x16e   : > { %v1623_v14 = vpop.f32.mrf.mxu1 }
 0x16f   : > { %v1997_v26 = vpop.f32.mrf.mxu3  ;;  %v1769_v38 = vadd.f32 %v1768_v20, %v1623_v14  ;;  %v2493_v20 = vpack.c.b16 %v2481_v41, %v2480_v48  ;;  %v2384_v16 = vsel %vm5255_vm2, %v2379_v61, %v2383_v47  ;;  %v2401_v41 = vrot.slane %v2399_v31, 4  ;;  %v2259_v61 = vld [vmem:[#allocation2 + $0x54] sm:$0xf] }
 0x170   : > { %v6045_v15 = vpop.f32.mrf.mxu0  ;;  %v2483_v19 = vunpack.c.l.b16 %v2384_v16  ;;  %v2413_v28 = vshll.u32 %v2259_v61, 16 }
 0x171   : > { %v6048_v17 = vadd.f32 %v1997_v26, %v1769_v38  ;;  %v2730_v26 = vunpack.c.l.b16 %v2675_v2  ;;  %v2402_v49 = vor.u32 %v2401_v41, %v2397_v27 }
 0x173   : > { %v2743_v38 = vpack.c.b16 %v2731_v22, %v2730_v26  ;;  %v2403_v1 = vrot.slane %v2402_v49, 4 }
 0x175   : > { %2822 = vmatmul.bf16.gmra.mxu3 %v2742_v18  ;;  %v1773_v46 = vpop.f32.mrf.mxu2  ;;  %v2369_v18 = vrot.slane %v2368_v54, 4 }
 0x177   : > { %v1626_v11 = vpop.f32.mrf.mxu1  ;;  %v2374_v32 = vsel %vm5255_vm2, %v2369_v18, %v2373_v30  ;;  %v2410_v18 = vshrl.u32 %v2259_v61, 16  ;;  %v2695_v61 = vrot.slane %v6090_v23, 5 }
 0x178   : > { %v2000_v29 = vpop.f32.mrf.mxu3  ;;  %v1772_v62 = vadd.f32 %v1771_v12, %v1626_v11  ;;  %v6061_v55 = vpop.f32.mrf.mxu0  ;;  %v2681_v12 = vrot.slane %v6043_v13, 5  ;;  %v2389_v13 = vshll.u32 %v2256_v21, 16  ;;  %v4960_v11 = vld [vmem:[#allocation2 + $0x30] sm:$0xff] }
 0x17a   : > { %v6063_v56 = vadd.f32 %v2000_v29, %v1772_v62  ;;  %2194 = vmatmul.bf16.gmra.mxu1 %v4959_v36  ;;  %2577 = vmatmul.bf16.gmra.mxu2 %v2493_v20  ;;  %v2683_v33 = vrot.slane %v2681_v12, 4  ;;  %v2482_v29 = vunpack.c.l.b16 %v2374_v32  ;;  %v2258_v62 = vld [vmem:[#allocation2 + $0x50] sm:$0x1]  ;;  %v2388_v36 = vrot.slane %v2386_v3, 4 }
 0x17b   : > { %3635 = vmatmul.bf16.vlgmr.msrb.gmra.mxu0 %v3563_v58  ;;  %v2391_v48 = vrot.slane %v2389_v13, 5  ;;  %v2682_v51 = vsel %vm5522_vm6, %v4619_v44, %v2681_v12  ;;  %v2405_v20 = vshll.u32 %v2258_v62, 16  ;;  %v2624_v13 = vld [vmem:[#allocation2 + $0x48] sm:$0xe] }
 0x17c   : > { %v2494_v30 = vpack.c.b16 %v2483_v19, %v2482_v29  ;;  %v2732_v40 = vunpack.c.l.b16 %v2682_v51  ;;  %v2415_v29 = vrot.slane %v2413_v28, 5 }
 0x17d   : > { %v1776_v14 = vpop.f32.mrf.mxu2  ;;  %v2392_v45 = vor.u32 %v2391_v48, %v2388_v36 }
 0x17f   : > { %v1628_v63 = vpop.f32.mrf.mxu1  ;;  %v2393_v26 = vrot.slane %v2392_v45, 4 }
 0x180   : > { %v2002_v50 = vpop.f32.mrf.mxu3  ;;  %v1774_v4 = vadd.f32 %v1773_v46, %v1628_v63  ;;  %v6071_v9 = vpop.f32.mrf.mxu0  ;;  %v2685_v46 = vsel %vm5522_vm6, %v2683_v33, %v2684_v43  ;;  %v2407_v63 = vrot.slane %v2405_v20, 5 }
 0x181   : > { %v2733_v58 = vunpack.c.l.b16 %v2685_v46  ;;  %v2398_v12 = vsel %vm5255_vm2, %v2393_v26, %v2397_v27 }
 0x182   : > { %v6073_v6 = vadd.f32 %v2002_v50, %v1774_v4  ;;  %v2419_v4 = vshll.u32 %v6090_v23, 16  ;;  %v2408_v47 = vsel %vm5255_vm2, %v2403_v1, %v2407_v63  ;;  %v2484_v3 = vunpack.c.l.b16 %v2398_v12  ;;  %v2262_v1 = vld [vmem:[#allocation2 + $0x60] sm:$0xf] }
 0x183   : > { %v2744_v54 = vpack.c.b16 %v2733_v58, %v2732_v40  ;;  %v2485_v16 = vunpack.c.l.b16 %v2408_v47 }
 0x184   : > { %v2421_v31 = vrot.slane %v2419_v4, 5  ;;  %v2434_v4 = vshrl.u32 %v2262_v1, 16 }
 0x185   : > { %2827 = vmatmul.bf16.gmra.mxu3 %v2743_v38  ;;  %v1778_v10 = vpop.f32.mrf.mxu2  ;;  %v2688_v38 = vrot.slane %v6069_v5, 5  ;;  %v2691_v5 = vrot.slane %v2258_v62, 5  ;;  %v2495_v27 = vpack.c.b16 %v2485_v16, %v2484_v3 }
 0x187   : > { %v1631_v35 = vpop.f32.mrf.mxu1  ;;  %v2690_v33 = vrot.slane %v2688_v38, 4 }
 0x188   : > { %v2005_v37 = vpop.f32.mrf.mxu3  ;;  %v1777_v57 = vadd.f32 %v1776_v14, %v1631_v35  ;;  %v6082_v42 = vpop.f32.mrf.mxu0  ;;  %v2423_v14 = vshrl.u32 %v6090_v23, 16 }
 0x189   : > { %v2692_v44 = vsel %vm5522_vm6, %v2690_v33, %v2691_v5 }
 0x18a   : > { %v6084_v34 = vadd.f32 %v2005_v37, %v1777_v57  ;;  %2199 = vmatmul.bf16.gmra.mxu1 %v4960_v11  ;;  %2582 = vmatmul.bf16.gmra.mxu2 %v2494_v30  ;;  %v2425_v21 = vrot.slane %v2423_v14, 4  ;;  %v2261_v57 = vld [vmem:[#allocation2 + $0x5c] sm:$0x1]  ;;  %v4620_v30 = vrot.slane %v2624_v13, 9  ;;  %v2735_v48 = vunpack.c.l.b16 %v2692_v44  ;;  %v2264_v13 = vld [vmem:[#allocation2 + $0x68] sm:$0x1] }
 0x18b   : > { %v2429_v46 = vshll.u32 %v2261_v57, 16  ;;  %v2437_v14 = vshll.u32 %v2262_v1, 16 }
 0x18c   : > { %v2426_v43 = vor.u32 %v2425_v21, %v2421_v31  ;;  %v2689_v36 = vsel %vm5522_vm6, %v4620_v30, %v2688_v38  ;;  %v2625_v21 = vld [vmem:[#allocation2 + $0x54] sm:$0xe] }
 0x18d   : > { %v1781_v2 = vpop.f32.mrf.mxu2  ;;  %v2431_v45 = vrot.slane %v2429_v46, 5  ;;  %v2453_v46 = vshll.u32 %v2264_v13, 16 }
 0x18e   : > { %v2427_v62 = vrot.slane %v2426_v43, 4 }
 0x18f   : > { %v1633_v59 = vpop.f32.mrf.mxu1 }
 0x190   : > { %v2007_v52 = vpop.f32.mrf.mxu3  ;;  %v1779_v60 = vadd.f32 %v1778_v10, %v1633_v59  ;;  %v6092_v22 = vpop.f32.mrf.mxu0  ;;  %v2412_v10 = vrot.slane %v2410_v18, 4  ;;  %v2697_v18 = vrot.slane %v2695_v61, 4 }
 0x192   : > { %v6094_v50 = vadd.f32 %v2007_v52, %v1779_v60  ;;  %v2416_v49 = vor.u32 %v2415_v29, %v2412_v10  ;;  %v2734_v52 = vunpack.c.l.b16 %v2689_v36  ;;  %v6115_v60 = vld [vmem:[#allocation2 + $0x64] sm:$0xf]  ;;  %v2698_v10 = vrot.slane %v2261_v57, 5 }
 0x193   : > { %v2443_v26 = vshll.u32 %v6115_v60, 16  ;;  %v2447_v47 = vshrl.u32 %v6115_v60, 16  ;;  %v4621_v29 = vrot.slane %v2625_v21, 9 }
 0x194   : > { %v2745_v40 = vpack.c.b16 %v2735_v48, %v2734_v52  ;;  %v2417_v63 = vrot.slane %v2416_v49, 4  ;;  %v2699_v43 = vsel %vm5522_vm6, %v2697_v18, %v2698_v10 }
 0x195   : > { %2832 = vmatmul.bf16.gmra.mxu3 %v2744_v54  ;;  %v1783_v37 = vpop.f32.mrf.mxu2  ;;  %v2432_v54 = vsel %vm5255_vm2, %v2427_v62, %v2431_v45  ;;  %v2445_v33 = vrot.slane %v2443_v26, 5  ;;  %v2696_v36 = vsel %vm5522_vm6, %v4621_v29, %v2695_v61  ;;  %v2737_v48 = vunpack.c.l.b16 %v2699_v43 }
 0x196   : > { %v2422_v38 = vsel %vm5255_vm2, %v2417_v63, %v2421_v31  ;;  %v2487_v12 = vunpack.c.l.b16 %v2432_v54  ;;  %v2736_v1 = vunpack.c.l.b16 %v2696_v36  ;;  %v3443_v36 = vld [vmem:[#allocation2 + $0x24] sm:$0xe] }
 0x197   : > { %v1636_v32 = vpop.f32.mrf.mxu1  ;;  %v2486_v3 = vunpack.c.l.b16 %v2422_v38 }
 0x198   : > { %v2010_v19 = vpop.f32.mrf.mxu3  ;;  %v1782_v35 = vadd.f32 %v1781_v2, %v1636_v32  ;;  %v6103_v41 = vpop.f32.mrf.mxu0  ;;  %v2436_v32 = vrot.slane %v2434_v4, 4  ;;  %v2746_v63 = vpack.c.b16 %v2737_v48, %v2736_v1  ;;  %v2702_v4 = vrot.slane %v6115_v60, 5 }
 0x199   : > { %v2496_v31 = vpack.c.b16 %v2487_v12, %v2486_v3  ;;  %v4800_v1 = vrot.slane %v3443_v36, 9  ;;  %v3072_v36 = vld [vmem:[#allocation2 + $0x38] sm:$0x1] }
 0x19a   : > { %v6105_v11 = vadd.f32 %v2010_v19, %v1782_v35  ;;  %2204 = vmatmul.bf16.gmra.mxu1 %v4961_v39  ;;  %2587 = vmatmul.bf16.gmra.mxu2 %v2495_v27  ;;  %v2439_v19 = vrot.slane %v2437_v14, 5  ;;  %v2449_v35 = vrot.slane %v2447_v47, 4  ;;  %v4962_v39 = vld [vmem:[#allocation2 + $0x48] sm:$0xff]  ;;  %v2626_v14 = vld [vmem:[#allocation2 + $0x60] sm:$0xe] }
 0x19b   : > { %v4622_v18 = vrot.slane %v2626_v14, 9 }
 0x19c   : > { %v2440_v30 = vor.u32 %v2439_v19, %v2436_v32  ;;  %v2450_v44 = vor.u32 %v2449_v35, %v2445_v33  ;;  %v4963_v19 = vld [vmem:[#allocation2 + $0x54] sm:$0xff]  ;;  %v3068_v35 = vld [vmem:[#allocation2 + $0x28] sm:$0xf] }
 0x19d   : > { %v1786_v59 = vpop.f32.mrf.mxu2  ;;  %v2703_v60 = vsel %vm5522_vm6, %v4622_v18, %v2702_v4  ;;  %v3483_v3 = vrot.slane %v3068_v35, 5 }
 0x19e   : > { %v2441_v57 = vrot.slane %v2440_v30, 4  ;;  %v2738_v10 = vunpack.c.l.b16 %v2703_v60 }
 0x19f   : > { %v1638_v51 = vpop.f32.mrf.mxu1  ;;  %v3485_v30 = vrot.slane %v3483_v3, 4 }
 0x1a0   : > { %v6111_v20 = vpop.f32.mrf.mxu3  ;;  %v6113_v58 = vadd.f32 %v1783_v37, %v1638_v51  ;;  %v6117_v2 = vpop.f32.mrf.mxu0  ;;  %v2451_v51 = vrot.slane %v2450_v44, 4  ;;  %v2446_v54 = vsel %vm5255_vm2, %v2441_v57, %v2445_v33  ;;  %v3067_v57 = vld [vmem:[#allocation2 + $0x24] sm:$0xf] }
 0x1a1   : > { %v2488_v26 = vunpack.c.l.b16 %v2446_v54  ;;  %v3113_v54 = vshrl.u32 %v3067_v57, 16 }
 0x1a5   : > { %2837 = vmatmul.bf16.gmra.mxu3 %v2745_v40  ;;  %v1788_v37 = vpop.f32.mrf.mxu2 }
 0x1a7   : > { %v1641_v16 = vpop.f32.mrf.mxu1 }
 0x1a8   : > { %v2015_v28 = vpop.f32.mrf.mxu3  ;;  %v1787_v23 = vadd.f32 %v1786_v59, %v1641_v16  ;;  %v6126_v5 = vpop.f32.mrf.mxu0  ;;  %v2455_v59 = vrot.slane %v2453_v46, 5  ;;  %v2704_v16 = vrot.slane %v2702_v4, 4  ;;  %v3116_v4 = vshll.u32 %v3067_v57, 16 }
 0x1aa   : > { %v6128_v27 = vadd.f32 %v2015_v28, %v1787_v23  ;;  %2209 = vmatmul.bf16.gmra.mxu1 %v4962_v39  ;;  %2592 = vmatmul.bf16.gmra.mxu2 %v2496_v31  ;;  %v2456_v61 = vsel %vm5255_vm2, %v2451_v51, %v2455_v59  ;;  %v2705_v28 = vrot.slane %v2264_v13, 5  ;;  %v3069_v31 = vld [vmem:[#allocation2 + $0x2c] sm:$0x1]  ;;  %v3122_v51 = vshll.u32 %v3068_v35, 16 }
 0x1ab   : > { %v2489_v47 = vunpack.c.l.b16 %v2456_v61  ;;  %v3126_v59 = vshrl.u32 %v3068_v35, 16  ;;  %v3484_v61 = vsel %vm5522_vm6, %v4800_v1, %v3483_v3  ;;  %v3115_v35 = vrot.slane %v3113_v54, 4 }
 0x1ac   : > { %v2706_v39 = vsel %vm5522_vm6, %v2704_v16, %v2705_v28  ;;  %v3124_v14 = vrot.slane %v3122_v51, 5  ;;  %v4964_v28 = vld [vmem:[#allocation2 + $0x60] sm:$0xff] }
 0x1ad   : > { %v1791_v45 = vpop.f32.mrf.mxu2  ;;  %v2739_v13 = vunpack.c.l.b16 %v2706_v39 }
 0x1af   : > { %v1643_v49 = vpop.f32.mrf.mxu1 }
 0x1b0   : > { %v6134_v62 = vpop.f32.mrf.mxu3  ;;  %v6136_v52 = vadd.f32 %v1788_v37, %v1643_v49  ;;  %v6138_v40 = vpop.f32.mrf.mxu0  ;;  %v2497_v37 = vpack.c.b16 %v2489_v47, %v2488_v26  ;;  %v3486_v49 = vrot.slane %v3069_v31, 5  ;;  %v3128_v26 = vrot.slane %v3126_v59, 4 }
 0x1b1   : > { %6522 = vst [vmem:[#allocation3_spill] sm:$0xff] %v6138_v40 }
 0x1b2   : > { %v3129_v60 = vor.u32 %v3128_v26, %v3124_v14 }
 0x1b5   : > { %2842 = vmatmul.bf16.gmra.mxu3 %v2746_v63  ;;  %v1793_v32 = vpop.f32.mrf.mxu2  ;;  %v3487_v63 = vsel %vm5522_vm6, %v3485_v30, %v3486_v49  ;;  %v3444_v49 = vld [vmem:[#allocation2 + $0x30] sm:$0xe] }
 0x1b6   : > { %v3550_v47 = vunpack.c.l.b16 %v3487_v63 }
 0x1b7   : > { %v1646_v38 = vpop.f32.mrf.mxu1 }
 0x1b8   : > { %v2020_v12 = vpop.f32.mrf.mxu3  ;;  %v1792_v21 = vadd.f32 %v1791_v45, %v1646_v38  ;;  %v6145_v23 = vpop.f32.mrf.mxu0  ;;  %v2747_v45 = vpack.c.b16 %v2739_v13, %v2738_v10  ;;  %v3132_v10 = vshll.u32 %v3069_v31, 16  ;;  %v3070_v31 = vld [vmem:[#allocation2 + $0x30] sm:$0xf] }
 0x1b9   : > { %6523 = vst [vmem:[#allocation4_spill] sm:$0xff] %v6145_v23 }
 0x1ba   : > { %v6147_v33 = vadd.f32 %v2020_v12, %v1792_v21  ;;  %2214 = vmatmul.bf16.gmra.mxu1 %v4963_v19  ;;  %2597 = vmatmul.bf16.gmra.mxu2 %v2497_v37  ;;  %v3549_v21 = vunpack.c.l.b16 %v3484_v61  ;;  %v3118_v37 = vrot.slane %v3116_v4, 5  ;;  %v3134_v51 = vrot.slane %v3132_v10, 5 }
 0x1bc   : > { %v3564_v3 = vpack.c.b16 %v3550_v47, %v3549_v21  ;;  %v3119_v30 = vor.u32 %v3118_v37, %v3115_v35  ;;  %v4801_v47 = vrot.slane %v3444_v49, 9 }
 0x1bd   : > { %v1796_v46 = vpop.f32.mrf.mxu2 }
 0x1be   : > { %v3120_v4 = vrot.slane %v3119_v30, 4 }
 0x1bf   : > { %v1648_v29 = vpop.f32.mrf.mxu1 }
 0x1c0   : > { %v6153_v43 = vpop.f32.mrf.mxu3  ;;  %v6155_v44 = vadd.f32 %v1793_v32, %v1648_v29  ;;  %v6157_v48 = vpop.f32.mrf.mxu0  ;;  %v3071_v32 = vld [vmem:[#allocation2 + $0x34] sm:$0xf]  ;;  %v5028_v29 = vld [vmem:[%s6487_s4 + $0x38] sm:$0xff] }
 0x1c1   : > { %6524 = vst [vmem:[#allocation5_spill] sm:$0xff] %v6157_v48  ;;  %v3490_v13 = vrot.slane %v3071_v32, 5  ;;  %5047 = vmatpush.bf16.msra.mxu3 %v5028_v29  ;;  %3829 = vmatpush.bf16.msra.mxu0 %v5028_v29  ;;  %v3146_v63 = vshll.u32 %v3071_v32, 16  ;;  %v3150_v54 = vshrl.u32 %v3071_v32, 16  ;;  %v3140_v32 = vshll.u32 %v3070_v31, 16 }
 0x1c3   : > { %v3492_v59 = vrot.slane %v3490_v13, 4  ;;  %v3148_v35 = vrot.slane %v3146_v63, 5  ;;  %v3152_v37 = vrot.slane %v3150_v54, 4  ;;  %v3156_v54 = vshll.u32 %v3072_v36, 16 }
 0x1c5   : > { %2847 = vmatmul.bf16.gmra.mxu3 %v2747_v45  ;;  %v1798_v16 = vpop.f32.mrf.mxu2 }
 0x1c7   : > { %v1651_v38 = vpop.f32.mrf.mxu1 }
 0x1c8   : > { %v2025_v12 = vpop.f32.mrf.mxu3  ;;  %v1797_v18 = vadd.f32 %v1796_v46, %v1651_v38  ;;  %v6163_v19 = vpop.f32.mrf.mxu0  ;;  %v3130_v46 = vrot.slane %v3129_v60, 4  ;;  %v3493_v38 = vrot.slane %v3072_v36, 5  ;;  %v5027_v60 = vld [vmem:[%s6487_s4 + $0x30] sm:$0xff] }
 0x1c9   : > { %6525 = vst [vmem:[#allocation6_spill] sm:$0xff] %v6163_v19  ;;  %3830 = vmatpush.bf16.msra.mxu0 %v5027_v60  ;;  %5048 = vmatpush.bf16.msra.mxu3 %v5027_v60  ;;  %v3445_v60 = vld [vmem:[#allocation2 + $0x3c] sm:$0xe] }
 0x1ca   : > { %v6165_v39 = vadd.f32 %v2025_v12, %v1797_v18  ;;  %2219 = vmatmul.bf16.gmra.mxu1 %v4964_v28  ;;  %3640 = vmatmul.bf16.vlgmr.msra.gmra.mxu2 %v3564_v3  ;;  %v3135_v26 = vsel %vm5255_vm2, %v3130_v46, %v3134_v51  ;;  %v3125_v12 = vsel %vm5255_vm2, %v3120_v4, %v3124_v14  ;;  %v3137_v28 = vshrl.u32 %v3070_v31, 16  ;;  %v5026_v14 = vld [vmem:[%s6487_s4 + $0x28] sm:$0xff] }
 0x1cb   : > { %v3491_v18 = vsel %vm5522_vm6, %v4801_v47, %v3490_v13  ;;  %v3300_v21 = vunpack.c.l.b16 %v3135_v26  ;;  %v3299_v3 = vunpack.c.l.b16 %v3125_v12  ;;  %v3153_v51 = vor.u32 %v3152_v37, %v3148_v35 }
 0x1cc   : > { %v3551_v29 = vunpack.c.l.b16 %v3491_v18  ;;  %v3139_v49 = vrot.slane %v3137_v28, 4  ;;  %v3158_v12 = vrot.slane %v3156_v54, 5  ;;  %v3075_v18 = vld [vmem:[#allocation2 + $0x44] sm:$0x1] }
 0x1cd   : > { %v6172_v1 = vpop.f32.mrf.mxu2  ;;  %v3314_v46 = vpack.c.b16 %v3300_v21, %v3299_v3  ;;  %3831 = vmatpush.bf16.msra.mxu0 %v5026_v14  ;;  %5049 = vmatpush.bf16.msra.mxu3 %v5026_v14  ;;  %v3154_v47 = vrot.slane %v3153_v51, 4  ;;  %v3073_v14 = vld [vmem:[#allocation2 + $0x3c] sm:$0xf]  ;;  %v4802_v51 = vrot.slane %v3445_v60, 9 }
 0x1ce   : > { %v3161_v54 = vshrl.u32 %v3073_v14, 16 }
 0x1cf   : > { %v1653_v57 = vpop.f32.mrf.mxu1  ;;  %v3159_v37 = vsel %vm5255_vm2, %v3154_v47, %v3158_v12  ;;  %v5023_v47 = vld [vmem:[%s6487_s4 + $0x10] sm:$0xff] }
 0x1d0   : > { %v6170_v45 = vadd.f32 %v1798_v16, %v1653_v57  ;;  %v6174_v61 = vpop.f32.mrf.mxu0  ;;  %v3494_v16 = vsel %vm5522_vm6, %v3492_v59, %v3493_v38  ;;  %v3142_v57 = vrot.slane %v3140_v32, 5  ;;  %v3074_v59 = vld [vmem:[#allocation2 + $0x40] sm:$0xf] }
 0x1d1   : > { %6526 = vst [vmem:[#allocation7_spill] sm:$0xff] %v6174_v61  ;;  %v3552_v10 = vunpack.c.l.b16 %v3494_v16  ;;  %v3497_v4 = vrot.slane %v3074_v59, 5  ;;  %v5025_v38 = vld [vmem:[%s6487_s4 + $0x20] sm:$0xff]  ;;  %v5024_v16 = vld [vmem:[%s6487_s4 + $0x18] sm:$0xff]  ;;  %v3077_v61 = vld [vmem:[#allocation2 + $0x4c] sm:$0xf] }
 0x1d2   : > { %v3143_v26 = vor.u32 %v3142_v57, %v3139_v49  ;;  %3832 = vmatpush.bf16.msra.mxu0 %v5025_v38  ;;  %5050 = vmatpush.bf16.msra.mxu3 %v5025_v38  ;;  %v3302_v57 = vunpack.c.l.b16 %v3159_v37  ;;  %v6215_v38 = vpop.f32.mrf.mxu3 }
 0x1d3   : > { %v3565_v63 = vpack.c.b16 %v3552_v10, %v3551_v29  ;;  %v3499_v36 = vrot.slane %v3497_v4, 4  ;;  %v3500_v10 = vrot.slane %v3075_v18, 5  ;;  %v3170_v29 = vshll.u32 %v3074_v59, 16 }
 0x1d4   : > { %v3144_v32 = vrot.slane %v3143_v26, 4  ;;  %v3164_v26 = vshll.u32 %v3073_v14, 16  ;;  %v3163_v14 = vrot.slane %v3161_v54, 4 }
 0x1d5   : > { %v6192_v30 = vpop.f32.mrf.mxu2 }
 0x1d6   : > { %v3149_v49 = vsel %vm5255_vm2, %v3144_v32, %v3148_v35  ;;  %3833 = vmatpush.bf16.msra.mxu0 %v5024_v16  ;;  %5051 = vmatpush.bf16.msra.mxu3 %v5024_v16  ;;  %v3172_v35 = vrot.slane %v3170_v29, 5 }
 0x1d7   : > { %v6190_v13 = vpop.f32.mrf.mxu1  ;;  %v3301_v12 = vunpack.c.l.b16 %v3149_v49  ;;  %v5022_v49 = vld [vmem:[%s6487_s4 + $0x8] sm:$0xff] }
 0x1d8   : > { %v6194_v31 = vpop.f32.mrf.mxu0 }
 0x1d9   : > { %6527 = vst [vmem:[#allocation8_spill] sm:$0xff] %v6194_v31  ;;  %v3166_v31 = vrot.slane %v3164_v26, 5  ;;  %v2225_v26 = vadd.f32 %v6190_v13, %v6001_v53  ;;  %v3198_v53 = vshrl.u32 %v3077_v61, 16 }
 0x1da   : > { %3390 = vmatmul.bf16.vlgmr.msra.gmra.mxu1 %v3314_v46  ;;  %3645 = vmatmul.bf16.gmra.mxu2 %v3565_v63  ;;  %v3174_v46 = vshrl.u32 %v3074_v59, 16  ;;  %v3501_v63 = vsel %vm5522_vm6, %v3499_v36, %v3500_v10  ;;  %v3498_v59 = vsel %vm5522_vm6, %v4802_v51, %v3497_v4  ;;  %v3504_v51 = vrot.slane %v3077_v61, 5 }
 0x1db   : > { %v3554_v37 = vunpack.c.l.b16 %v3501_v63  ;;  %3834 = vmatpush.bf16.msra.mxu0 %v5023_v47  ;;  %5052 = vmatpush.bf16.msra.mxu3 %v5023_v47  ;;  %v3553_v10 = vunpack.c.l.b16 %v3498_v59  ;;  %v5021_v63 = vld [vmem:[%s6487_s4] sm:$0xff]  ;;  %v3078_v47 = vld [vmem:[#allocation2 + $0x50] sm:$0x1]  ;;  %v2603_v13 = vadd.f32 %v6172_v1, %v2225_v26  ;;  %v3200_v1 = vrot.slane %v3198_v53, 4 }
 0x1dc   : > { %v3176_v32 = vrot.slane %v3174_v46, 4  ;;  %v3506_v59 = vrot.slane %v3504_v51, 4  ;;  %v3204_v53 = vshll.u32 %v3078_v47, 16 }
 0x1dd   : > { %v2568_v21 = vpop.f32.mrf.mxu2  ;;  %v3566_v46 = vpack.c.b16 %v3554_v37, %v3553_v10 }
 0x1de   : > { %v3177_v4 = vor.u32 %v3176_v32, %v3172_v35 }
 0x1df   : > { %v6202_v28 = vpop.f32.mrf.mxu1  ;;  %3835 = vmatpush.bf16.msra.mxu0 %v5022_v49  ;;  %5053 = vmatpush.bf16.msra.mxu3 %v5022_v49  ;;  %v3194_v49 = vshll.u32 %v3077_v61, 16 }
 0x1e0   : > { %v6206_v3 = vpop.f32.mrf.mxu0  ;;  %v3178_v54 = vrot.slane %v3177_v4, 4  ;;  %v2226_v4 = vadd.f32 %v6202_v28, %v6019_v25 }
 0x1e1   : > { %6528 = vst [vmem:[#allocation9_spill] sm:$0xff] %v6206_v3  ;;  %v3315_v3 = vpack.c.b16 %v3302_v57, %v3301_v12  ;;  %v3180_v57 = vshll.u32 %v3075_v18, 16 }
 0x1e2   : > { %v2604_v25 = vadd.f32 %v6192_v30, %v2226_v4 }
 0x1e3   : > { %3836 = vmatpush.bf16.msra.mxu0 %v5021_v63  ;;  %5054 = vmatpush.bf16.msra.mxu3 %v5021_v63 }
 0x1e5   : > { %v2570_v36 = vpop.f32.mrf.mxu2 }
 0x1e7   : > { %v2190_v60 = vpop.f32.mrf.mxu1 }
 0x1e8   : > { %v2227_v16 = vadd.f32 %v2190_v60, %v6038_v8  ;;  %v6223_v19 = vpop.f32.mrf.mxu0  ;;  %v3167_v8 = vor.u32 %v3166_v31, %v3163_v14  ;;  %v3446_v31 = vld [vmem:[#allocation2 + $0x48] sm:$0xe]  ;;  %v3507_v14 = vrot.slane %v3078_v47, 5 }
 0x1e9   : > { %v3076_v60 = vld [vmem:[#allocation2 + $0x48] sm:$0xf] }
 0x1ea   : > { %v6225_v29 = vadd.f32 %v2568_v21, %v2227_v16  ;;  %3395 = vmatmul.bf16.gmra.mxu1 %v3315_v3  ;;  %3650 = vmatmul.bf16.gmra.mxu2 %v3566_v46  ;;  %v2813_v21 = vpop.f32.mrf.mxu3  ;;  %v3182_v3 = vrot.slane %v3180_v57, 5  ;;  %v3168_v37 = vrot.slane %v3167_v8, 4  ;;  %v4803_v57 = vrot.slane %v3446_v31, 9 }
 0x1eb   : > { %v3508_v8 = vsel %vm5522_vm6, %v3506_v59, %v3507_v14  ;;  %v3185_v63 = vshrl.u32 %v3076_v60, 16  ;;  %v2853_v26 = vadd.f32 %v2813_v21, %v2603_v13 }
 0x1ec   : > { %v3183_v10 = vsel %vm5255_vm2, %v3178_v54, %v3182_v3  ;;  %v3188_v54 = vshll.u32 %v3076_v60, 16  ;;  %v3505_v61 = vsel %vm5522_vm6, %v4803_v57, %v3504_v51  ;;  %v3196_v3 = vrot.slane %v3194_v49, 5 }
 0x1ed   : > { %v2573_v32 = vpop.f32.mrf.mxu2  ;;  %v3187_v48 = vrot.slane %v3185_v63, 4  ;;  %v3555_v59 = vunpack.c.l.b16 %v3505_v61  ;;  %v3048_v49 = vadd.f32 %v6034_v0, %v2853_v26  ;;  %v6256_v63 = vld [vmem:[%s6489_s6] ss:$0 sm:$0xff]  ;;  %v3081_v0 = vld [vmem:[#allocation2 + $0x5c] sm:$0x1] }
 0x1ee   : > { %v3190_v14 = vrot.slane %v3188_v54, 5  ;;  %v3201_v40 = vor.u32 %v3200_v1, %v3196_v3  ;;  %v3447_v54 = vld [vmem:[#allocation2 + $0x54] sm:$0xe] }
 0x1ef   : > { %v2192_v12 = vpop.f32.mrf.mxu1  ;;  %v3426_v4 = vadd.f32 %v6223_v19, %v3048_v49 }
 0x1f0   : > { %v2228_v18 = vadd.f32 %v2192_v12, %v6048_v17  ;;  %v3388_v16 = vpop.f32.mrf.mxu0  ;;  %v3173_v17 = vsel %vm5255_vm2, %v3168_v37, %v3172_v35  ;;  %v3304_v12 = vunpack.c.l.b16 %v3183_v10  ;;  %v3080_v10 = vld [vmem:[#allocation2 + $0x58] sm:$0xf] }
 0x1f1   : > { %v3303_v28 = vunpack.c.l.b16 %v3173_v17  ;;  %v3511_v13 = vrot.slane %v3080_v10, 5  ;;  %v3202_v17 = vrot.slane %v3201_v40, 4 }
 0x1f2   : > { %v6238_v46 = vadd.f32 %v2570_v36, %v2228_v18  ;;  %v3556_v36 = vunpack.c.l.b16 %v3508_v8  ;;  %v2815_v60 = vpop.f32.mrf.mxu3 }
 0x1f3   : > { %v3316_v31 = vpack.c.b16 %v3304_v12, %v3303_v28  ;;  %v2854_v51 = vadd.f32 %v2815_v60, %v2604_v25  ;;  %v3206_v12 = vrot.slane %v3204_v53, 5  ;;  %v3513_v61 = vrot.slane %v3511_v13, 4 }
 0x1f4   : > { %v3567_v30 = vpack.c.b16 %v3556_v36, %v3555_v59  ;;  %v3218_v25 = vshll.u32 %v3080_v10, 16  ;;  %v3222_v28 = vshrl.u32 %v3080_v10, 16 }
 0x1f5   : > { %v2575_v37 = vpop.f32.mrf.mxu2  ;;  %v3049_v57 = vadd.f32 %v6045_v15, %v2854_v51  ;;  %v3207_v15 = vsel %vm5255_vm2, %v3202_v17, %v3206_v12 }
 0x1f6   : > { %v3306_v51 = vunpack.c.l.b16 %v3207_v15  ;;  %v3220_v49 = vrot.slane %v3218_v25, 5  ;;  %v3082_v15 = vld [vmem:[#allocation2 + $0x60] sm:$0xf]  ;;  %v3084_v25 = vld [vmem:[#allocation2 + $0x68] sm:$0x1] }
 0x1f7   : > { %v2195_v18 = vpop.f32.mrf.mxu1  ;;  %v3427_v47 = vadd.f32 %v3388_v16, %v3049_v57 }
 0x1f8   : > { %v2229_v35 = vadd.f32 %v2195_v18, %v6063_v56  ;;  %v3636_v23 = vpop.f32.mrf.mxu0  ;;  %v3191_v56 = vor.u32 %v3190_v14, %v3187_v48  ;;  %v3079_v48 = vld [vmem:[#allocation2 + $0x54] sm:$0xf] }
 0x1f9   : > { %v3676_v8 = vadd.f32 %v3636_v23, %v3426_v4  ;;  %v3514_v23 = vrot.slane %v3081_v0, 5  ;;  %v3209_v59 = vshrl.u32 %v3079_v48, 16  ;;  %v3212_v14 = vshll.u32 %v3079_v48, 16  ;;  %v3083_v48 = vld [vmem:[#allocation2 + $0x64] sm:$0xf] }
 0x1fa   : > { %v6249_v21 = vadd.f32 %v2573_v32, %v2229_v35  ;;  %3400 = vmatmul.bf16.gmra.mxu1 %v3316_v31  ;;  %3655 = vmatmul.bf16.gmra.mxu2 %v3567_v30  ;;  %v3192_v26 = vrot.slane %v3191_v56, 4  ;;  %v4804_v31 = vrot.slane %v3447_v54, 9  ;;  %v3224_v30 = vrot.slane %v3222_v28, 4  ;;  %v3448_v28 = vld [vmem:[#allocation2 + $0x60] sm:$0xe] }
 0x1fb   : > { %v3696_v36 = vadd.f32 %v6256_v63, %v3676_v8  ;;  %v3211_v57 = vrot.slane %v3209_v59, 4  ;;  %v3521_v59 = vrot.slane %v3084_v25, 5 }
 0x1fc   : > { %v3197_v16 = vsel %vm5255_vm2, %v3192_v26, %v3196_v3  ;;  %v3512_v10 = vsel %vm5522_vm6, %v4804_v31, %v3511_v13  ;;  %v3214_v3 = vrot.slane %v3212_v14, 5  ;;  %v3228_v26 = vshll.u32 %v3081_v0, 16 }
 0x1fd   : > { %v2578_v19 = vpop.f32.mrf.mxu2  ;;  %v3305_v4 = vunpack.c.l.b16 %v3197_v16  ;;  %v4805_v16 = vrot.slane %v3448_v28, 9  ;;  %v3242_v0 = vshll.u32 %v3083_v48, 16  ;;  %v3086_v28 = vld [vmem:[#allocation2 + $0x70] sm:$0xf] }
 0x1ff   : > { %v2197_v32 = vpop.f32.mrf.mxu1  ;;  %v3317_v54 = vpack.c.b16 %v3306_v51, %v3305_v4 }
 0x200   : > { %v2230_v1 = vadd.f32 %v2197_v32, %v6073_v6  ;;  %v3638_v40 = vpop.f32.mrf.mxu0  ;;  %v3515_v6 = vsel %vm5522_vm6, %v3513_v61, %v3514_v23  ;;  %v3557_v61 = vunpack.c.l.b16 %v3512_v10  ;;  %v3215_v23 = vor.u32 %v3214_v3, %v3211_v57 }
 0x201   : > { %v3677_v35 = vadd.f32 %v3638_v40, %v3427_v47  ;;  %v3558_v56 = vunpack.c.l.b16 %v3515_v6  ;;  %v3225_v47 = vor.u32 %v3224_v30, %v3220_v49  ;;  %v3518_v40 = vrot.slane %v3083_v48, 5 }
 0x202   : > { %v6262_v18 = vadd.f32 %v2575_v37, %v2230_v1  ;;  %v3712_v37 = vmax.f32 %v3696_v36, 0.0  ;;  %v3216_v51 = vrot.slane %v3215_v23, 4  ;;  %v3246_v10 = vshrl.u32 %v3083_v48, 16 }
 0x203   : > { %v3697_v60 = vadd.f32 %v6256_v63, %v3677_v35  ;;  %v3568_v13 = vpack.c.b16 %v3558_v56, %v3557_v61  ;;  %v3226_v36 = vrot.slane %v3225_v47, 4  ;;  %v3230_v35 = vrot.slane %v3228_v26, 5 }
 0x204   : > { %v3520_v6 = vrot.slane %v3518_v40, 4  ;;  %v3519_v4 = vsel %vm5522_vm6, %v4805_v16, %v3518_v40  ;;  %v3244_v3 = vrot.slane %v3242_v0, 5  ;;  %v3087_v16 = vld [vmem:[#allocation2 + $0x74] sm:$0x1] }
 0x205   : > { %v3713_v53 = vmax.f32 %v3697_v60, 0.0  ;;  %v2580_v12 = vpop.f32.mrf.mxu2  ;;  %v3231_v30 = vsel %vm5255_vm2, %v3226_v36, %v3230_v35  ;;  %v3525_v35 = vrot.slane %v3086_v28, 5 }
 0x206   : > { %v3522_v56 = vsel %vm5522_vm6, %v3520_v6, %v3521_v59  ;;  %v3308_v57 = vunpack.c.l.b16 %v3231_v30  ;;  %v3449_v6 = vld [vmem:[#allocation2 + $0x6c] sm:$0xe]  ;;  %v2039_v59 = vadd.f32 %v6111_v20, %v6113_v58 }
 0x207   : > { %v2200_v17 = vpop.f32.mrf.mxu1  ;;  %v3728_v8 = vpack.c.bf16 %v3713_v53, %v3712_v37  ;;  %v3221_v53 = vsel %vm5255_vm2, %v3216_v51, %v3220_v49  ;;  %v3560_v61 = vunpack.c.l.b16 %v3522_v56  ;;  %v3527_v51 = vrot.slane %v3525_v35, 4 }
 0x208   : > { %v2231_v32 = vadd.f32 %v2200_v17, %v6084_v34  ;;  %v3233_v34 = vshrl.u32 %v3082_v15, 16  ;;  %v3266_v56 = vshll.u32 %v3086_v28, 16 }
 0x209   : > { %3837 = vmatmul.bf16.vlgmr.msra.gmra.mxu0 %v3728_v8  ;;  %v3248_v8 = vrot.slane %v3246_v10, 4 }
 0x20a   : > { %v6272_v1 = vadd.f32 %v2578_v19, %v2231_v32  ;;  %3405 = vmatmul.bf16.gmra.mxu1 %v3317_v54  ;;  %3660 = vmatmul.bf16.gmra.mxu2 %v3568_v13  ;;  %v3236_v19 = vshll.u32 %v3082_v15, 16  ;;  %v3235_v17 = vrot.slane %v3233_v34, 4  ;;  %v3307_v32 = vunpack.c.l.b16 %v3221_v53 }
 0x20b   : > { %v3559_v54 = vunpack.c.l.b16 %v3519_v4  ;;  %v3249_v48 = vor.u32 %v3248_v8, %v3244_v3  ;;  %v3252_v15 = vshll.u32 %v3084_v25, 16  ;;  %v3528_v25 = vrot.slane %v3087_v16, 5 }
 0x20c   : > { %v3318_v49 = vpack.c.b16 %v3308_v57, %v3307_v32 }
 0x20d   : > { %v2583_v60 = vpop.f32.mrf.mxu2  ;;  %v3569_v23 = vpack.c.b16 %v3560_v61, %v3559_v54  ;;  %v3250_v34 = vrot.slane %v3249_v48, 4  ;;  %v3529_v58 = vsel %vm5522_vm6, %v3527_v51, %v3528_v25 }
 0x20f   : > { %v2202_v31 = vpop.f32.mrf.mxu1 }
 0x210   : > { %v2232_v14 = vadd.f32 %v2202_v31, %v6094_v50  ;;  %v3238_v50 = vrot.slane %v3236_v19, 5  ;;  %v3254_v31 = vrot.slane %v3252_v15, 5 }
 0x212   : > { %v6277_v37 = vadd.f32 %v2580_v12, %v2232_v14  ;;  %v3239_v12 = vor.u32 %v3238_v50, %v3235_v17  ;;  %v4806_v14 = vrot.slane %v3449_v6, 9  ;;  %v3255_v30 = vsel %vm5255_vm2, %v3250_v34, %v3254_v31 }
 0x213   : > { %v3270_v17 = vshrl.u32 %v3086_v28, 16  ;;  %v3310_v8 = vunpack.c.l.b16 %v3255_v30  ;;  %v3276_v28 = vshll.u32 %v3087_v16, 16  ;;  %v2041_v6 = vadd.f32 %v6134_v62, %v6136_v52 }
 0x214   : > { %v3240_v36 = vrot.slane %v3239_v12, 4  ;;  %v3526_v20 = vsel %vm5522_vm6, %v4806_v14, %v3525_v35  ;;  %v3562_v12 = vunpack.c.l.b16 %v3529_v58  ;;  %v2043_v52 = vadd.f32 %v6153_v43, %v6155_v44 }
 0x215   : > { %v2585_v26 = vpop.f32.mrf.mxu2  ;;  %v3272_v61 = vrot.slane %v3270_v17, 4  ;;  %v3278_v31 = vrot.slane %v3276_v28, 5 }
 0x216   : > { %v3245_v10 = vsel %vm5255_vm2, %v3240_v36, %v3244_v3  ;;  %v3268_v3 = vrot.slane %v3266_v56, 5 }
 0x217   : > { %v2205_v47 = vpop.f32.mrf.mxu1  ;;  %v3309_v57 = vunpack.c.l.b16 %v3245_v10 }
 0x218   : > { %v2233_v13 = vadd.f32 %v2205_v47, %v6105_v11  ;;  %v3085_v11 = vld [vmem:[#allocation2 + $0x6c] sm:$0xf]  ;;  %v3561_v47 = vunpack.c.l.b16 %v3526_v20 }
 0x219   : > { %v3257_v53 = vshrl.u32 %v3085_v11, 16  ;;  %v3260_v4 = vshll.u32 %v3085_v11, 16 }
 0x21a   : > { %v6286_v40 = vadd.f32 %v2583_v60, %v2233_v13  ;;  %3410 = vmatmul.bf16.gmra.mxu1 %v3318_v49  ;;  %3665 = vmatmul.bf16.gmra.mxu2 %v3569_v23  ;;  %v3273_v23 = vor.u32 %v3272_v61, %v3268_v3  ;;  %v3570_v7 = vpack.c.b16 %v3562_v12, %v3561_v47 }
 0x21b   : > { %v3259_v32 = vrot.slane %v3257_v53, 4  ;;  %v3262_v54 = vrot.slane %v3260_v4, 5 }
 0x21c   : > { %v3274_v34 = vrot.slane %v3273_v23, 4 }
 0x21d   : > { %v2588_v0 = vpop.f32.mrf.mxu2  ;;  %v3263_v15 = vor.u32 %v3262_v54, %v3259_v32 }
 0x21e   : > { %v3279_v16 = vsel %vm5255_vm2, %v3274_v34, %v3278_v31 }
 0x21f   : > { %v2207_v19 = vpop.f32.mrf.mxu1  ;;  %v3264_v35 = vrot.slane %v3263_v15, 4  ;;  %v3312_v25 = vunpack.c.l.b16 %v3279_v16 }
 0x220   : > { %v2234_v60 = vadd.f32 %v2207_v19, %v2039_v59 }
 0x222   : > { %v6294_v50 = vadd.f32 %v2585_v26, %v2234_v60  ;;  %v3319_v26 = vpack.c.b16 %v3310_v8, %v3309_v57  ;;  %v2818_v60 = vpop.f32.mrf.mxu3 }
 0x223   : > { %v2855_v44 = vadd.f32 %v2818_v60, %v6225_v29 }
 0x225   : > { %v2590_v48 = vpop.f32.mrf.mxu2 }
 0x227   : > { %v2210_v13 = vpop.f32.mrf.mxu1 }
 0x228   : > { %v2235_v49 = vadd.f32 %v2210_v13, %v6128_v27  ;;  %v3269_v27 = vsel %vm5255_vm2, %v3264_v35, %v3268_v3  ;;  %v2045_v3 = vadd.f32 %v6215_v38, %v6170_v45 }
 0x229   : > { %v3311_v51 = vunpack.c.l.b16 %v3269_v27 }
 0x22a   : > { %v6301_v36 = vadd.f32 %v2588_v0, %v2235_v49  ;;  %3415 = vmatmul.bf16.gmra.mxu1 %v3319_v26  ;;  %3670 = vmatmul.bf16.gmra.mxu2 %v3570_v7  ;;  %v2820_v56 = vpop.f32.mrf.mxu3 }
 0x22b   : > { %v3320_v53 = vpack.c.b16 %v3312_v25, %v3311_v51 }
 0x22d   : > { %v2593_v19 = vpop.f32.mrf.mxu2 }
 0x22f   : > { %v2212_v59 = vpop.f32.mrf.mxu1 }
 0x230   : > { %v2236_v11 = vadd.f32 %v2212_v59, %v2041_v6 }
 0x232   : > { %v6309_v14 = vadd.f32 %v2590_v48, %v2236_v11  ;;  %v2823_v54 = vpop.f32.mrf.mxu3  ;;  %v3050_v48 = vadd.f32 %v6061_v55, %v2855_v44 }
 0x233   : > { %v2857_v29 = vadd.f32 %v2823_v54, %v6249_v21 }
 0x235   : > { %v2595_v30 = vpop.f32.mrf.mxu2  ;;  %v3052_v27 = vadd.f32 %v6082_v42, %v2857_v29 }
 0x237   : > { %v2215_v0 = vpop.f32.mrf.mxu1 }
 0x238   : > { %v2237_v10 = vadd.f32 %v2215_v0, %v6147_v33 }
 0x23a   : > { %v6312_v62 = vadd.f32 %v2593_v19, %v2237_v10  ;;  %3420 = vmatmul.bf16.gmra.mxu1 %v3320_v53  ;;  %v2825_v13 = vpop.f32.mrf.mxu3 }
 0x23d   : > { %v2598_v20 = vpop.f32.mrf.mxu2 }
 0x23f   : > { %v2217_v4 = vpop.f32.mrf.mxu1 }
 0x240   : > { %v2238_v17 = vadd.f32 %v2217_v4, %v2043_v52 }
 0x242   : > { %v6316_v58 = vadd.f32 %v2595_v30, %v2238_v17  ;;  %v2828_v23 = vpop.f32.mrf.mxu3  ;;  %v4855_v30 = vld [vmem:[%s5240_s26 + $0xc] sm:$0xf] }
 0x243   : > { %v3882_v42 = vshll.u32 %v4855_v30, 16  ;;  %v2859_v17 = vadd.f32 %v2828_v23, %v6272_v1 }
 0x245   : > { %v2600_v32 = vpop.f32.mrf.mxu2  ;;  %v3054_v54 = vadd.f32 %v6103_v41, %v2859_v17 }
 0x247   : > { %v2220_v57 = vpop.f32.mrf.mxu1 }
 0x248   : > { %v2239_v8 = vadd.f32 %v2220_v57, %v6165_v39  ;;  %v2856_v39 = vadd.f32 %v2820_v56, %v6238_v46  ;;  %v3879_v56 = vshrl.u32 %v4855_v30, 16 }
 0x24a   : > { %v6319_v33 = vadd.f32 %v2598_v20, %v2239_v8  ;;  %v3051_v7 = vadd.f32 %v6071_v9, %v2856_v39  ;;  %v2830_v46 = vpop.f32.mrf.mxu3  ;;  %v2858_v9 = vadd.f32 %v2825_v13, %v6262_v18 }
 0x24c   : > { %v3053_v60 = vadd.f32 %v6092_v22, %v2858_v9  ;;  %v3881_v22 = vrot.slane %v3879_v56, 4 }
 0x24d   : > { %v3641_v12 = vpop.f32.mrf.mxu2 }
 0x24f   : > { %v2222_v61 = vpop.f32.mrf.mxu1 }
 0x250   : > { %v2240_v47 = vadd.f32 %v2222_v61, %v2045_v3 }
 0x252   : > { %v6323_v43 = vadd.f32 %v2600_v32, %v2240_v47  ;;  %v2833_v53 = vpop.f32.mrf.mxu3  ;;  %v3884_v32 = vrot.slane %v3882_v42, 5  ;;  %v4856_v47 = vld [vmem:[%s5240_s26 + $0x10] sm:$0xf] }
 0x253   : > { %v3888_v13 = vshll.u32 %v4856_v47, 16 }
 0x254   : > { %v3885_v1 = vor.u32 %v3884_v32, %v3881_v22 }
 0x255   : > { %v3643_v26 = vpop.f32.mrf.mxu2  ;;  %v3890_v23 = vrot.slane %v3888_v13, 5  ;;  %v6530_v13 = vld [vmem:[#allocation4_spill] sm:$0xff] }
 0x256   : > { %v3886_v41 = vrot.slane %v3885_v1, 4 }
 0x257   : > { %v3391_v49 = vpop.f32.mrf.mxu1 }
 0x258   : > { %v3428_v15 = vadd.f32 %v3391_v49, %v3050_v48  ;;  %v3892_v49 = vshrl.u32 %v4856_v47, 16 }
 0x25a   : > { %v3678_v28 = vadd.f32 %v3641_v12, %v3428_v15  ;;  %v2860_v12 = vadd.f32 %v2830_v46, %v6277_v37  ;;  %v2835_v48 = vpop.f32.mrf.mxu3  ;;  %v4857_v37 = vld [vmem:[%s5240_s26 + $0x14] sm:$0x1] }
 0x25b   : > { %v3898_v29 = vshll.u32 %v4857_v37, 16 }
 0x25c   : > { %v3698_v34 = vadd.f32 %v6256_v63, %v3678_v28  ;;  %v3055_v39 = vadd.f32 %v6117_v2, %v2860_v12  ;;  %v3894_v28 = vrot.slane %v3892_v49, 4  ;;  %v2861_v2 = vadd.f32 %v2833_v53, %v6286_v40 }
 0x25d   : > { %v3646_v35 = vpop.f32.mrf.mxu2 }
 0x25e   : > { %v3714_v55 = vmax.f32 %v3698_v34, 0.0  ;;  %v3891_v34 = vsel %vm5255_vm2, %v3886_v41, %v3890_v23 }
 0x25f   : > { %v3393_v45 = vpop.f32.mrf.mxu1 }
 0x260   : > { %v3429_v38 = vadd.f32 %v3393_v45, %v3051_v7 }
 0x262   : > { %v3679_v31 = vadd.f32 %v3643_v26, %v3429_v38 }
 0x264   : > { %v3699_v6 = vadd.f32 %v6256_v63, %v3679_v31  ;;  %v3895_v31 = vor.u32 %v3894_v28, %v3890_v23  ;;  %v6531_v28 = vld [vmem:[#allocation5_spill] sm:$0xff] }
 0x265   : > { %v3648_v16 = vpop.f32.mrf.mxu2 }
 0x266   : > { %v3715_v59 = vmax.f32 %v3699_v6, 0.0  ;;  %v3896_v9 = vrot.slane %v3895_v31, 4 }
 0x267   : > { %v3396_v11 = vpop.f32.mrf.mxu1 }
 0x268   : > { %v3729_v19 = vpack.c.bf16 %v3715_v59, %v3714_v55  ;;  %v3430_v51 = vadd.f32 %v3396_v11, %v3052_v27  ;;  %v6355_v55 = vld [vmem:[%s6490_s7] ss:$0 sm:$0xff]  ;;  %v2838_v59 = vpop.f32.mrf.mxu3 }
 0x26a   : > { %3842 = vmatmul.bf16.vlgmr.msra.gmra.mxu3 %v3729_v19  ;;  %v3680_v25 = vadd.f32 %v3646_v35, %v3430_v51  ;;  %v4086_v19 = vunpack.c.l.bf16 %v3891_v34  ;;  %v3900_v51 = vrot.slane %v3898_v29, 5 }
 0x26c   : > { %v3700_v52 = vadd.f32 %v6256_v63, %v3680_v25  ;;  %v3056_v25 = vadd.f32 %v6126_v5, %v2861_v2  ;;  %v3901_v53 = vsel %vm5255_vm2, %v3896_v9, %v3900_v51  ;;  %v6533_v51 = vld [vmem:[#allocation7_spill] sm:$0xff] }
 0x26d   : > { %v3651_v10 = vpop.f32.mrf.mxu2  ;;  %v4087_v42 = vunpack.c.l.bf16 %v3901_v53 }
 0x26e   : > { %v3716_v20 = vmax.f32 %v3700_v52, 0.0 }
 0x26f   : > { %v3398_v0 = vpop.f32.mrf.mxu1 }
 0x270   : > { %v3431_v21 = vadd.f32 %v3398_v0, %v3053_v60 }
 0x272   : > { %v3681_v4 = vadd.f32 %v3648_v16, %v3431_v21  ;;  %v2862_v21 = vadd.f32 %v2835_v48, %v6294_v50 }
 0x274   : > { %v3701_v18 = vadd.f32 %v6256_v63, %v3681_v4  ;;  %v6529_v4 = vld [vmem:[#allocation3_spill] sm:$0xff] }
 0x275   : > { %v3653_v3 = vpop.f32.mrf.mxu2  ;;  %v3057_v56 = vadd.f32 %v6529_v4, %v2862_v21  ;;  %v6534_v4 = vld [vmem:[#allocation8_spill] sm:$0xff] }
 0x276   : > { %v3717_v57 = vmax.f32 %v3701_v18, 0.0 }
 0x277   : > { %v3401_v8 = vpop.f32.mrf.mxu1 }
 0x278   : > { %v3730_v61 = vpack.c.bf16 %v3717_v57, %v3716_v20  ;;  %v3432_v44 = vadd.f32 %v3401_v8, %v3054_v54  ;;  %v2840_v8 = vpop.f32.mrf.mxu3 }
 0x27a   : > { %3847 = vmatmul.bf16.gmra.mxu3 %v3730_v61  ;;  %v3682_v26 = vadd.f32 %v3651_v10, %v3432_v44 }
 0x27c   : > { %v3702_v38 = vadd.f32 %v6256_v63, %v3682_v26 }
 0x27d   : > { %v3656_v45 = vpop.f32.mrf.mxu2 }
 0x27e   : > { %v3718_v11 = vmax.f32 %v3702_v38, 0.0 }
 0x27f   : > { %v3403_v15 = vpop.f32.mrf.mxu1 }
 0x280   : > { %v3433_v7 = vadd.f32 %v3403_v15, %v3055_v39  ;;  %v2864_v39 = vadd.f32 %v2840_v8, %v6309_v14  ;;  %v2843_v41 = vpop.f32.mrf.mxu3 }
 0x281   : > { %v2865_v34 = vadd.f32 %v2843_v41, %v6312_v62 }
 0x282   : > { %v3683_v35 = vadd.f32 %v3653_v3, %v3433_v7  ;;  %v2863_v3 = vadd.f32 %v2838_v59, %v6301_v36  ;;  %v3059_v7 = vadd.f32 %v6531_v28, %v2864_v39  ;;  %v6532_v59 = vld [vmem:[#allocation6_spill] sm:$0xff] }
 0x284   : > { %v3703_v6 = vadd.f32 %v6256_v63, %v3683_v35  ;;  %v3058_v49 = vadd.f32 %v6530_v13, %v2863_v3 }
 0x285   : > { %v3658_v60 = vpop.f32.mrf.mxu2 }
 0x286   : > { %v3719_v46 = vmax.f32 %v3703_v6, 0.0  ;;  %v3838_v16 = vpop.f32.mrf.mxu0 }
 0x287   : > { %v3406_v27 = vpop.f32.mrf.mxu1  ;;  %v3839_v40 = vadd.f32 %v6355_v55, %v3838_v16 }
 0x288   : > { %v3731_v0 = vpack.c.bf16 %v3719_v46, %v3718_v11  ;;  %v3434_v10 = vadd.f32 %v3406_v27, %v3056_v25  ;;  %v2845_v29 = vpop.f32.mrf.mxu3  ;;  %v3060_v11 = vadd.f32 %v6532_v59, %v2865_v34 }
 0x289   : > { %v4102_v30 = vadd.f32 %v4086_v19, %v3839_v40  ;;  %v2866_v19 = vadd.f32 %v2845_v29, %v6316_v58 }
 0x28a   : > { %3852 = vmatmul.bf16.gmra.mxu3 %v3731_v0  ;;  %v3684_v52 = vadd.f32 %v3656_v45, %v3434_v10 }
 0x28b   : > { %v4118_v5 = vmax.f32 %v4102_v30, 0.0  ;;  %v3061_v25 = vadd.f32 %v6533_v51, %v2866_v19 }
 0x28c   : > { %v3704_v22 = vadd.f32 %v6256_v63, %v3684_v52 }
 0x28d   : > { %4134 = vst [vmem:[%s6363_s19] sm:$0xff] %v4118_v5  ;;  %v3661_v20 = vpop.f32.mrf.mxu2 }
 0x28e   : > { %v3840_v17 = vpop.f32.mrf.mxu0  ;;  %v3720_v12 = vmax.f32 %v3704_v22, 0.0 }
 0x28f   : > { %v3408_v50 = vpop.f32.mrf.mxu1  ;;  %v3841_v57 = vadd.f32 %v6355_v55, %v3840_v17 }
 0x290   : > { %v3435_v18 = vadd.f32 %v3408_v50, %v3057_v56 }
 0x291   : > { %v4103_v54 = vadd.f32 %v4087_v42, %v3841_v57  ;;  %v6535_v57 = vld [vmem:[#allocation9_spill] sm:$0xff] }
 0x292   : > { %v3685_v32 = vadd.f32 %v3658_v60, %v3435_v18  ;;  %v2848_v60 = vpop.f32.mrf.mxu3 }
 0x293   : > { %v4119_v47 = vmax.f32 %v4103_v54, 0.0  ;;  %v2867_v10 = vadd.f32 %v2848_v60, %v6319_v33 }
 0x294   : > { %v3705_v61 = vadd.f32 %v6256_v63, %v3685_v32 }
 0x295   : > { %4135 = vst [vmem:[%s6363_s19 + $0x8] sm:$0xff] %v4119_v47  ;;  %v3663_v26 = vpop.f32.mrf.mxu2  ;;  %v3062_v56 = vadd.f32 %v6534_v4, %v2867_v10 }
 0x296   : > { %v3721_v44 = vmax.f32 %v3705_v61, 0.0 }
 0x297   : > { %v3411_v1 = vpop.f32.mrf.mxu1 }
 0x298   : > { %v3732_v48 = vpack.c.bf16 %v3721_v44, %v3720_v12  ;;  %v3436_v15 = vadd.f32 %v3411_v1, %v3058_v49 }
 0x29a   : > { %3857 = vmatmul.bf16.gmra.mxu3 %v3732_v48  ;;  %v3686_v23 = vadd.f32 %v3661_v20, %v3436_v15  ;;  %v2850_v50 = vpop.f32.mrf.mxu3 }
 0x29b   : > { %v2868_v17 = vadd.f32 %v2850_v50, %v6323_v43  ;;  %v4858_v43 = vld [vmem:[%s5240_s26 + $0x18] sm:$0xf] }
 0x29c   : > { %v3706_v37 = vadd.f32 %v6256_v63, %v3686_v23  ;;  %v3903_v1 = vshrl.u32 %v4858_v43, 16  ;;  %v3906_v13 = vshll.u32 %v4858_v43, 16 }
 0x29d   : > { %v3666_v35 = vpop.f32.mrf.mxu2  ;;  %v3063_v8 = vadd.f32 %v6535_v57, %v2868_v17 }
 0x29e   : > { %v3722_v2 = vmax.f32 %v3706_v37, 0.0  ;;  %v3905_v49 = vrot.slane %v3903_v1, 4  ;;  %v3908_v48 = vrot.slane %v3906_v13, 5 }
 0x29f   : > { %v3413_v36 = vpop.f32.mrf.mxu1 }
 0x2a0   : > { %v3437_v45 = vadd.f32 %v3413_v36, %v3059_v7  ;;  %v3909_v39 = vor.u32 %v3908_v48, %v3905_v49  ;;  %v4860_v36 = vld [vmem:[%s5240_s26 + $0x20] sm:$0x1] }
 0x2a1   : > { %v3922_v34 = vshll.u32 %v4860_v36, 16 }
 0x2a2   : > { %v3687_v38 = vadd.f32 %v3663_v26, %v3437_v45  ;;  %v4859_v26 = vld [vmem:[%s5240_s26 + $0x1c] sm:$0xf]  ;;  %v3910_v23 = vrot.slane %v3909_v39, 4 }
 0x2a3   : > { %v3912_v15 = vshll.u32 %v4859_v26, 16  ;;  %v3916_v41 = vshrl.u32 %v4859_v26, 16  ;;  %v3924_v59 = vrot.slane %v3922_v34, 5  ;;  %v4867_v26 = vld [vmem:[%s5240_s26 + $0x3c] sm:$0xf] }
 0x2a4   : > { %v3707_v31 = vadd.f32 %v6256_v63, %v3687_v38 }
 0x2a5   : > { %v3668_v16 = vpop.f32.mrf.mxu2  ;;  %v3914_v28 = vrot.slane %v3912_v15, 5  ;;  %v3918_v7 = vrot.slane %v3916_v41, 4  ;;  %v4866_v15 = vld [vmem:[%s5240_s26 + $0x38] sm:$0x1] }
 0x2a6   : > { %v3723_v6 = vmax.f32 %v3707_v31, 0.0  ;;  %v3970_v36 = vshll.u32 %v4866_v15, 16 }
 0x2a7   : > { %v3416_v14 = vpop.f32.mrf.mxu1  ;;  %v3915_v38 = vsel %vm5255_vm2, %v3910_v23, %v3914_v28  ;;  %v3975_v23 = vshrl.u32 %v4867_v26, 16 }
 0x2a8   : > { %v3733_v46 = vpack.c.bf16 %v3723_v6, %v3722_v2  ;;  %v3438_v27 = vadd.f32 %v3416_v14, %v3060_v11  ;;  %v4088_v31 = vunpack.c.l.bf16 %v3915_v38  ;;  %v4862_v11 = vld [vmem:[%s5240_s26 + $0x28] sm:$0xf] }
 0x2a9   : > { %v3940_v51 = vshrl.u32 %v4862_v11, 16  ;;  %v3977_v38 = vrot.slane %v3975_v23, 4 }
 0x2aa   : > { %3862 = vmatmul.bf16.gmra.mxu3 %v3733_v46  ;;  %v3688_v9 = vadd.f32 %v3666_v35, %v3438_v27  ;;  %v3919_v35 = vor.u32 %v3918_v7, %v3914_v28  ;;  %v3978_v28 = vshll.u32 %v4867_v26, 16 }
 0x2ac   : > { %v3708_v0 = vadd.f32 %v6256_v63, %v3688_v9  ;;  %v3920_v14 = vrot.slane %v3919_v35, 4  ;;  %v3980_v35 = vrot.slane %v3978_v28, 5 }
 0x2ad   : > { %v3671_v52 = vpop.f32.mrf.mxu2 }
 0x2ae   : > { %v3724_v53 = vmax.f32 %v3708_v0, 0.0  ;;  %v3925_v9 = vsel %vm5255_vm2, %v3920_v14, %v3924_v59  ;;  %v3981_v59 = vor.u32 %v3980_v35, %v3977_v38  ;;  %v4874_v35 = vld [vmem:[%s5240_s26 + $0x58] sm:$0xf] }
 0x2af   : > { %v3418_v40 = vpop.f32.mrf.mxu1  ;;  %v4089_v60 = vunpack.c.l.bf16 %v3925_v9 }
 0x2b0   : > { %v3439_v62 = vadd.f32 %v3418_v40, %v3061_v25  ;;  %v3982_v9 = vrot.slane %v3981_v59, 4 }
 0x2b2   : > { %v3689_v21 = vadd.f32 %v3668_v16, %v3439_v62  ;;  %v3936_v16 = vshll.u32 %v4862_v11, 16 }
 0x2b4   : > { %v3709_v30 = vadd.f32 %v6256_v63, %v3689_v21  ;;  %v3938_v62 = vrot.slane %v3936_v16, 5  ;;  %v3942_v21 = vrot.slane %v3940_v51, 4 }
 0x2b5   : > { %v3673_v32 = vpop.f32.mrf.mxu2 }
 0x2b6   : > { %v3725_v5 = vmax.f32 %v3709_v30, 0.0  ;;  %v4863_v30 = vld [vmem:[%s5240_s26 + $0x2c] sm:$0x1] }
 0x2b7   : > { %v3421_v58 = vpop.f32.mrf.mxu1  ;;  %v3946_v4 = vshll.u32 %v4863_v30, 16 }
 0x2b8   : > { %v3734_v42 = vpack.c.bf16 %v3725_v5, %v3724_v53  ;;  %v3440_v18 = vadd.f32 %v3421_v58, %v3062_v56  ;;  %v4864_v53 = vld [vmem:[%s5240_s26 + $0x30] sm:$0xf]  ;;  %v3943_v58 = vor.u32 %v3942_v21, %v3938_v62 }
 0x2b9   : > { %v3951_v56 = vshrl.u32 %v4864_v53, 16  ;;  %v3948_v57 = vrot.slane %v3946_v4, 5 }
 0x2ba   : > { %3867 = vmatmul.bf16.gmra.mxu3 %v3734_v42  ;;  %v3690_v20 = vadd.f32 %v3671_v52, %v3440_v18  ;;  %v3954_v42 = vshll.u32 %v4864_v53, 16 }
 0x2bc   : > { %v3710_v54 = vadd.f32 %v6256_v63, %v3690_v20  ;;  %v3944_v20 = vrot.slane %v3943_v58, 4 }
 0x2be   : > { %v3726_v47 = vmax.f32 %v3710_v54, 0.0 }
 0x2bf   : > { %v3423_v33 = vpop.f32.mrf.mxu1 }
 0x2c0   : > { %v3441_v22 = vadd.f32 %v3423_v33, %v3063_v8  ;;  %v3953_v8 = vrot.slane %v3951_v56, 4  ;;  %v3956_v33 = vrot.slane %v3954_v42, 5 }
 0x2c2   : > { %v3691_v3 = vadd.f32 %v3673_v32, %v3441_v22  ;;  %v4865_v32 = vld [vmem:[%s5240_s26 + $0x34] sm:$0xf] }
 0x2c4   : > { %v3711_v61 = vadd.f32 %v6256_v63, %v3691_v3  ;;  %v4861_v63 = vld [vmem:[%s5240_s26 + $0x24] sm:$0xf]  ;;  %v3949_v3 = vsel %vm5255_vm2, %v3944_v20, %v3948_v57  ;;  %v4871_v57 = vld [vmem:[%s5240_s26 + $0x4c] sm:$0xf] }
 0x2c5   : > { %v3927_v45 = vshrl.u32 %v4861_v63, 16  ;;  %v3930_v37 = vshll.u32 %v4861_v63, 16  ;;  %v4091_v43 = vunpack.c.l.bf16 %v3949_v3 }
 0x2c6   : > { %v3727_v12 = vmax.f32 %v3711_v61, 0.0  ;;  %v3957_v61 = vor.u32 %v3956_v33, %v3953_v8 }
 0x2c7   : > { %v3929_v29 = vrot.slane %v3927_v45, 4  ;;  %v3932_v2 = vrot.slane %v3930_v37, 5 }
 0x2c8   : > { %v3735_v44 = vpack.c.bf16 %v3727_v12, %v3726_v47  ;;  %v3960_v47 = vshll.u32 %v4865_v32, 16  ;;  %v3964_v12 = vshrl.u32 %v4865_v32, 16  ;;  %v3958_v13 = vrot.slane %v3957_v61, 4 }
 0x2c9   : > { %v3933_v27 = vor.u32 %v3932_v2, %v3929_v29  ;;  %v3972_v29 = vrot.slane %v3970_v36, 5  ;;  %v4868_v2 = vld [vmem:[%s5240_s26 + $0x40] sm:$0xf]  ;;  %v4008_v32 = vshll.u32 %v4871_v57, 16 }
 0x2ca   : > { %3872 = vmatmul.bf16.gmra.mxu3 %v3735_v44  ;;  %v3962_v49 = vrot.slane %v3960_v47, 5  ;;  %v3966_v48 = vrot.slane %v3964_v12, 4  ;;  %v3984_v11 = vshll.u32 %v4868_v2, 16 }
 0x2cb   : > { %v3934_v40 = vrot.slane %v3933_v27, 4 }
 0x2cc   : > { %v3963_v7 = vsel %vm5255_vm2, %v3958_v13, %v3962_v49  ;;  %v3967_v63 = vor.u32 %v3966_v48, %v3962_v49  ;;  %v3986_v51 = vrot.slane %v3984_v11, 5  ;;  %v4872_v49 = vld [vmem:[%s5240_s26 + $0x50] sm:$0x1] }
 0x2cd   : > { %v3939_v52 = vsel %vm5255_vm2, %v3934_v40, %v3938_v62  ;;  %v4092_v37 = vunpack.c.l.bf16 %v3963_v7  ;;  %v4869_v62 = vld [vmem:[%s5240_s26 + $0x44] sm:$0x1]  ;;  %v4018_v23 = vshll.u32 %v4872_v49, 16 }
 0x2ce   : > { %v4090_v17 = vunpack.c.l.bf16 %v3939_v52  ;;  %v3994_v53 = vshll.u32 %v4869_v62, 16 }
 0x2cf   : > { %v4020_v38 = vrot.slane %v4018_v23, 5 }
 0x2ed   : > { %v3843_v6 = vpop.f32.mrf.mxu3 }
 0x2ee   : > { %v3844_v46 = vadd.f32 %v6355_v55, %v3843_v6 }
 0x2f0   : > { %v4104_v19 = vadd.f32 %v4088_v31, %v3844_v46  ;;  %v3968_v31 = vrot.slane %v3967_v63, 4 }
 0x2f2   : > { %v4120_v25 = vmax.f32 %v4104_v19, 0.0  ;;  %v3973_v46 = vsel %vm5255_vm2, %v3968_v31, %v3972_v29  ;;  %v3988_v19 = vshrl.u32 %v4868_v2, 16  ;;  %v4032_v2 = vshll.u32 %v4874_v35, 16 }
 0x2f3   : > { %v4093_v16 = vunpack.c.l.bf16 %v3973_v46 }
 0x2f4   : > { %4136 = vst [vmem:[%s6363_s19 + $0x10] sm:$0xff] %v4120_v25 }
 0x2f5   : > { %v3845_v0 = vpop.f32.mrf.mxu3 }
 0x2f6   : > { %v3846_v10 = vadd.f32 %v6355_v55, %v3845_v0  ;;  %v4870_v0 = vld [vmem:[%s5240_s26 + $0x48] sm:$0xf] }
 0x2f7   : > { %v4002_v52 = vshll.u32 %v4870_v0, 16 }
 0x2f8   : > { %v4105_v5 = vadd.f32 %v4089_v60, %v3846_v10  ;;  %v3990_v60 = vrot.slane %v3988_v19, 4  ;;  %v3987_v10 = vsel %vm5255_vm2, %v3982_v9, %v3986_v51  ;;  %v4034_v19 = vrot.slane %v4032_v2, 5 }
 0x2f9   : > { %v4094_v4 = vunpack.c.l.bf16 %v3987_v10 }
 0x2fa   : > { %v4121_v50 = vmax.f32 %v4105_v5, 0.0  ;;  %v3991_v30 = vor.u32 %v3990_v60, %v3986_v51  ;;  %v3999_v5 = vshrl.u32 %v4870_v0, 16  ;;  %v4875_v51 = vld [vmem:[%s5240_s26 + $0x5c] sm:$0x1] }
 0x2fb   : > { %v4042_v0 = vshll.u32 %v4875_v51, 16 }
 0x2fc   : > { %4137 = vst [vmem:[%s6363_s19 + $0x18] sm:$0xff] %v4121_v50  ;;  %v3992_v42 = vrot.slane %v3991_v30, 4  ;;  %v3996_v50 = vrot.slane %v3994_v53, 5 }
 0x2fd   : > { %v3848_v18 = vpop.f32.mrf.mxu3 }
 0x2fe   : > { %v3849_v22 = vadd.f32 %v6355_v55, %v3848_v18  ;;  %v4004_v18 = vrot.slane %v4002_v52, 5  ;;  %v3997_v33 = vsel %vm5255_vm2, %v3992_v42, %v3996_v50  ;;  %v3775_v50 = vld [vmem:[%s5336_s16 + $0x4] sm:$0xf] }
 0x2ff   : > { %v4095_v61 = vunpack.c.l.bf16 %v3997_v33 }
 0x300   : > { %v4106_v54 = vadd.f32 %v4090_v17, %v3849_v22  ;;  %v4001_v17 = vrot.slane %v3999_v5, 4 }
 0x302   : > { %v4122_v44 = vmax.f32 %v4106_v54, 0.0  ;;  %v4005_v22 = vor.u32 %v4004_v18, %v4001_v17  ;;  %v4012_v54 = vshrl.u32 %v4871_v57, 16  ;;  %v4056_v57 = vshll.u32 %v3775_v50, 16 }
 0x304   : > { %4138 = vst [vmem:[%s6363_s19 + $0x20] sm:$0xff] %v4122_v44  ;;  %v4006_v12 = vrot.slane %v4005_v22, 4  ;;  %v4010_v44 = vrot.slane %v4008_v32, 5 }
 0x305   : > { %v3850_v1 = vpop.f32.mrf.mxu3 }
 0x306   : > { %v3851_v39 = vadd.f32 %v6355_v55, %v3850_v1  ;;  %v4873_v1 = vld [vmem:[%s5240_s26 + $0x54] sm:$0xf]  ;;  %v4011_v15 = vsel %vm5255_vm2, %v4006_v12, %v4010_v44  ;;  %v3776_v12 = vld [vmem:[%s5336_s16 + $0x8] sm:$0x1] }
 0x307   : > { %v4023_v26 = vshrl.u32 %v4873_v1, 16  ;;  %v4096_v7 = vunpack.c.l.bf16 %v4011_v15 }
 0x308   : > { %v4107_v41 = vadd.f32 %v4091_v43, %v3851_v39  ;;  %v4014_v43 = vrot.slane %v4012_v54, 4  ;;  %v4026_v39 = vshll.u32 %v4873_v1, 16 }
 0x309   : > { %v4025_v63 = vrot.slane %v4023_v26, 4 }
 0x30a   : > { %v4123_v45 = vmax.f32 %v4107_v41, 0.0  ;;  %v4015_v41 = vor.u32 %v4014_v43, %v4010_v44  ;;  %v4028_v36 = vrot.slane %v4026_v39, 5 }
 0x30c   : > { %4139 = vst [vmem:[%s6363_s19 + $0x28] sm:$0xff] %v4123_v45  ;;  %v4029_v29 = vor.u32 %v4028_v36, %v4025_v63 }
 0x30d   : > { %v3853_v34 = vpop.f32.mrf.mxu3 }
 0x30e   : > { %v3854_v6 = vadd.f32 %v6355_v55, %v3853_v34  ;;  %v4030_v46 = vrot.slane %v4029_v29, 4 }
 0x310   : > { %v4108_v14 = vadd.f32 %v4092_v37, %v3854_v6  ;;  %v4016_v37 = vrot.slane %v4015_v41, 4 }
 0x312   : > { %v4124_v27 = vmax.f32 %v4108_v14, 0.0  ;;  %v4021_v6 = vsel %vm5255_vm2, %v4016_v37, %v4020_v38  ;;  %v4036_v14 = vshrl.u32 %v4874_v35, 16 }
 0x313   : > { %v4097_v11 = vunpack.c.l.bf16 %v4021_v6 }
 0x314   : > { %4140 = vst [vmem:[%s6363_s19 + $0x30] sm:$0xff] %v4124_v27 }
 0x315   : > { %v3855_v25 = vpop.f32.mrf.mxu3 }
 0x316   : > { %v3856_v40 = vadd.f32 %v6355_v55, %v3855_v25  ;;  %v3774_v25 = vld [vmem:[%s5336_s16] sm:$0xf] }
 0x317   : > { %v4050_v10 = vshll.u32 %v3774_v25, 16 }
 0x318   : > { %v4109_v21 = vadd.f32 %v4093_v16, %v3856_v40  ;;  %v4038_v16 = vrot.slane %v4036_v14, 4  ;;  %v4035_v40 = vsel %vm5255_vm2, %v4030_v46, %v4034_v19 }
 0x319   : > { %v4098_v53 = vunpack.c.l.bf16 %v4035_v40 }
 0x31a   : > { %v4125_v58 = vmax.f32 %v4109_v21, 0.0  ;;  %v4039_v62 = vor.u32 %v4038_v16, %v4034_v19  ;;  %v4047_v21 = vshrl.u32 %v3774_v25, 16 }
 0x31c   : > { %4141 = vst [vmem:[%s6363_s19 + $0x38] sm:$0xff] %v4125_v58  ;;  %v4040_v52 = vrot.slane %v4039_v62, 4  ;;  %v4044_v58 = vrot.slane %v4042_v0, 5 }
 0x31d   : > { %v3858_v56 = vpop.f32.mrf.mxu3 }
 0x31e   : > { %v3859_v20 = vadd.f32 %v6355_v55, %v3858_v56  ;;  %v4052_v56 = vrot.slane %v4050_v10, 5  ;;  %v4045_v18 = vsel %vm5255_vm2, %v4040_v52, %v4044_v58 }
 0x31f   : > { %v4099_v22 = vunpack.c.l.bf16 %v4045_v18 }
 0x320   : > { %v4110_v8 = vadd.f32 %v4094_v4, %v3859_v20  ;;  %v4049_v4 = vrot.slane %v4047_v21, 4 }
 0x322   : > { %v4126_v3 = vmax.f32 %v4110_v8, 0.0  ;;  %v4053_v20 = vor.u32 %v4052_v56, %v4049_v4  ;;  %v4060_v8 = vshrl.u32 %v3775_v50, 16 }
 0x324   : > { %4142 = vst [vmem:[%s6363_s19 + $0x40] sm:$0xff] %v4126_v3  ;;  %v4054_v54 = vrot.slane %v4053_v20, 4  ;;  %v4058_v3 = vrot.slane %v4056_v57, 5 }
 0x325   : > { %v3860_v47 = vpop.f32.mrf.mxu3 }
 0x326   : > { %v3861_v13 = vadd.f32 %v6355_v55, %v3860_v47  ;;  %v4059_v43 = vsel %vm5255_vm2, %v4054_v54, %v4058_v3 }
 0x328   : > { %v4111_v48 = vadd.f32 %v4095_v61, %v3861_v13  ;;  %v4062_v61 = vrot.slane %v4060_v8, 4  ;;  %v4066_v13 = vshll.u32 %v3776_v12, 16 }
 0x32a   : > { %v4127_v28 = vmax.f32 %v4111_v48, 0.0  ;;  %v4063_v1 = vor.u32 %v4062_v61, %v4058_v3  ;;  %v4100_v48 = vunpack.c.l.bf16 %v4059_v43  ;;  %v4068_v15 = vrot.slane %v4066_v13, 5 }
 0x32c   : > { %4143 = vst [vmem:[%s6363_s19 + $0x48] sm:$0xff] %v4127_v28  ;;  %v4064_v39 = vrot.slane %v4063_v1, 4 }
 0x32d   : > { %v3863_v45 = vpop.f32.mrf.mxu3 }
 0x32e   : > { %v3864_v34 = vadd.f32 %v6355_v55, %v3863_v45  ;;  %v4069_v28 = vsel %vm5255_vm2, %v4064_v39, %v4068_v15 }
 0x32f   : > { %v4101_v63 = vunpack.c.l.bf16 %v4069_v28 }
 0x330   : > { %v4112_v31 = vadd.f32 %v4096_v7, %v3864_v34 }
 0x332   : > { %v4128_v59 = vmax.f32 %v4112_v31, 0.0 }
 0x334   : > { %4144 = vst [vmem:[%s6363_s19 + $0x50] sm:$0xff] %v4128_v59 }
 0x335   : > { %v3865_v27 = vpop.f32.mrf.mxu3 }
 0x336   : > { %v3866_v9 = vadd.f32 %v6355_v55, %v3865_v27 }
 0x338   : > { %v4113_v60 = vadd.f32 %v4097_v11, %v3866_v9 }
 0x33a   : > { %v4129_v30 = vmax.f32 %v4113_v60, 0.0 }
 0x33c   : > { %4145 = vst [vmem:[%s6363_s19 + $0x58] sm:$0xff] %v4129_v30 }
 0x33d   : > { %v3868_v5 = vpop.f32.mrf.mxu3 }
 0x33e   : > { %v3869_v42 = vadd.f32 %v6355_v55, %v3868_v5 }
 0x340   : > { %v4114_v17 = vadd.f32 %v4098_v53, %v3869_v42 }
 0x342   : > { %v4130_v33 = vmax.f32 %v4114_v17, 0.0 }
 0x344   : > { %4146 = vst [vmem:[%s6363_s19 + $0x60] sm:$0xff] %v4130_v33 }
 0x345   : > { %v3870_v32 = vpop.f32.mrf.mxu3 }
 0x346   : > { %v3871_v47 = vadd.f32 %v6355_v55, %v3870_v32 }
 0x348   : > { %v4115_v44 = vadd.f32 %v4099_v22, %v3871_v47 }
 0x34a   : > { %v4131_v49 = vmax.f32 %v4115_v44, 0.0 }
 0x34c   : > { %4147 = vst [vmem:[%s6363_s19 + $0x68] sm:$0xff] %v4131_v49 }
 0x34d   : > { %v3873_v26 = vpop.f32.mrf.mxu3 }
 0x34e   : > { %v3874_v41 = vadd.f32 %v6355_v55, %v3873_v26 }
 0x350   : > { %v4116_v23 = vadd.f32 %v4100_v48, %v3874_v41 }
 0x352   : > { %v4132_v7 = vmax.f32 %v4116_v23, 0.0 }
 0x354   : > { %4148 = vst [vmem:[%s6363_s19 + $0x70] sm:$0xff] %v4132_v7 }
 0x355   : > { %v3875_v36 = vpop.f32.mrf.mxu3 }
 0x356   : > { %v3876_v45 = vadd.f32 %v6355_v55, %v3875_v36 }
 0x358   : > { %v4117_v37 = vadd.f32 %v4101_v63, %v3876_v45 }
 0x35a   : > { %v4133_v38 = vmax.f32 %v4117_v37, 0.0 }
 0x35c   : > { %4149 = vst [vmem:[%s6363_s19 + $0x78] sm:$0xff] %v4133_v38 }
 0x35d PF: > { %s18_s9 = sadd.s32 1, %s5141_s9   ;;  %s6536_s27 = smov %s5133_s29 }
 0x35e   : > { %p15_p9 = scmp.ge.s32.totalorder %s18_s9, 6   ;;  %s6537_s28 = smov %s5137_s30 }
 0x35f   : > { %s6538_s29 = smov %s6541_s10  ;;  %s6539_s30 = smov %s6545_s11 }
 0x360   :  { %17 = sbr.rel (!%p15_p9) target bundleno = 3 (0x3), region = 96 }

</bundles_post_ra>
